<compile_context>
chip_gen: v7x
topology: tpu7x:2x2x1
jax: 0.10.0
libtpu: 0.0.40
codegen_flags: <defaults>
</compile_context>

<pallas_src>
import numpy as np
import jax
import jax.numpy as jnp
from jax.experimental import pallas as pl
from jax.experimental.pallas import tpu as pltpu

# ---------------- model hyper-parameters (scaled-down, consistent with the forward) ----------
B = 2                      # batch
C_IN = 3                   # image channels
C_IN_PAD = 16              # channel dim zero-padded to 16 lanes (padded weight rows are zero)
H0 = W0 = 16               # input spatial
S1, S2, S3 = 8, 4, 2       # spatial after stem(s2), maxpool(s2), block2(s2)
P0 = H0 * W0               # 256 flattened rows per image at full res
P1 = S1 * S1               # 64
P2 = S2 * S2               # 16
P3 = S3 * S3               # 4
C_STEM = 16
C1_MID, C1_OUT = 8, 32
C2_MID, C2_OUT = 16, 64    # C2_OUT is the "2048" analog
FC_HID = 32                # the "1024" analog
OUT_DIM = 16
BN_EPS = 1e-5
L2_EPS = 1e-12
C_MAX = 16                 # max conv Cin (pad-scratch lane width)
PAD_ROWS = 296             # >= P0 + 2*(W0+1) = 290, multiple of 8
HALO = 24                  # rows cleared at the top/bottom of the pad scratch per step

TAPS = [(-1, -1), (-1, 0), (-1, 1),
        (0, -1),  (0, 0),  (0, 1),
        (1, -1),  (1, 0),  (1, 1)]

# packed-weight row offsets (all 16-aligned for clean bf16 sublane tiling)
W_OFF = {
    "stem": 0,     # (144, 16)
    "b1c1": 144,   # (16, 8)
    "b1c2": 160,   # (72, 8)
    "b1c3": 240,   # (8, 32)
    "b1d":  256,   # (16, 32)
    "b2c1": 272,   # (32, 16)
    "b2c2": 304,   # (144, 16)
    "b2c3": 448,   # (16, 64)
    "b2d":  464,   # (32, 64)
    "fc1":  496,   # (64, 32)
    "fc2":  560,   # (32, 16)
}
W_ROWS = 592
B_ROW = {"stem": 0, "b1c1": 1, "b1c2": 2, "b1c3": 3, "b1d": 4,
         "b2c1": 5, "b2c2": 6, "b2c3": 7, "b2d": 8, "fc1": 9, "fc2": 10}
SEL_ROWS = 96   # sA rows [0,64), sB rows [64,80), sC rows [80,84)


# ---------------- host-side constant builders (pure numpy, computed once) --------------------
def _tap_masks(Bn, Hn, Wn):
    """(B*H*W, 9) validity mask per conv tap (zero-padding semantics)."""
    m = np.zeros((Bn * Hn * Wn, 9), np.float32)
    for t, (dy, dx) in enumerate(TAPS):
        for b in range(Bn):
            for i in range(Hn):
                for j in range(Wn):
                    if 0 <= i + dy < Hn and 0 <= j + dx < Wn:
                        m[(b * Hn + i) * Wn + j, t] = 1.0
    return m


def _subsample_mat(Bn, Hn, Wn):
    """0/1 row-selection matrix implementing stride-2 spatial subsampling as a matmul."""
    Ho, Wo = Hn // 2, Wn // 2
    S = np.zeros((Bn * Ho * Wo, Bn * Hn * Wn), np.float32)
    for b in range(Bn):
        for oi in range(Ho):
            for oj in range(Wo):
                S[(b * Ho + oi) * Wo + oj, (b * Hn + 2 * oi) * Wn + 2 * oj] = 1.0
    return S


# ---------------- the fused kernel -------------------------------------------------------------
def resnet_kernel(x_ref, mask_ref, sel_ref, wpk_ref, bpk_ref, out_ref, pad_ref, col_ref):
    f32, bf16 = jnp.float32, jnp.bfloat16

    def w(name, rows, cols):
        off = W_OFF[name]
        return wpk_ref[off:off + rows, 0:cols]

    def bias(name, cols):
        r = B_ROW[name]
        return bpk_ref[r:r + 1, 0:cols]

    def mm(a, b):
        # MXU matmul: bf16 operands, f32 accumulation.
        return jnp.dot(a.astype(bf16), b.astype(bf16), preferred_element_type=f32)

    def conv3x3(x, mask, name, Hn, Wn, Cin, Cout):
        """3x3 stride-1 zero-padded conv on a flattened (Hn*Wn, Cin) image.

        The 9 masked, spatially-shifted slabs (static slices of the zero-padded scratch)
        are written into the im2col scratch at lane offset t*Cin and consumed by ONE
        K = 9*Cin MXU matmul against the tap-major (9*Cin, Cout) weight.
        """
        P = Hn * Wn
        pad = Wn + 1
        pad_ref[pad:pad + P, 0:Cin] = x
        for t, (dy, dx) in enumerate(TAPS):
            k = dy * Wn + dx
            sh = pad_ref[pad + k:pad + k + P, 0:Cin] * mask[:, t:t + 1]
            col_ref[0:P, t * Cin:(t + 1) * Cin] = sh.astype(bf16)
        return jnp.dot(col_ref[0:P, 0:9 * Cin], w(name, 9 * Cin, Cout),
                       preferred_element_type=f32)

    # Zero only the stem-conv halo rows of the pad scratch (no full clears).  Body rows are
    # fully overwritten before they are read, and every later stale read is multiplied by a
    # 0 tap-mask (values written earlier in this step are always finite).
    zh = jnp.zeros((HALO, C_MAX), f32)
    pad_ref[0:HALO, :] = zh
    pad_ref[PAD_ROWS - HALO:PAD_ROWS, :] = zh

    x = x_ref[0]                             # (256, 16) one image, channels padded to 16
    m16 = mask_ref[0:P0, :]                  # (256, 9) tap validity, 16x16 grid
    m4 = mask_ref[P0:P0 + P2, :]             # (16, 9)  tap validity, 4x4 grid
    sA = sel_ref[0:P1, 0:P0]                 # (64, 256) stride-2 pick 16x16 -> 8x8
    sB = sel_ref[64:64 + P2, 0:P1]           # (16, 64)  maxpool-anchor pick 8x8 -> 4x4
    sC = sel_ref[80:80 + P3, 0:P2]           # (4, 16)   stride-2 pick 4x4 -> 2x2

    # ---- stem: conv3x3/s2 (folded BN, stand-in for 7x7/s2) -> ReLU -> maxpool 2x2/s2
    c = conv3x3(x, m16, "stem", H0, W0, C_IN_PAD, C_STEM)            # (256, 16)
    h = jnp.maximum(mm(sA, c) + bias("stem", C_STEM), 0.0)           # stride-2 pick -> (64, 16)
    # maxpool: windowed neighbour max on the 8x8 grid, then pick even anchors (sB).
    # Valid because the anchors' +1 / +S1 / +S1+1 neighbours never leave the 8x8 image.
    pad_ref[0:P1, 0:C_STEM] = h
    pad_ref[P1:P1 + 16, 0:C_STEM] = jnp.zeros((16, C_STEM), f32)     # defined halo for the max
    m = h
    for k in (1, S1, S1 + 1):
        m = jnp.maximum(m, pad_ref[k:k + P1, 0:C_STEM])
    x1 = mm(sB, m)                                                   # (16, 16)  spatial 4x4

    # ---- bottleneck block 1 (16 -> 8 -> 32, stride 1, projection shortcut); BNs folded
    h = jnp.maximum(mm(x1, w("b1c1", C_STEM, C1_MID)) + bias("b1c1", C1_MID), 0.0)
    h = conv3x3(h, m4, "b1c2", S2, S2, C1_MID, C1_MID) + bias("b1c2", C1_MID)
    h = jnp.maximum(h, 0.0)
    h = mm(h, w("b1c3", C1_MID, C1_OUT)) + bias("b1c3", C1_OUT)
    sc = mm(x1, w("b1d", C_STEM, C1_OUT)) + bias("b1d", C1_OUT)
    x2 = jnp.maximum(h + sc, 0.0)                                    # (16, 32)

    # ---- bottleneck block 2 (32 -> 16 -> 64, stride 2, projection shortcut); BNs folded
    h = jnp.maximum(mm(x2, w("b2c1", C1_OUT, C2_MID)) + bias("b2c1", C2_MID), 0.0)
    h = conv3x3(h, m4, "b2c2", S2, S2, C2_MID, C2_MID)               # (16, 16) full 4x4 res
    h = jnp.maximum(mm(sC, h) + bias("b2c2", C2_MID), 0.0)           # stride-2 pick -> (4, 16)
    h = mm(h, w("b2c3", C2_MID, C2_OUT)) + bias("b2c3", C2_OUT)
    sc = mm(mm(sC, x2), w("b2d", C1_OUT, C2_OUT)) + bias("b2d", C2_OUT)   # 1x1/s2 shortcut
    feat = jnp.maximum(h + sc, 0.0)                                  # (4, 64) == (64ch, 2, 2)

    # ---- head: AdaptiveAvgPool -> F.normalize -> Linear(+folded BN1d) -> ReLU -> Dropout -> Linear
    pooled = jnp.mean(feat, axis=0, keepdims=True)                   # (1, 64)
    nrm = jnp.sqrt(jnp.sum(pooled * pooled, axis=-1, keepdims=True))
    pooled = pooled / jnp.maximum(nrm, L2_EPS)                       # F.normalize(dim=-1)
    h = jnp.maximum(mm(pooled, w("fc1", C2_OUT, FC_HID)) + bias("fc1", FC_HID), 0.0)
    # TODO(synk): Dropout(0.5) is identity at inference; train-mode dropout / BN batch stats not implemented.
    out_ref[0] = mm(h, w("fc2", FC_HID, OUT_DIM)) + bias("fc2", OUT_DIM)


# ---------------- wrapper ----------------------------------------------------------------------
@jax.jit
def image_model_forward(x, params):
    # Layout plumbing outside the kernel: NCHW -> NHWC -> (B, H*W, C), channels padded 3 -> 16.
    xf = jnp.transpose(x, (0, 2, 3, 1)).reshape(B, H0 * W0, C_IN).astype(jnp.float32)
    xf = jnp.pad(xf, ((0, 0), (0, 0), (0, C_IN_PAD - C_IN)))

    out = pl.pallas_call(
        resnet_kernel,
        out_shape=jax.ShapeDtypeStruct((B, 1, OUT_DIM), jnp.float32),
        grid=(B,),                                                    # one image per grid step
        in_specs=[
            pl.BlockSpec((1, H0 * W0, C_IN_PAD), lambda b: (b, 0, 0)),  # activations: per-step
            pl.BlockSpec((P0 + P2, 9), lambda b: (0, 0)),               # constants: resident
            pl.BlockSpec((SEL_ROWS, P0), lambda b: (0, 0)),
            pl.BlockSpec((W_ROWS, 64), lambda b: (0, 0)),
            pl.BlockSpec((16, 64), lambda b: (0, 0)),
        ],
        out_specs=pl.BlockSpec((1, 1, OUT_DIM), lambda b: (b, 0, 0)),
        scratch_shapes=[pltpu.VMEM((PAD_ROWS, C_MAX), jnp.float32),     # zero-padded shift scratch
                        pltpu.VMEM((P0, 9 * C_MAX), jnp.bfloat16)],     # im2col scratch
        compiler_params=pltpu.CompilerParams(
            dimension_semantics=("parallel",)),       # independent batch steps -> 2nd TC on v7x
    )(xf, params["mask_pack"], params["sel_pack"], params["w_pack"], params["b_pack"])
    return out.reshape(B, OUT_DIM)


# ---------------- deterministic synthetic parameters (BNs folded at build time) ----------------
def init_params(key):
    ks = iter(jax.random.split(key, 64))

    def rnd(shape, fan_in):
        return (np.asarray(jax.random.normal(next(ks), shape), np.float32)
                * np.float32(np.sqrt(2.0 / fan_in)))

    def bn_fold(C):
        # eval-mode BatchNorm folded into an affine y*s + t.
        g = 1.0 + 0.1 * np.asarray(jax.random.normal(next(ks), (C,)), np.float32)
        beta = 0.1 * np.asarray(jax.random.normal(next(ks), (C,)), np.float32)
        m = 0.1 * np.asarray(jax.random.normal(next(ks), (C,)), np.float32)
        v = np.asarray(jax.random.uniform(next(ks), (C,), minval=0.5, maxval=1.5), np.float32)
        s = g / np.sqrt(v + BN_EPS)
        return s, beta - m * s

    wpk = np.zeros((W_ROWS, 64), np.float32)
    bpk = np.zeros((16, 64), np.float32)

    def put(name, wmat, bvec):
        wpk[W_OFF[name]:W_OFF[name] + wmat.shape[0], :wmat.shape[1]] = wmat
        bpk[B_ROW[name], :bvec.shape[0]] = bvec

    # stem conv (3x3, tap-major (9*Cin, Cout); real Cin=3 -> padded channel rows are ZERO) + BN
    ws = np.zeros((9, C_IN_PAD, C_STEM), np.float32)
    ws[:, :C_IN, :] = rnd((9, C_IN, C_STEM), 9 * C_IN)
    s, t = bn_fold(C_STEM)
    put("stem", ws.reshape(9 * C_IN_PAD, C_STEM) * s[None, :], t)

    def conv_bn(name, wshape, fan_in, cout):
        s, t = bn_fold(cout)
        put(name, rnd(wshape, fan_in) * s[None, :], t)

    conv_bn("b1c1", (C_STEM, C1_MID), C_STEM, C1_MID)
    conv_bn("b1c2", (9 * C1_MID, C1_MID), 9 * C1_MID, C1_MID)
    conv_bn("b1c3", (C1_MID, C1_OUT), C1_MID, C1_OUT)
    conv_bn("b1d", (C_STEM, C1_OUT), C_STEM, C1_OUT)
    conv_bn("b2c1", (C1_OUT, C2_MID), C1_OUT, C2_MID)
    conv_bn("b2c2", (9 * C2_MID, C2_MID), 9 * C2_MID, C2_MID)
    conv_bn("b2c3", (C2_MID, C2_OUT), C2_MID, C2_OUT)
    conv_bn("b2d", (C1_OUT, C2_OUT), C1_OUT, C2_OUT)

    # head Linear(64->32) + its own bias, BatchNorm1d(eval) folded in
    w1 = rnd((C2_OUT, FC_HID), C2_OUT)
    b1 = 0.1 * np.asarray(jax.random.normal(next(ks), (FC_HID,)), np.float32)
    s, t = bn_fold(FC_HID)
    put("fc1", w1 * s[None, :], b1 * s + t)

    # head Linear(32->out_dim)
    w2 = rnd((FC_HID, OUT_DIM), FC_HID)
    b2 = 0.1 * np.asarray(jax.random.normal(next(ks), (OUT_DIM,)), np.float32)
    put("fc2", w2, b2)

    # constants: per-image tap-validity masks and stride-2 / maxpool-anchor selection matrices
    mask_pack = np.concatenate([_tap_masks(1, H0, W0), _tap_masks(1, S2, S2)], axis=0)  # (272, 9)
    sel = np.zeros((SEL_ROWS, P0), np.float32)
    sel[0:P1, 0:P0] = _subsample_mat(1, H0, W0)
    sel[64:64 + P2, 0:P1] = _subsample_mat(1, S1, S1)
    sel[80:80 + P3, 0:P2] = _subsample_mat(1, S2, S2)

    return {"w_pack": jnp.asarray(wpk, jnp.bfloat16),
            "b_pack": jnp.asarray(bpk, jnp.float32),
            "mask_pack": jnp.asarray(mask_pack, jnp.float32),
            "sel_pack": jnp.asarray(sel, jnp.bfloat16)}


if __name__ == "__main__":
    key = jax.random.PRNGKey(0)
    k_param, k_x = jax.random.split(key)

    params = init_params(k_param)
    x = jax.random.normal(k_x, (B, C_IN, H0, W0), jnp.float32)

    out = jax.block_until_ready(image_model_forward(x, params))
    assert out.shape == (B, OUT_DIM) and out.dtype == jnp.float32
    assert bool(jnp.all(jnp.isfinite(out)))
    print("KERNEL_OK")
</pallas_src>

<mosaic_0001>
module attributes {stable_mosaic.version = 11 : i64} {
  func.func @resnet_kernel(%arg0: i32, %arg1: memref<1x256x16xf32, #tpu.memory_space<vmem>>, %arg2: memref<272x9xf32, #tpu.memory_space<vmem>>, %arg3: memref<96x256xbf16, #tpu.memory_space<vmem>>, %arg4: memref<592x64xbf16, #tpu.memory_space<vmem>>, %arg5: memref<16x64xf32, #tpu.memory_space<vmem>>, %arg6: memref<1x1x16xf32, #tpu.memory_space<vmem>>, %arg7: memref<296x16xf32, #tpu.memory_space<vmem>>, %arg8: memref<256x144xbf16, #tpu.memory_space<vmem>>) attributes {dimension_semantics = [#tpu.dimension_semantics<parallel>], iteration_bounds = array<i64: 2>, scalar_prefetch = 0 : i64, scratch_operands = 2 : i64, tpu.core_type = #tpu.core_type<tc>, window_params = [{transform_indices = @transform_0, window_bounds = array<i64: 1, 256, 16>}, {pipeline_mode = #tpu.pipeline_mode<synchronous>, transform_indices = @transform_1, window_bounds = array<i64: 272, 9>}, {pipeline_mode = #tpu.pipeline_mode<synchronous>, transform_indices = @transform_2, window_bounds = array<i64: 96, 256>}, {pipeline_mode = #tpu.pipeline_mode<synchronous>, transform_indices = @transform_3, window_bounds = array<i64: 592, 64>}, {pipeline_mode = #tpu.pipeline_mode<synchronous>, transform_indices = @transform_4, window_bounds = array<i64: 16, 64>}, {transform_indices = @transform_5, window_bounds = array<i64: 1, 1, 16>}]} {
    %cst = arith.constant 0.000000e+00 : f32
    %0 = vector.broadcast %cst : f32 to vector<24x16xf32>
    %c0 = arith.constant 0 : index
    %c0_0 = arith.constant 0 : index
    %1 = vector.load %arg7[%c0, %c0_0] : memref<296x16xf32, #tpu.memory_space<vmem>>, vector<24x16xf32>
    tpu.vector_store %arg7[%c0, %c0_0], %0 {strides = array<i32>} : memref<296x16xf32, #tpu.memory_space<vmem>>, vector<24x16xf32>,
    %c272 = arith.constant 272 : index
    %c0_1 = arith.constant 0 : index
    %2 = vector.load %arg7[%c272, %c0_1] : memref<296x16xf32, #tpu.memory_space<vmem>>, vector<24x16xf32>
    tpu.vector_store %arg7[%c272, %c0_1], %0 {strides = array<i32>} : memref<296x16xf32, #tpu.memory_space<vmem>>, vector<24x16xf32>,
    %c0_2 = arith.constant 0 : index
    %c0_3 = arith.constant 0 : index
    %c0_4 = arith.constant 0 : index
    %3 = vector.load %arg1[%c0_2, %c0_3, %c0_4] : memref<1x256x16xf32, #tpu.memory_space<vmem>>, vector<1x256x16xf32>
    %4 = vector.shape_cast %3 : vector<1x256x16xf32> to vector<256x16xf32>
    %c0_5 = arith.constant 0 : index
    %c0_6 = arith.constant 0 : index
    %5 = vector.load %arg2[%c0_5, %c0_6] : memref<272x9xf32, #tpu.memory_space<vmem>>, vector<256x9xf32>
    %c256 = arith.constant 256 : index
    %c0_7 = arith.constant 0 : index
    %6 = vector.load %arg2[%c256, %c0_7] : memref<272x9xf32, #tpu.memory_space<vmem>>, vector<16x9xf32>
    %c0_8 = arith.constant 0 : index
    %c0_9 = arith.constant 0 : index
    %7 = vector.load %arg3[%c0_8, %c0_9] : memref<96x256xbf16, #tpu.memory_space<vmem>>, vector<64x256xbf16>
    %c64 = arith.constant 64 : index
    %c0_10 = arith.constant 0 : index
    %8 = vector.load %arg3[%c64, %c0_10] : memref<96x256xbf16, #tpu.memory_space<vmem>>, vector<16x64xbf16>
    %c80 = arith.constant 80 : index
    %c0_11 = arith.constant 0 : index
    %9 = vector.load %arg3[%c80, %c0_11] : memref<96x256xbf16, #tpu.memory_space<vmem>>, vector<4x16xbf16>
    %c17 = arith.constant 17 : index
    %c0_12 = arith.constant 0 : index
    %10 = vector.load %arg7[%c17, %c0_12] : memref<296x16xf32, #tpu.memory_space<vmem>>, vector<256x16xf32>
    tpu.vector_store %arg7[%c17, %c0_12], %4 {strides = array<i32>} : memref<296x16xf32, #tpu.memory_space<vmem>>, vector<256x16xf32>,
    %c0_13 = arith.constant 0 : index
    %c0_14 = arith.constant 0 : index
    %11 = vector.load %arg7[%c0_13, %c0_14] : memref<296x16xf32, #tpu.memory_space<vmem>>, vector<256x16xf32>
    %12 = vector.extract_strided_slice %5 {offsets = [0, 0], sizes = [256, 1], strides = [1, 1]} : vector<256x9xf32> to vector<256x1xf32>
    %13 = vector.broadcast %12 : vector<256x1xf32> to vector<256x16xf32>
    %14 = arith.mulf %11, %13 : vector<256x16xf32>
    %15 = arith.truncf %14 : vector<256x16xf32> to vector<256x16xbf16>
    %c0_15 = arith.constant 0 : index
    %c0_16 = arith.constant 0 : index
    %16 = vector.load %arg8[%c0_15, %c0_16] : memref<256x144xbf16, #tpu.memory_space<vmem>>, vector<256x16xbf16>
    tpu.vector_store %arg8[%c0_15, %c0_16], %15 {strides = array<i32>} : memref<256x144xbf16, #tpu.memory_space<vmem>>, vector<256x16xbf16>,
    %c1 = arith.constant 1 : index
    %c0_17 = arith.constant 0 : index
    %17 = vector.load %arg7[%c1, %c0_17] : memref<296x16xf32, #tpu.memory_space<vmem>>, vector<256x16xf32>
    %18 = vector.extract_strided_slice %5 {offsets = [0, 1], sizes = [256, 1], strides = [1, 1]} : vector<256x9xf32> to vector<256x1xf32>
    %19 = vector.broadcast %18 : vector<256x1xf32> to vector<256x16xf32>
    %20 = arith.mulf %17, %19 : vector<256x16xf32>
    %21 = arith.truncf %20 : vector<256x16xf32> to vector<256x16xbf16>
    %c0_18 = arith.constant 0 : index
    %c16 = arith.constant 16 : index
    %22 = vector.load %arg8[%c0_18, %c16] : memref<256x144xbf16, #tpu.memory_space<vmem>>, vector<256x16xbf16>
    tpu.vector_store %arg8[%c0_18, %c16], %21 {strides = array<i32>} : memref<256x144xbf16, #tpu.memory_space<vmem>>, vector<256x16xbf16>,
    %c2 = arith.constant 2 : index
    %c0_19 = arith.constant 0 : index
    %23 = vector.load %arg7[%c2, %c0_19] : memref<296x16xf32, #tpu.memory_space<vmem>>, vector<256x16xf32>
    %24 = vector.extract_strided_slice %5 {offsets = [0, 2], sizes = [256, 1], strides = [1, 1]} : vector<256x9xf32> to vector<256x1xf32>
    %25 = vector.broadcast %24 : vector<256x1xf32> to vector<256x16xf32>
    %26 = arith.mulf %23, %25 : vector<256x16xf32>
    %27 = arith.truncf %26 : vector<256x16xf32> to vector<256x16xbf16>
    %c0_20 = arith.constant 0 : index
    %c32 = arith.constant 32 : index
    %28 = vector.load %arg8[%c0_20, %c32] : memref<256x144xbf16, #tpu.memory_space<vmem>>, vector<256x16xbf16>
    tpu.vector_store %arg8[%c0_20, %c32], %27 {strides = array<i32>} : memref<256x144xbf16, #tpu.memory_space<vmem>>, vector<256x16xbf16>,
    %c16_21 = arith.constant 16 : index
    %c0_22 = arith.constant 0 : index
    %29 = vector.load %arg7[%c16_21, %c0_22] : memref<296x16xf32, #tpu.memory_space<vmem>>, vector<256x16xf32>
    %30 = vector.extract_strided_slice %5 {offsets = [0, 3], sizes = [256, 1], strides = [1, 1]} : vector<256x9xf32> to vector<256x1xf32>
    %31 = vector.broadcast %30 : vector<256x1xf32> to vector<256x16xf32>
    %32 = arith.mulf %29, %31 : vector<256x16xf32>
    %33 = arith.truncf %32 : vector<256x16xf32> to vector<256x16xbf16>
    %c0_23 = arith.constant 0 : index
    %c48 = arith.constant 48 : index
    %34 = vector.load %arg8[%c0_23, %c48] : memref<256x144xbf16, #tpu.memory_space<vmem>>, vector<256x16xbf16>
    tpu.vector_store %arg8[%c0_23, %c48], %33 {strides = array<i32>} : memref<256x144xbf16, #tpu.memory_space<vmem>>, vector<256x16xbf16>,
    %c17_24 = arith.constant 17 : index
    %c0_25 = arith.constant 0 : index
    %35 = vector.load %arg7[%c17_24, %c0_25] : memref<296x16xf32, #tpu.memory_space<vmem>>, vector<256x16xf32>
    %36 = vector.extract_strided_slice %5 {offsets = [0, 4], sizes = [256, 1], strides = [1, 1]} : vector<256x9xf32> to vector<256x1xf32>
    %37 = vector.broadcast %36 : vector<256x1xf32> to vector<256x16xf32>
    %38 = arith.mulf %35, %37 : vector<256x16xf32>
    %39 = arith.truncf %38 : vector<256x16xf32> to vector<256x16xbf16>
    %c0_26 = arith.constant 0 : index
    %c64_27 = arith.constant 64 : index
    %40 = vector.load %arg8[%c0_26, %c64_27] : memref<256x144xbf16, #tpu.memory_space<vmem>>, vector<256x16xbf16>
    tpu.vector_store %arg8[%c0_26, %c64_27], %39 {strides = array<i32>} : memref<256x144xbf16, #tpu.memory_space<vmem>>, vector<256x16xbf16>,
    %c18 = arith.constant 18 : index
    %c0_28 = arith.constant 0 : index
    %41 = vector.load %arg7[%c18, %c0_28] : memref<296x16xf32, #tpu.memory_space<vmem>>, vector<256x16xf32>
    %42 = vector.extract_strided_slice %5 {offsets = [0, 5], sizes = [256, 1], strides = [1, 1]} : vector<256x9xf32> to vector<256x1xf32>
    %43 = vector.broadcast %42 : vector<256x1xf32> to vector<256x16xf32>
    %44 = arith.mulf %41, %43 : vector<256x16xf32>
    %45 = arith.truncf %44 : vector<256x16xf32> to vector<256x16xbf16>
    %c0_29 = arith.constant 0 : index
    %c80_30 = arith.constant 80 : index
    %46 = vector.load %arg8[%c0_29, %c80_30] : memref<256x144xbf16, #tpu.memory_space<vmem>>, vector<256x16xbf16>
    tpu.vector_store %arg8[%c0_29, %c80_30], %45 {strides = array<i32>} : memref<256x144xbf16, #tpu.memory_space<vmem>>, vector<256x16xbf16>,
    %c32_31 = arith.constant 32 : index
    %c0_32 = arith.constant 0 : index
    %47 = vector.load %arg7[%c32_31, %c0_32] : memref<296x16xf32, #tpu.memory_space<vmem>>, vector<256x16xf32>
    %48 = vector.extract_strided_slice %5 {offsets = [0, 6], sizes = [256, 1], strides = [1, 1]} : vector<256x9xf32> to vector<256x1xf32>
    %49 = vector.broadcast %48 : vector<256x1xf32> to vector<256x16xf32>
    %50 = arith.mulf %47, %49 : vector<256x16xf32>
    %51 = arith.truncf %50 : vector<256x16xf32> to vector<256x16xbf16>
    %c0_33 = arith.constant 0 : index
    %c96 = arith.constant 96 : index
    %52 = vector.load %arg8[%c0_33, %c96] : memref<256x144xbf16, #tpu.memory_space<vmem>>, vector<256x16xbf16>
    tpu.vector_store %arg8[%c0_33, %c96], %51 {strides = array<i32>} : memref<256x144xbf16, #tpu.memory_space<vmem>>, vector<256x16xbf16>,
    %c33 = arith.constant 33 : index
    %c0_34 = arith.constant 0 : index
    %53 = vector.load %arg7[%c33, %c0_34] : memref<296x16xf32, #tpu.memory_space<vmem>>, vector<256x16xf32>
    %54 = vector.extract_strided_slice %5 {offsets = [0, 7], sizes = [256, 1], strides = [1, 1]} : vector<256x9xf32> to vector<256x1xf32>
    %55 = vector.broadcast %54 : vector<256x1xf32> to vector<256x16xf32>
    %56 = arith.mulf %53, %55 : vector<256x16xf32>
    %57 = arith.truncf %56 : vector<256x16xf32> to vector<256x16xbf16>
    %c0_35 = arith.constant 0 : index
    %c112 = arith.constant 112 : index
    %58 = vector.load %arg8[%c0_35, %c112] : memref<256x144xbf16, #tpu.memory_space<vmem>>, vector<256x16xbf16>
    tpu.vector_store %arg8[%c0_35, %c112], %57 {strides = array<i32>} : memref<256x144xbf16, #tpu.memory_space<vmem>>, vector<256x16xbf16>,
    %c34 = arith.constant 34 : index
    %c0_36 = arith.constant 0 : index
    %59 = vector.load %arg7[%c34, %c0_36] : memref<296x16xf32, #tpu.memory_space<vmem>>, vector<256x16xf32>
    %60 = vector.extract_strided_slice %5 {offsets = [0, 8], sizes = [256, 1], strides = [1, 1]} : vector<256x9xf32> to vector<256x1xf32>
    %61 = vector.broadcast %60 : vector<256x1xf32> to vector<256x16xf32>
    %62 = arith.mulf %59, %61 : vector<256x16xf32>
    %63 = arith.truncf %62 : vector<256x16xf32> to vector<256x16xbf16>
    %c0_37 = arith.constant 0 : index
    %c128 = arith.constant 128 : index
    %64 = vector.load %arg8[%c0_37, %c128] : memref<256x144xbf16, #tpu.memory_space<vmem>>, vector<256x16xbf16>
    tpu.vector_store %arg8[%c0_37, %c128], %63 {strides = array<i32>} : memref<256x144xbf16, #tpu.memory_space<vmem>>, vector<256x16xbf16>,
    %c0_38 = arith.constant 0 : index
    %c0_39 = arith.constant 0 : index
    %65 = vector.load %arg8[%c0_38, %c0_39] : memref<256x144xbf16, #tpu.memory_space<vmem>>, vector<256x144xbf16>
    %c0_40 = arith.constant 0 : index
    %c0_41 = arith.constant 0 : index
    %66 = vector.load %arg4[%c0_40, %c0_41] : memref<592x64xbf16, #tpu.memory_space<vmem>>, vector<144x16xbf16>
    %cst_42 = arith.constant dense<0.000000e+00> : vector<256x16xf32>
    %67 = tpu.matmul %65, %66, %cst_42 {dimension_numbers = #tpu.dot_dimension_numbers<[1], [0], [0], [1], [0, 0, 1, 1], [], []>} : vector<256x144xbf16>, vector<144x16xbf16>, vector<256x16xf32> -> vector<256x16xf32>
    %68 = arith.truncf %67 : vector<256x16xf32> to vector<256x16xbf16>
    %cst_43 = arith.constant dense<0.000000e+00> : vector<64x16xf32>
    %69 = tpu.matmul %7, %68, %cst_43 {dimension_numbers = #tpu.dot_dimension_numbers<[1], [0], [0], [1], [0, 0, 1, 1], [], []>} : vector<64x256xbf16>, vector<256x16xbf16>, vector<64x16xf32> -> vector<64x16xf32>
    %c0_44 = arith.constant 0 : index
    %c0_45 = arith.constant 0 : index
    %70 = vector.load %arg5[%c0_44, %c0_45] : memref<16x64xf32, #tpu.memory_space<vmem>>, vector<1x16xf32>
    %71 = vector.broadcast %70 : vector<1x16xf32> to vector<64x16xf32>
    %72 = arith.addf %69, %71 : vector<64x16xf32>
    %cst_46 = arith.constant 0.000000e+00 : f32
    %73 = vector.broadcast %cst_46 : f32 to vector<64x16xf32>
    %74 = arith.maximumf %72, %73 : vector<64x16xf32>
    %c0_47 = arith.constant 0 : index
    %c0_48 = arith.constant 0 : index
    %75 = vector.load %arg7[%c0_47, %c0_48] : memref<296x16xf32, #tpu.memory_space<vmem>>, vector<64x16xf32>
    tpu.vector_store %arg7[%c0_47, %c0_48], %74 {strides = array<i32>} : memref<296x16xf32, #tpu.memory_space<vmem>>, vector<64x16xf32>,
    %cst_49 = arith.constant 0.000000e+00 : f32
    %76 = vector.broadcast %cst_49 : f32 to vector<16x16xf32>
    %c64_50 = arith.constant 64 : index
    %c0_51 = arith.constant 0 : index
    %77 = vector.load %arg7[%c64_50, %c0_51] : memref<296x16xf32, #tpu.memory_space<vmem>>, vector<16x16xf32>
    tpu.vector_store %arg7[%c64_50, %c0_51], %76 {strides = array<i32>} : memref<296x16xf32, #tpu.memory_space<vmem>>, vector<16x16xf32>,
    %c1_52 = arith.constant 1 : index
    %c0_53 = arith.constant 0 : index
    %78 = vector.load %arg7[%c1_52, %c0_53] : memref<296x16xf32, #tpu.memory_space<vmem>>, vector<64x16xf32>
    %79 = arith.maximumf %74, %78 : vector<64x16xf32>
    %c8 = arith.constant 8 : index
    %c0_54 = arith.constant 0 : index
    %80 = vector.load %arg7[%c8, %c0_54] : memref<296x16xf32, #tpu.memory_space<vmem>>, vector<64x16xf32>
    %81 = arith.maximumf %79, %80 : vector<64x16xf32>
    %c9 = arith.constant 9 : index
    %c0_55 = arith.constant 0 : index
    %82 = vector.load %arg7[%c9, %c0_55] : memref<296x16xf32, #tpu.memory_space<vmem>>, vector<64x16xf32>
    %83 = arith.maximumf %81, %82 : vector<64x16xf32>
    %84 = arith.truncf %83 : vector<64x16xf32> to vector<64x16xbf16>
    %cst_56 = arith.constant dense<0.000000e+00> : vector<16x16xf32>
    %85 = tpu.matmul %8, %84, %cst_56 {dimension_numbers = #tpu.dot_dimension_numbers<[1], [0], [0], [1], [0, 0, 1, 1], [], []>} : vector<16x64xbf16>, vector<64x16xbf16>, vector<16x16xf32> -> vector<16x16xf32>
    %c144 = arith.constant 144 : index
    %c0_57 = arith.constant 0 : index
    %86 = vector.load %arg4[%c144, %c0_57] : memref<592x64xbf16, #tpu.memory_space<vmem>>, vector<16x8xbf16>
    %87 = arith.truncf %85 : vector<16x16xf32> to vector<16x16xbf16>
    %cst_58 = arith.constant dense<0.000000e+00> : vector<16x8xf32>
    %88 = tpu.matmul %87, %86, %cst_58 {dimension_numbers = #tpu.dot_dimension_numbers<[1], [0], [0], [1], [0, 0, 1, 1], [], []>} : vector<16x16xbf16>, vector<16x8xbf16>, vector<16x8xf32> -> vector<16x8xf32>
    %c1_59 = arith.constant 1 : index
    %c0_60 = arith.constant 0 : index
    %89 = vector.load %arg5[%c1_59, %c0_60] : memref<16x64xf32, #tpu.memory_space<vmem>>, vector<1x8xf32>
    %90 = vector.broadcast %89 : vector<1x8xf32> to vector<16x8xf32>
    %91 = arith.addf %88, %90 : vector<16x8xf32>
    %cst_61 = arith.constant 0.000000e+00 : f32
    %92 = vector.broadcast %cst_61 : f32 to vector<16x8xf32>
    %93 = arith.maximumf %91, %92 : vector<16x8xf32>
    %c5 = arith.constant 5 : index
    %c0_62 = arith.constant 0 : index
    %94 = vector.load %arg7[%c5, %c0_62] : memref<296x16xf32, #tpu.memory_space<vmem>>, vector<16x8xf32>
    tpu.vector_store %arg7[%c5, %c0_62], %93 {strides = array<i32>} : memref<296x16xf32, #tpu.memory_space<vmem>>, vector<16x8xf32>,
    %c0_63 = arith.constant 0 : index
    %c0_64 = arith.constant 0 : index
    %95 = vector.load %arg7[%c0_63, %c0_64] : memref<296x16xf32, #tpu.memory_space<vmem>>, vector<16x8xf32>
    %96 = vector.extract_strided_slice %6 {offsets = [0, 0], sizes = [16, 1], strides = [1, 1]} : vector<16x9xf32> to vector<16x1xf32>
    %97 = vector.broadcast %96 : vector<16x1xf32> to vector<16x8xf32>
    %98 = arith.mulf %95, %97 : vector<16x8xf32>
    %99 = arith.truncf %98 : vector<16x8xf32> to vector<16x8xbf16>
    %c0_65 = arith.constant 0 : index
    %c0_66 = arith.constant 0 : index
    %100 = vector.load %arg8[%c0_65, %c0_66] : memref<256x144xbf16, #tpu.memory_space<vmem>>, vector<16x8xbf16>
    tpu.vector_store %arg8[%c0_65, %c0_66], %99 {strides = array<i32>} : memref<256x144xbf16, #tpu.memory_space<vmem>>, vector<16x8xbf16>,
    %c1_67 = arith.constant 1 : index
    %c0_68 = arith.constant 0 : index
    %101 = vector.load %arg7[%c1_67, %c0_68] : memref<296x16xf32, #tpu.memory_space<vmem>>, vector<16x8xf32>
    %102 = vector.extract_strided_slice %6 {offsets = [0, 1], sizes = [16, 1], strides = [1, 1]} : vector<16x9xf32> to vector<16x1xf32>
    %103 = vector.broadcast %102 : vector<16x1xf32> to vector<16x8xf32>
    %104 = arith.mulf %101, %103 : vector<16x8xf32>
    %105 = arith.truncf %104 : vector<16x8xf32> to vector<16x8xbf16>
    %c0_69 = arith.constant 0 : index
    %c8_70 = arith.constant 8 : index
    %106 = vector.load %arg8[%c0_69, %c8_70] : memref<256x144xbf16, #tpu.memory_space<vmem>>, vector<16x8xbf16>
    tpu.vector_store %arg8[%c0_69, %c8_70], %105 {strides = array<i32>} : memref<256x144xbf16, #tpu.memory_space<vmem>>, vector<16x8xbf16>,
    %c2_71 = arith.constant 2 : index
    %c0_72 = arith.constant 0 : index
    %107 = vector.load %arg7[%c2_71, %c0_72] : memref<296x16xf32, #tpu.memory_space<vmem>>, vector<16x8xf32>
    %108 = vector.extract_strided_slice %6 {offsets = [0, 2], sizes = [16, 1], strides = [1, 1]} : vector<16x9xf32> to vector<16x1xf32>
    %109 = vector.broadcast %108 : vector<16x1xf32> to vector<16x8xf32>
    %110 = arith.mulf %107, %109 : vector<16x8xf32>
    %111 = arith.truncf %110 : vector<16x8xf32> to vector<16x8xbf16>
    %c0_73 = arith.constant 0 : index
    %c16_74 = arith.constant 16 : index
    %112 = vector.load %arg8[%c0_73, %c16_74] : memref<256x144xbf16, #tpu.memory_space<vmem>>, vector<16x8xbf16>
    tpu.vector_store %arg8[%c0_73, %c16_74], %111 {strides = array<i32>} : memref<256x144xbf16, #tpu.memory_space<vmem>>, vector<16x8xbf16>,
    %c4 = arith.constant 4 : index
    %c0_75 = arith.constant 0 : index
    %113 = vector.load %arg7[%c4, %c0_75] : memref<296x16xf32, #tpu.memory_space<vmem>>, vector<16x8xf32>
    %114 = vector.extract_strided_slice %6 {offsets = [0, 3], sizes = [16, 1], strides = [1, 1]} : vector<16x9xf32> to vector<16x1xf32>
    %115 = vector.broadcast %114 : vector<16x1xf32> to vector<16x8xf32>
    %116 = arith.mulf %113, %115 : vector<16x8xf32>
    %117 = arith.truncf %116 : vector<16x8xf32> to vector<16x8xbf16>
    %c0_76 = arith.constant 0 : index
    %c24 = arith.constant 24 : index
    %118 = vector.load %arg8[%c0_76, %c24] : memref<256x144xbf16, #tpu.memory_space<vmem>>, vector<16x8xbf16>
    tpu.vector_store %arg8[%c0_76, %c24], %117 {strides = array<i32>} : memref<256x144xbf16, #tpu.memory_space<vmem>>, vector<16x8xbf16>,
    %c5_77 = arith.constant 5 : index
    %c0_78 = arith.constant 0 : index
    %119 = vector.load %arg7[%c5_77, %c0_78] : memref<296x16xf32, #tpu.memory_space<vmem>>, vector<16x8xf32>
    %120 = vector.extract_strided_slice %6 {offsets = [0, 4], sizes = [16, 1], strides = [1, 1]} : vector<16x9xf32> to vector<16x1xf32>
    %121 = vector.broadcast %120 : vector<16x1xf32> to vector<16x8xf32>
    %122 = arith.mulf %119, %121 : vector<16x8xf32>
    %123 = arith.truncf %122 : vector<16x8xf32> to vector<16x8xbf16>
    %c0_79 = arith.constant 0 : index
    %c32_80 = arith.constant 32 : index
    %124 = vector.load %arg8[%c0_79, %c32_80] : memref<256x144xbf16, #tpu.memory_space<vmem>>, vector<16x8xbf16>
    tpu.vector_store %arg8[%c0_79, %c32_80], %123 {strides = array<i32>} : memref<256x144xbf16, #tpu.memory_space<vmem>>, vector<16x8xbf16>,
    %c6 = arith.constant 6 : index
    %c0_81 = arith.constant 0 : index
    %125 = vector.load %arg7[%c6, %c0_81] : memref<296x16xf32, #tpu.memory_space<vmem>>, vector<16x8xf32>
    %126 = vector.extract_strided_slice %6 {offsets = [0, 5], sizes = [16, 1], strides = [1, 1]} : vector<16x9xf32> to vector<16x1xf32>
    %127 = vector.broadcast %126 : vector<16x1xf32> to vector<16x8xf32>
    %128 = arith.mulf %125, %127 : vector<16x8xf32>
    %129 = arith.truncf %128 : vector<16x8xf32> to vector<16x8xbf16>
    %c0_82 = arith.constant 0 : index
    %c40 = arith.constant 40 : index
    %130 = vector.load %arg8[%c0_82, %c40] : memref<256x144xbf16, #tpu.memory_space<vmem>>, vector<16x8xbf16>
    tpu.vector_store %arg8[%c0_82, %c40], %129 {strides = array<i32>} : memref<256x144xbf16, #tpu.memory_space<vmem>>, vector<16x8xbf16>,
    %c8_83 = arith.constant 8 : index
    %c0_84 = arith.constant 0 : index
    %131 = vector.load %arg7[%c8_83, %c0_84] : memref<296x16xf32, #tpu.memory_space<vmem>>, vector<16x8xf32>
    %132 = vector.extract_strided_slice %6 {offsets = [0, 6], sizes = [16, 1], strides = [1, 1]} : vector<16x9xf32> to vector<16x1xf32>
    %133 = vector.broadcast %132 : vector<16x1xf32> to vector<16x8xf32>
    %134 = arith.mulf %131, %133 : vector<16x8xf32>
    %135 = arith.truncf %134 : vector<16x8xf32> to vector<16x8xbf16>
    %c0_85 = arith.constant 0 : index
    %c48_86 = arith.constant 48 : index
    %136 = vector.load %arg8[%c0_85, %c48_86] : memref<256x144xbf16, #tpu.memory_space<vmem>>, vector<16x8xbf16>
    tpu.vector_store %arg8[%c0_85, %c48_86], %135 {strides = array<i32>} : memref<256x144xbf16, #tpu.memory_space<vmem>>, vector<16x8xbf16>,
    %c9_87 = arith.constant 9 : index
    %c0_88 = arith.constant 0 : index
    %137 = vector.load %arg7[%c9_87, %c0_88] : memref<296x16xf32, #tpu.memory_space<vmem>>, vector<16x8xf32>
    %138 = vector.extract_strided_slice %6 {offsets = [0, 7], sizes = [16, 1], strides = [1, 1]} : vector<16x9xf32> to vector<16x1xf32>
    %139 = vector.broadcast %138 : vector<16x1xf32> to vector<16x8xf32>
    %140 = arith.mulf %137, %139 : vector<16x8xf32>
    %141 = arith.truncf %140 : vector<16x8xf32> to vector<16x8xbf16>
    %c0_89 = arith.constant 0 : index
    %c56 = arith.constant 56 : index
    %142 = vector.load %arg8[%c0_89, %c56] : memref<256x144xbf16, #tpu.memory_space<vmem>>, vector<16x8xbf16>
    tpu.vector_store %arg8[%c0_89, %c56], %141 {strides = array<i32>} : memref<256x144xbf16, #tpu.memory_space<vmem>>, vector<16x8xbf16>,
    %c10 = arith.constant 10 : index
    %c0_90 = arith.constant 0 : index
    %143 = vector.load %arg7[%c10, %c0_90] : memref<296x16xf32, #tpu.memory_space<vmem>>, vector<16x8xf32>
    %144 = vector.extract_strided_slice %6 {offsets = [0, 8], sizes = [16, 1], strides = [1, 1]} : vector<16x9xf32> to vector<16x1xf32>
    %145 = vector.broadcast %144 : vector<16x1xf32> to vector<16x8xf32>
    %146 = arith.mulf %143, %145 : vector<16x8xf32>
    %147 = arith.truncf %146 : vector<16x8xf32> to vector<16x8xbf16>
    %c0_91 = arith.constant 0 : index
    %c64_92 = arith.constant 64 : index
    %148 = vector.load %arg8[%c0_91, %c64_92] : memref<256x144xbf16, #tpu.memory_space<vmem>>, vector<16x8xbf16>
    tpu.vector_store %arg8[%c0_91, %c64_92], %147 {strides = array<i32>} : memref<256x144xbf16, #tpu.memory_space<vmem>>, vector<16x8xbf16>,
    %c0_93 = arith.constant 0 : index
    %c0_94 = arith.constant 0 : index
    %149 = vector.load %arg8[%c0_93, %c0_94] : memref<256x144xbf16, #tpu.memory_space<vmem>>, vector<16x72xbf16>
    %c160 = arith.constant 160 : index
    %c0_95 = arith.constant 0 : index
    %150 = vector.load %arg4[%c160, %c0_95] : memref<592x64xbf16, #tpu.memory_space<vmem>>, vector<72x8xbf16>
    %cst_96 = arith.constant dense<0.000000e+00> : vector<16x8xf32>
    %151 = tpu.matmul %149, %150, %cst_96 {dimension_numbers = #tpu.dot_dimension_numbers<[1], [0], [0], [1], [0, 0, 1, 1], [], []>} : vector<16x72xbf16>, vector<72x8xbf16>, vector<16x8xf32> -> vector<16x8xf32>
    %c2_97 = arith.constant 2 : index
    %c0_98 = arith.constant 0 : index
    %152 = vector.load %arg5[%c2_97, %c0_98] : memref<16x64xf32, #tpu.memory_space<vmem>>, vector<1x8xf32>
    %153 = vector.broadcast %152 : vector<1x8xf32> to vector<16x8xf32>
    %154 = arith.addf %151, %153 : vector<16x8xf32>
    %cst_99 = arith.constant 0.000000e+00 : f32
    %155 = vector.broadcast %cst_99 : f32 to vector<16x8xf32>
    %156 = arith.maximumf %154, %155 : vector<16x8xf32>
    %c240 = arith.constant 240 : index
    %c0_100 = arith.constant 0 : index
    %157 = vector.load %arg4[%c240, %c0_100] : memref<592x64xbf16, #tpu.memory_space<vmem>>, vector<8x32xbf16>
    %158 = arith.truncf %156 : vector<16x8xf32> to vector<16x8xbf16>
    %cst_101 = arith.constant dense<0.000000e+00> : vector<16x32xf32>
    %159 = tpu.matmul %158, %157, %cst_101 {dimension_numbers = #tpu.dot_dimension_numbers<[1], [0], [0], [1], [0, 0, 1, 1], [], []>} : vector<16x8xbf16>, vector<8x32xbf16>, vector<16x32xf32> -> vector<16x32xf32>
    %c3 = arith.constant 3 : index
    %c0_102 = arith.constant 0 : index
    %160 = vector.load %arg5[%c3, %c0_102] : memref<16x64xf32, #tpu.memory_space<vmem>>, vector<1x32xf32>
    %161 = vector.broadcast %160 : vector<1x32xf32> to vector<16x32xf32>
    %162 = arith.addf %159, %161 : vector<16x32xf32>
    %c256_103 = arith.constant 256 : index
    %c0_104 = arith.constant 0 : index
    %163 = vector.load %arg4[%c256_103, %c0_104] : memref<592x64xbf16, #tpu.memory_space<vmem>>, vector<16x32xbf16>
    %164 = arith.truncf %85 : vector<16x16xf32> to vector<16x16xbf16>
    %cst_105 = arith.constant dense<0.000000e+00> : vector<16x32xf32>
    %165 = tpu.matmul %164, %163, %cst_105 {dimension_numbers = #tpu.dot_dimension_numbers<[1], [0], [0], [1], [0, 0, 1, 1], [], []>} : vector<16x16xbf16>, vector<16x32xbf16>, vector<16x32xf32> -> vector<16x32xf32>
    %c4_106 = arith.constant 4 : index
    %c0_107 = arith.constant 0 : index
    %166 = vector.load %arg5[%c4_106, %c0_107] : memref<16x64xf32, #tpu.memory_space<vmem>>, vector<1x32xf32>
    %167 = vector.broadcast %166 : vector<1x32xf32> to vector<16x32xf32>
    %168 = arith.addf %165, %167 : vector<16x32xf32>
    %169 = arith.addf %162, %168 : vector<16x32xf32>
    %cst_108 = arith.constant 0.000000e+00 : f32
    %170 = vector.broadcast %cst_108 : f32 to vector<16x32xf32>
    %171 = arith.maximumf %169, %170 : vector<16x32xf32>
    %c272_109 = arith.constant 272 : index
    %c0_110 = arith.constant 0 : index
    %172 = vector.load %arg4[%c272_109, %c0_110] : memref<592x64xbf16, #tpu.memory_space<vmem>>, vector<32x16xbf16>
    %173 = arith.truncf %171 : vector<16x32xf32> to vector<16x32xbf16>
    %cst_111 = arith.constant dense<0.000000e+00> : vector<16x16xf32>
    %174 = tpu.matmul %173, %172, %cst_111 {dimension_numbers = #tpu.dot_dimension_numbers<[1], [0], [0], [1], [0, 0, 1, 1], [], []>} : vector<16x32xbf16>, vector<32x16xbf16>, vector<16x16xf32> -> vector<16x16xf32>
    %c5_112 = arith.constant 5 : index
    %c0_113 = arith.constant 0 : index
    %175 = vector.load %arg5[%c5_112, %c0_113] : memref<16x64xf32, #tpu.memory_space<vmem>>, vector<1x16xf32>
    %176 = vector.broadcast %175 : vector<1x16xf32> to vector<16x16xf32>
    %177 = arith.addf %174, %176 : vector<16x16xf32>
    %cst_114 = arith.constant 0.000000e+00 : f32
    %178 = vector.broadcast %cst_114 : f32 to vector<16x16xf32>
    %179 = arith.maximumf %177, %178 : vector<16x16xf32>
    %c5_115 = arith.constant 5 : index
    %c0_116 = arith.constant 0 : index
    %180 = vector.load %arg7[%c5_115, %c0_116] : memref<296x16xf32, #tpu.memory_space<vmem>>, vector<16x16xf32>
    tpu.vector_store %arg7[%c5_115, %c0_116], %179 {strides = array<i32>} : memref<296x16xf32, #tpu.memory_space<vmem>>, vector<16x16xf32>,
    %c0_117 = arith.constant 0 : index
    %c0_118 = arith.constant 0 : index
    %181 = vector.load %arg7[%c0_117, %c0_118] : memref<296x16xf32, #tpu.memory_space<vmem>>, vector<16x16xf32>
    %182 = vector.extract_strided_slice %6 {offsets = [0, 0], sizes = [16, 1], strides = [1, 1]} : vector<16x9xf32> to vector<16x1xf32>
    %183 = vector.broadcast %182 : vector<16x1xf32> to vector<16x16xf32>
    %184 = arith.mulf %181, %183 : vector<16x16xf32>
    %185 = arith.truncf %184 : vector<16x16xf32> to vector<16x16xbf16>
    %c0_119 = arith.constant 0 : index
    %c0_120 = arith.constant 0 : index
    %186 = vector.load %arg8[%c0_119, %c0_120] : memref<256x144xbf16, #tpu.memory_space<vmem>>, vector<16x16xbf16>
    tpu.vector_store %arg8[%c0_119, %c0_120], %185 {strides = array<i32>} : memref<256x144xbf16, #tpu.memory_space<vmem>>, vector<16x16xbf16>,
    %c1_121 = arith.constant 1 : index
    %c0_122 = arith.constant 0 : index
    %187 = vector.load %arg7[%c1_121, %c0_122] : memref<296x16xf32, #tpu.memory_space<vmem>>, vector<16x16xf32>
    %188 = vector.extract_strided_slice %6 {offsets = [0, 1], sizes = [16, 1], strides = [1, 1]} : vector<16x9xf32> to vector<16x1xf32>
    %189 = vector.broadcast %188 : vector<16x1xf32> to vector<16x16xf32>
    %190 = arith.mulf %187, %189 : vector<16x16xf32>
    %191 = arith.truncf %190 : vector<16x16xf32> to vector<16x16xbf16>
    %c0_123 = arith.constant 0 : index
    %c16_124 = arith.constant 16 : index
    %192 = vector.load %arg8[%c0_123, %c16_124] : memref<256x144xbf16, #tpu.memory_space<vmem>>, vector<16x16xbf16>
    tpu.vector_store %arg8[%c0_123, %c16_124], %191 {strides = array<i32>} : memref<256x144xbf16, #tpu.memory_space<vmem>>, vector<16x16xbf16>,
    %c2_125 = arith.constant 2 : index
    %c0_126 = arith.constant 0 : index
    %193 = vector.load %arg7[%c2_125, %c0_126] : memref<296x16xf32, #tpu.memory_space<vmem>>, vector<16x16xf32>
    %194 = vector.extract_strided_slice %6 {offsets = [0, 2], sizes = [16, 1], strides = [1, 1]} : vector<16x9xf32> to vector<16x1xf32>
    %195 = vector.broadcast %194 : vector<16x1xf32> to vector<16x16xf32>
    %196 = arith.mulf %193, %195 : vector<16x16xf32>
    %197 = arith.truncf %196 : vector<16x16xf32> to vector<16x16xbf16>
    %c0_127 = arith.constant 0 : index
    %c32_128 = arith.constant 32 : index
    %198 = vector.load %arg8[%c0_127, %c32_128] : memref<256x144xbf16, #tpu.memory_space<vmem>>, vector<16x16xbf16>
    tpu.vector_store %arg8[%c0_127, %c32_128], %197 {strides = array<i32>} : memref<256x144xbf16, #tpu.memory_space<vmem>>, vector<16x16xbf16>,
    %c4_129 = arith.constant 4 : index
    %c0_130 = arith.constant 0 : index
    %199 = vector.load %arg7[%c4_129, %c0_130] : memref<296x16xf32, #tpu.memory_space<vmem>>, vector<16x16xf32>
    %200 = vector.extract_strided_slice %6 {offsets = [0, 3], sizes = [16, 1], strides = [1, 1]} : vector<16x9xf32> to vector<16x1xf32>
    %201 = vector.broadcast %200 : vector<16x1xf32> to vector<16x16xf32>
    %202 = arith.mulf %199, %201 : vector<16x16xf32>
    %203 = arith.truncf %202 : vector<16x16xf32> to vector<16x16xbf16>
    %c0_131 = arith.constant 0 : index
    %c48_132 = arith.constant 48 : index
    %204 = vector.load %arg8[%c0_131, %c48_132] : memref<256x144xbf16, #tpu.memory_space<vmem>>, vector<16x16xbf16>
    tpu.vector_store %arg8[%c0_131, %c48_132], %203 {strides = array<i32>} : memref<256x144xbf16, #tpu.memory_space<vmem>>, vector<16x16xbf16>,
    %c5_133 = arith.constant 5 : index
    %c0_134 = arith.constant 0 : index
    %205 = vector.load %arg7[%c5_133, %c0_134] : memref<296x16xf32, #tpu.memory_space<vmem>>, vector<16x16xf32>
    %206 = vector.extract_strided_slice %6 {offsets = [0, 4], sizes = [16, 1], strides = [1, 1]} : vector<16x9xf32> to vector<16x1xf32>
    %207 = vector.broadcast %206 : vector<16x1xf32> to vector<16x16xf32>
    %208 = arith.mulf %205, %207 : vector<16x16xf32>
    %209 = arith.truncf %208 : vector<16x16xf32> to vector<16x16xbf16>
    %c0_135 = arith.constant 0 : index
    %c64_136 = arith.constant 64 : index
    %210 = vector.load %arg8[%c0_135, %c64_136] : memref<256x144xbf16, #tpu.memory_space<vmem>>, vector<16x16xbf16>
    tpu.vector_store %arg8[%c0_135, %c64_136], %209 {strides = array<i32>} : memref<256x144xbf16, #tpu.memory_space<vmem>>, vector<16x16xbf16>,
    %c6_137 = arith.constant 6 : index
    %c0_138 = arith.constant 0 : index
    %211 = vector.load %arg7[%c6_137, %c0_138] : memref<296x16xf32, #tpu.memory_space<vmem>>, vector<16x16xf32>
    %212 = vector.extract_strided_slice %6 {offsets = [0, 5], sizes = [16, 1], strides = [1, 1]} : vector<16x9xf32> to vector<16x1xf32>
    %213 = vector.broadcast %212 : vector<16x1xf32> to vector<16x16xf32>
    %214 = arith.mulf %211, %213 : vector<16x16xf32>
    %215 = arith.truncf %214 : vector<16x16xf32> to vector<16x16xbf16>
    %c0_139 = arith.constant 0 : index
    %c80_140 = arith.constant 80 : index
    %216 = vector.load %arg8[%c0_139, %c80_140] : memref<256x144xbf16, #tpu.memory_space<vmem>>, vector<16x16xbf16>
    tpu.vector_store %arg8[%c0_139, %c80_140], %215 {strides = array<i32>} : memref<256x144xbf16, #tpu.memory_space<vmem>>, vector<16x16xbf16>,
    %c8_141 = arith.constant 8 : index
    %c0_142 = arith.constant 0 : index
    %217 = vector.load %arg7[%c8_141, %c0_142] : memref<296x16xf32, #tpu.memory_space<vmem>>, vector<16x16xf32>
    %218 = vector.extract_strided_slice %6 {offsets = [0, 6], sizes = [16, 1], strides = [1, 1]} : vector<16x9xf32> to vector<16x1xf32>
    %219 = vector.broadcast %218 : vector<16x1xf32> to vector<16x16xf32>
    %220 = arith.mulf %217, %219 : vector<16x16xf32>
    %221 = arith.truncf %220 : vector<16x16xf32> to vector<16x16xbf16>
    %c0_143 = arith.constant 0 : index
    %c96_144 = arith.constant 96 : index
    %222 = vector.load %arg8[%c0_143, %c96_144] : memref<256x144xbf16, #tpu.memory_space<vmem>>, vector<16x16xbf16>
    tpu.vector_store %arg8[%c0_143, %c96_144], %221 {strides = array<i32>} : memref<256x144xbf16, #tpu.memory_space<vmem>>, vector<16x16xbf16>,
    %c9_145 = arith.constant 9 : index
    %c0_146 = arith.constant 0 : index
    %223 = vector.load %arg7[%c9_145, %c0_146] : memref<296x16xf32, #tpu.memory_space<vmem>>, vector<16x16xf32>
    %224 = vector.extract_strided_slice %6 {offsets = [0, 7], sizes = [16, 1], strides = [1, 1]} : vector<16x9xf32> to vector<16x1xf32>
    %225 = vector.broadcast %224 : vector<16x1xf32> to vector<16x16xf32>
    %226 = arith.mulf %223, %225 : vector<16x16xf32>
    %227 = arith.truncf %226 : vector<16x16xf32> to vector<16x16xbf16>
    %c0_147 = arith.constant 0 : index
    %c112_148 = arith.constant 112 : index
    %228 = vector.load %arg8[%c0_147, %c112_148] : memref<256x144xbf16, #tpu.memory_space<vmem>>, vector<16x16xbf16>
    tpu.vector_store %arg8[%c0_147, %c112_148], %227 {strides = array<i32>} : memref<256x144xbf16, #tpu.memory_space<vmem>>, vector<16x16xbf16>,
    %c10_149 = arith.constant 10 : index
    %c0_150 = arith.constant 0 : index
    %229 = vector.load %arg7[%c10_149, %c0_150] : memref<296x16xf32, #tpu.memory_space<vmem>>, vector<16x16xf32>
    %230 = vector.extract_strided_slice %6 {offsets = [0, 8], sizes = [16, 1], strides = [1, 1]} : vector<16x9xf32> to vector<16x1xf32>
    %231 = vector.broadcast %230 : vector<16x1xf32> to vector<16x16xf32>
    %232 = arith.mulf %229, %231 : vector<16x16xf32>
    %233 = arith.truncf %232 : vector<16x16xf32> to vector<16x16xbf16>
    %c0_151 = arith.constant 0 : index
    %c128_152 = arith.constant 128 : index
    %234 = vector.load %arg8[%c0_151, %c128_152] : memref<256x144xbf16, #tpu.memory_space<vmem>>, vector<16x16xbf16>
    tpu.vector_store %arg8[%c0_151, %c128_152], %233 {strides = array<i32>} : memref<256x144xbf16, #tpu.memory_space<vmem>>, vector<16x16xbf16>,
    %c0_153 = arith.constant 0 : index
    %c0_154 = arith.constant 0 : index
    %235 = vector.load %arg8[%c0_153, %c0_154] : memref<256x144xbf16, #tpu.memory_space<vmem>>, vector<16x144xbf16>
    %c304 = arith.constant 304 : index
    %c0_155 = arith.constant 0 : index
    %236 = vector.load %arg4[%c304, %c0_155] : memref<592x64xbf16, #tpu.memory_space<vmem>>, vector<144x16xbf16>
    %cst_156 = arith.constant dense<0.000000e+00> : vector<16x16xf32>
    %237 = tpu.matmul %235, %236, %cst_156 {dimension_numbers = #tpu.dot_dimension_numbers<[1], [0], [0], [1], [0, 0, 1, 1], [], []>} : vector<16x144xbf16>, vector<144x16xbf16>, vector<16x16xf32> -> vector<16x16xf32>
    %238 = arith.truncf %237 : vector<16x16xf32> to vector<16x16xbf16>
    %cst_157 = arith.constant dense<0.000000e+00> : vector<4x16xf32>
    %239 = tpu.matmul %9, %238, %cst_157 {dimension_numbers = #tpu.dot_dimension_numbers<[1], [0], [0], [1], [0, 0, 1, 1], [], []>} : vector<4x16xbf16>, vector<16x16xbf16>, vector<4x16xf32> -> vector<4x16xf32>
    %c6_158 = arith.constant 6 : index
    %c0_159 = arith.constant 0 : index
    %240 = vector.load %arg5[%c6_158, %c0_159] : memref<16x64xf32, #tpu.memory_space<vmem>>, vector<1x16xf32>
    %241 = vector.broadcast %240 : vector<1x16xf32> to vector<4x16xf32>
    %242 = arith.addf %239, %241 : vector<4x16xf32>
    %cst_160 = arith.constant 0.000000e+00 : f32
    %243 = vector.broadcast %cst_160 : f32 to vector<4x16xf32>
    %244 = arith.maximumf %242, %243 : vector<4x16xf32>
    %c448 = arith.constant 448 : index
    %c0_161 = arith.constant 0 : index
    %245 = vector.load %arg4[%c448, %c0_161] : memref<592x64xbf16, #tpu.memory_space<vmem>>, vector<16x64xbf16>
    %246 = arith.truncf %244 : vector<4x16xf32> to vector<4x16xbf16>
    %cst_162 = arith.constant dense<0.000000e+00> : vector<4x64xf32>
    %247 = tpu.matmul %246, %245, %cst_162 {dimension_numbers = #tpu.dot_dimension_numbers<[1], [0], [0], [1], [0, 0, 1, 1], [], []>} : vector<4x16xbf16>, vector<16x64xbf16>, vector<4x64xf32> -> vector<4x64xf32>
    %c7 = arith.constant 7 : index
    %c0_163 = arith.constant 0 : index
    %248 = vector.load %arg5[%c7, %c0_163] : memref<16x64xf32, #tpu.memory_space<vmem>>, vector<1x64xf32>
    %249 = vector.broadcast %248 : vector<1x64xf32> to vector<4x64xf32>
    %250 = arith.addf %247, %249 : vector<4x64xf32>
    %251 = arith.truncf %171 : vector<16x32xf32> to vector<16x32xbf16>
    %cst_164 = arith.constant dense<0.000000e+00> : vector<4x32xf32>
    %252 = tpu.matmul %9, %251, %cst_164 {dimension_numbers = #tpu.dot_dimension_numbers<[1], [0], [0], [1], [0, 0, 1, 1], [], []>} : vector<4x16xbf16>, vector<16x32xbf16>, vector<4x32xf32> -> vector<4x32xf32>
    %c464 = arith.constant 464 : index
    %c0_165 = arith.constant 0 : index
    %253 = vector.load %arg4[%c464, %c0_165] : memref<592x64xbf16, #tpu.memory_space<vmem>>, vector<32x64xbf16>
    %254 = arith.truncf %252 : vector<4x32xf32> to vector<4x32xbf16>
    %cst_166 = arith.constant dense<0.000000e+00> : vector<4x64xf32>
    %255 = tpu.matmul %254, %253, %cst_166 {dimension_numbers = #tpu.dot_dimension_numbers<[1], [0], [0], [1], [0, 0, 1, 1], [], []>} : vector<4x32xbf16>, vector<32x64xbf16>, vector<4x64xf32> -> vector<4x64xf32>
    %c8_167 = arith.constant 8 : index
    %c0_168 = arith.constant 0 : index
    %256 = vector.load %arg5[%c8_167, %c0_168] : memref<16x64xf32, #tpu.memory_space<vmem>>, vector<1x64xf32>
    %257 = vector.broadcast %256 : vector<1x64xf32> to vector<4x64xf32>
    %258 = arith.addf %255, %257 : vector<4x64xf32>
    %259 = arith.addf %250, %258 : vector<4x64xf32>
    %cst_169 = arith.constant 0.000000e+00 : f32
    %260 = vector.broadcast %cst_169 : f32 to vector<4x64xf32>
    %261 = arith.maximumf %259, %260 : vector<4x64xf32>
    %cst_170 = arith.constant dense<0.000000e+00> : vector<64xf32>
    %262 = vector.multi_reduction <add>, %261, %cst_170 [0] : vector<4x64xf32> to vector<64xf32>
    %263 = vector.shape_cast %262 : vector<64xf32> to vector<1x64xf32>
    %cst_171 = arith.constant 4.000000e+00 : f32
    %264 = vector.broadcast %cst_171 : f32 to vector<1x64xf32>
    %265 = arith.divf %263, %264 : vector<1x64xf32>
    %266 = arith.mulf %265, %265 : vector<1x64xf32>
    %cst_172 = arith.constant dense<0.000000e+00> : vector<1xf32>
    %267 = vector.multi_reduction <add>, %266, %cst_172 [1] : vector<1x64xf32> to vector<1xf32>
    %268 = vector.shape_cast %267 : vector<1xf32> to vector<1x1xf32>
    %269 = math.sqrt %268 : vector<1x1xf32>
    %cst_173 = arith.constant 9.99999996E-13 : f32
    %270 = vector.broadcast %cst_173 : f32 to vector<1x1xf32>
    %271 = arith.maximumf %269, %270 : vector<1x1xf32>
    %272 = vector.broadcast %271 : vector<1x1xf32> to vector<1x64xf32>
    %273 = arith.divf %265, %272 : vector<1x64xf32>
    %c496 = arith.constant 496 : index
    %c0_174 = arith.constant 0 : index
    %274 = vector.load %arg4[%c496, %c0_174] : memref<592x64xbf16, #tpu.memory_space<vmem>>, vector<64x32xbf16>
    %275 = arith.truncf %273 : vector<1x64xf32> to vector<1x64xbf16>
    %cst_175 = arith.constant dense<0.000000e+00> : vector<1x32xf32>
    %276 = tpu.matmul %275, %274, %cst_175 {dimension_numbers = #tpu.dot_dimension_numbers<[1], [0], [0], [1], [0, 0, 1, 1], [], []>} : vector<1x64xbf16>, vector<64x32xbf16>, vector<1x32xf32> -> vector<1x32xf32>
    %c9_176 = arith.constant 9 : index
    %c0_177 = arith.constant 0 : index
    %277 = vector.load %arg5[%c9_176, %c0_177] : memref<16x64xf32, #tpu.memory_space<vmem>>, vector<1x32xf32>
    %278 = arith.addf %276, %277 : vector<1x32xf32>
    %cst_178 = arith.constant 0.000000e+00 : f32
    %279 = vector.broadcast %cst_178 : f32 to vector<1x32xf32>
    %280 = arith.maximumf %278, %279 : vector<1x32xf32>
    %c560 = arith.constant 560 : index
    %c0_179 = arith.constant 0 : index
    %281 = vector.load %arg4[%c560, %c0_179] : memref<592x64xbf16, #tpu.memory_space<vmem>>, vector<32x16xbf16>
    %282 = arith.truncf %280 : vector<1x32xf32> to vector<1x32xbf16>
    %cst_180 = arith.constant dense<0.000000e+00> : vector<1x16xf32>
    %283 = tpu.matmul %282, %281, %cst_180 {dimension_numbers = #tpu.dot_dimension_numbers<[1], [0], [0], [1], [0, 0, 1, 1], [], []>} : vector<1x32xbf16>, vector<32x16xbf16>, vector<1x16xf32> -> vector<1x16xf32>
    %c10_181 = arith.constant 10 : index
    %c0_182 = arith.constant 0 : index
    %284 = vector.load %arg5[%c10_181, %c0_182] : memref<16x64xf32, #tpu.memory_space<vmem>>, vector<1x16xf32>
    %285 = arith.addf %283, %284 : vector<1x16xf32>
    %c0_183 = arith.constant 0 : index
    %c0_184 = arith.constant 0 : index
    %c0_185 = arith.constant 0 : index
    %286 = vector.load %arg6[%c0_183, %c0_184, %c0_185] : memref<1x1x16xf32, #tpu.memory_space<vmem>>, vector<1x1x16xf32>
    %287 = vector.shape_cast %286 : vector<1x1x16xf32> to vector<1x16xf32>
    %288 = vector.shape_cast %285 : vector<1x16xf32> to vector<1x1x16xf32>
    tpu.vector_store %arg6[%c0_183, %c0_184, %c0_185], %288 {strides = array<i32>} : memref<1x1x16xf32, #tpu.memory_space<vmem>>, vector<1x1x16xf32>,
    return
  }
  func.func @transform_0(%arg0: i32) -> (i32, i32, i32) {
    %c0_i32 = arith.constant 0 : i32
    %c0_i32_0 = arith.constant 0 : i32
    %c0_i32_1 = arith.constant 0 : i32
    return %arg0, %c0_i32, %c0_i32_0 : i32, i32, i32
  }
  func.func @transform_1(%arg0: i32) -> (i32, i32) {
    %c0_i32 = arith.constant 0 : i32
    %c0_i32_0 = arith.constant 0 : i32
    %c0_i32_1 = arith.constant 0 : i32
    return %c0_i32, %c0_i32_0 : i32, i32
  }
  func.func @transform_2(%arg0: i32) -> (i32, i32) {
    %c0_i32 = arith.constant 0 : i32
    %c0_i32_0 = arith.constant 0 : i32
    %c0_i32_1 = arith.constant 0 : i32
    return %c0_i32, %c0_i32_0 : i32, i32
  }
  func.func @transform_3(%arg0: i32) -> (i32, i32) {
    %c0_i32 = arith.constant 0 : i32
    %c0_i32_0 = arith.constant 0 : i32
    %c0_i32_1 = arith.constant 0 : i32
    return %c0_i32, %c0_i32_0 : i32, i32
  }
  func.func @transform_4(%arg0: i32) -> (i32, i32) {
    %c0_i32 = arith.constant 0 : i32
    %c0_i32_0 = arith.constant 0 : i32
    %c0_i32_1 = arith.constant 0 : i32
    return %c0_i32, %c0_i32_0 : i32, i32
  }
  func.func @transform_5(%arg0: i32) -> (i32, i32, i32) {
    %c0_i32 = arith.constant 0 : i32
    %c0_i32_0 = arith.constant 0 : i32
    %c0_i32_1 = arith.constant 0 : i32
    return %arg0, %c0_i32, %c0_i32_0 : i32, i32, i32
  }
}

</mosaic_0001>

<bundles_post_ra>
// kernel: image_model_forward.1
= control target key start
LH: loop header
LB: loop body
LE: loop exit
PB: predicated region body
PF: predicated region fallthrough
CT: control target
= control target key end

     0   :  { %10 = vsyncpa [#allocation5], 0  ;;  %s7979_s0 = inlined_call_operand.vmem [shape: f32[2,256,16], index: 0, kind: input, shape index: {}]   ;;  %s7980_s1 = inlined_call_operand.vmem [shape: f32[272,9], index: 1, kind: input, shape index: {}]   ;;  %s7981_s2 = inlined_call_operand.vmem [shape: bf16[96,256], index: 2, kind: input, shape index: {}]   ;;  %s7982_s3 = inlined_call_operand.vmem [shape: bf16[592,64], index: 3, kind: input, shape index: {}]   ;;  %s7983_s4 = inlined_call_operand.vmem [shape: f32[16,64], index: 4, kind: input, shape index: {}]   ;;  %s7984_s5 = inlined_call_operand.hbm [shape: f32[2,1,16], index: 5, kind: output, shape index: {}]  }
   0x1   :  { %12 = vsyncpa [#allocation5 + $0x1], 0  ;;  %s5289_s18 = smov 0   ;;  %s5291_s19 = smov 0  }
   0x2   :  { %s5293_s20 = smov 0   ;;  %s5295_s21 = smov 0  }
   0x3 LB: > { %s5310_s22 = sadd.s32 4294967295, %s5234_s21   ;;  %s4548_s23 = sadd.s32 4294967294, %s5234_s21   ;;  %s5234_s21 = sphi %s5295_s21, %s8378_s21   ;;  %s5230_s20 = sphi %s5293_s20, %s8377_s20   ;;  %s5226_s19 = sphi %s5291_s19, %s8376_s19   ;;  %s5222_s18 = sphi %s5289_s18, %s8375_s18  }
   0x4   : > { %s5314_s24 = sadd.s32 1, %s5234_s21   ;;  %s135_s25 = sadd.s32 1, %s5230_s20 }
   0x5   : > { %s132_s26 = ssub.s32 %s5234_s21, %s5314_s24  ;;  %p145_p0 = scmp.ne.s32.totalorder %s5230_s20, %s5226_s19 }
   0x6   : > { %p133_p1 = scmp.eq.s32.totalorder %s132_s26, 0  ;;  %p146_p2 = scmp.eq.s32.totalorder %s5310_s22, 1 }
   0x7   : > { %p151_p3 = scmp.ne.s32.totalorder %s5226_s19, %s5222_s18  ;;  %p152_p4 = scmp.eq.s32.totalorder %s4548_s23, 1 }
   0x8   : > { %s5325_s27 = scalar_select %p133_p1, %s5230_s20, %s135_s25  }
   0x9   : > { %p5327_p5 = por %p146_p2, %p145_p0  ;;  %p5331_p6 = por %p152_p4, %p151_p3 }
   0xa   : > { %p4551_p7 = scmp.ge.s32.totalorder %s5234_s21, 1  ;;  %p190_p8 = scmp.lt.s32.totalorder %s5234_s21, 3 }
   0xc   : > { %p191_p9 = pnand %p4551_p7, %p190_p8 }
   0xe   : > { %194 = sbr.rel (%p191_p9) target bundleno = 4458 (0x116a), region = 40 }
  0x15   : > { %v5340_v0 = vld [vmem:[%s7980_s1 + $0x10] sm:$0xff]  ;;  %v5345_v1 = vld [vmem:[%s7980_s1] sm:$0xff]  ;;  %v7999_v2 = vmov 5   ;;  %v7997_v3 = vmov 2   ;;  %vm223_vm0 = vcmask 130048   ;;  %v5354_v4 = vld [vmem:[%s7980_s1 + $0x28] sm:$0xff] }
  0x16   : > { %4901 = vset.pattern.permute.xlu0 %v7999_v2  ;;  %4891 = vset.pattern.permute.xlu1 %v7997_v3  ;;  %v5359_v5 = vld [vmem:[%s7980_s1 + $0x8] sm:$0xff]  ;;  %v7985_v6 = vmov 0.0   ;;  %p217_p10 = scmp.lt.s32.totalorder %s5310_s22, 1  ;;  %v5377_v7 = vld [vmem:[%s7980_s1 + $0x40] sm:$0xff]  ;;  %v7989_v11 = vmov 3   ;;  %v5395_v12 = vld [vmem:[%s7980_s1 + $0x58] sm:$0xff] }
  0x17   : > { %1792 = vperm.xlu0 %4901, %v5340_v0   ;;  %917 = vperm.xlu1 %4891, %v5345_v1   ;;  %224 = vst.msk [vmem:[#allocation2] sm:$0xff] %vm223_vm0, %v7985_v6  ;;  %225 = vst.msk [vmem:[#allocation2 + $0x8] sm:$0xff] %vm223_vm0, %v7985_v6  ;;  %v8003_v20 = vmov 4   ;;  %v7991_v21 = vmov 1   ;;  %v5426_v22 = vld [vmem:[%s7980_s1 + $0x20] sm:$0xff]  ;;  %v5433_v23 = vld [vmem:[%s7980_s1 + $0x38] sm:$0xff] }
  0x18   : > { %226 = vst.msk [vmem:[#allocation2 + $0x10] sm:$0xff] %vm223_vm0, %v7985_v6  ;;  %227 = vst.msk [vmem:[#allocation2 + $0x110] sm:$0xff] %vm223_vm0, %v7985_v6  ;;  %s218_s15 = scalar_select %p217_p10, %s5310_s22, 1  ;;  %v7995_v24 = vmov 6   ;;  %v5440_v25 = vld [vmem:[%s7980_s1 + $0x50] sm:$0xff]  ;;  %v7993_v26 = vmov 7  }
  0x19   : > { %228 = vst.msk [vmem:[#allocation2 + $0x118] sm:$0xff] %vm223_vm0, %v7985_v6  ;;  %229 = vst.msk [vmem:[#allocation2 + $0x120] sm:$0xff] %vm223_vm0, %v7985_v6  ;;  %v5449_v27 = vld [vmem:[%s7980_s1 + $0x68] sm:$0xff]  ;;  %v5457_v28 = vld [vmem:[%s7980_s1 + $0x18] sm:$0xff]  ;;  %s5244_s11 = smov 64   ;;  %s5245_s12 = smov 80  }
  0x1a   : > { %s4640_s16 = sshll.u32 %s218_s15, 8  ;;  %v5489_v33 = vld [vmem:[%s7980_s1 + $0x30] sm:$0xff]  ;;  %v5497_v34 = vld [vmem:[%s7980_s1 + $0x48] sm:$0xff]  ;;  %v5505_v35 = vld [vmem:[%s7980_s1 + $0x60] sm:$0xff]  ;;  %s5249_s17 = smov 32   ;;  %vm867_vm1 = vcmask 261248  }
  0x1b   : > { %1804 = vperm.xlu0 %4901, %v5354_v4   ;;  %921 = vperm.xlu1 %4891, %v5359_v5   ;;  %s5385_s25 = scalar_lea.vmem %s7979_s0, %s4640_s16  ;;  %v5541_v38 = vld [vmem:[%s7980_s1 + $0x78] sm:$0xff]  ;;  %v5548_v39 = vld [vmem:[%s7980_s1 + $0x88] sm:$0xff]  ;;  %s5248_s16 = smov 16   ;;  %vm1156_vm2 = vcmask 392448   ;;  %vm1445_vm3 = vcmask 523648   ;;  %vm1734_vm4 = vcmask 654848  }
  0x1c   : > { %v232_v8 = vld [vmem:[%s5385_s25 + $0x10] sm:$0xff]  ;;  %v233_v9 = vld [vmem:[%s5385_s25 + $0x18] sm:$0xff]  ;;  %v230_v10 = vld [vmem:[%s5385_s25] sm:$0xff]  ;;  %s5250_s23 = smov 48   ;;  %s5251_s9 = smov 96   ;;  %vm8029_vm5 = vcmask 786048  }
  0x1d   : > { %309 = vst.msk [vmem:[#allocation2 + $0x21] sm:$0xff] %vm223_vm0, %v232_v8  ;;  %310 = vst.msk [vmem:[#allocation2 + $0x29] sm:$0xff] %vm223_vm0, %v233_v9  ;;  %v235_v13 = vld [vmem:[%s5385_s25 + $0x28] sm:$0xff]  ;;  %v236_v14 = vld [vmem:[%s5385_s25 + $0x30] sm:$0xff]  ;;  %s8025_s10 = smov 112   ;;  %vm8028_vm6 = vcmask 917248  }
  0x1e   : > { %307 = vst.msk [vmem:[#allocation2 + $0x11] sm:$0xff] %vm223_vm0, %v230_v10  ;;  %312 = vst.msk [vmem:[#allocation2 + $0x39] sm:$0xff] %vm223_vm0, %v235_v13  ;;  %v231_v15 = vld [vmem:[%s5385_s25 + $0x8] sm:$0xff]  ;;  %v238_v16 = vld [vmem:[%s5385_s25 + $0x40] sm:$0xff]  ;;  %vm8027_vm7 = vcmask 1048448   ;;  %vm5253_vm8 = vmmov 0  }
  0x1f   : > { %1816 = vperm.xlu0 %4901, %v5377_v7   ;;  %4892 = vset.pattern.permute.xlu1 %v7989_v11  ;;  %313 = vst.msk [vmem:[#allocation2 + $0x41] sm:$0xff] %vm223_vm0, %v236_v14  ;;  %v239_v17 = vld [vmem:[%s5385_s25 + $0x48] sm:$0xff]  ;;  %308 = vst.msk [vmem:[#allocation2 + $0x19] sm:$0xff] %vm223_vm0, %v231_v15  ;;  %v241_v18 = vld [vmem:[%s5385_s25 + $0x58] sm:$0xff]  ;;  %vm8026_vm9 = vcmask 523264   ;;  %vm3454_vm10 = vcmask 64512  }
  0x20   : > { %1210 = vperm.xlu1 %4892, %v5359_v5   ;;  %315 = vst.msk [vmem:[#allocation2 + $0x51] sm:$0xff] %vm223_vm0, %v238_v16  ;;  %316 = vst.msk [vmem:[#allocation2 + $0x59] sm:$0xff] %vm223_vm0, %v239_v17  ;;  %v242_v19 = vld [vmem:[%s5385_s25 + $0x60] sm:$0xff]  ;;  %v237_v30 = vld [vmem:[%s5385_s25 + $0x38] sm:$0xff]  ;;  %s5254_s8 = smov 8   ;;  %vm3671_vm11 = vcmask 1043456  }
  0x21   : > { %318 = vst.msk [vmem:[#allocation2 + $0x69] sm:$0xff] %vm223_vm0, %v241_v18  ;;  %319 = vst.msk [vmem:[#allocation2 + $0x71] sm:$0xff] %vm223_vm0, %v242_v19  ;;  %v234_v29 = vld [vmem:[%s5385_s25 + $0x20] sm:$0xff]  ;;  %v240_v31 = vld [vmem:[%s5385_s25 + $0x50] sm:$0xff]  ;;  %s5255_s26 = smov 24   ;;  %s5256_s30 = smov 40  }
  0x22   : > { %311 = vst.msk [vmem:[#allocation2 + $0x31] sm:$0xff] %vm223_vm0, %v234_v29  ;;  %314 = vst.msk [vmem:[#allocation2 + $0x49] sm:$0xff] %vm223_vm0, %v237_v30  ;;  %v243_v32 = vld [vmem:[%s5385_s25 + $0x68] sm:$0xff]  ;;  %v244_v36 = vld [vmem:[%s5385_s25 + $0x70] sm:$0xff]  ;;  %v7987_v29 = vmov 0   ;;  %s5257_s6 = smov 56  }
  0x23   : > { %1828 = vperm.xlu0 %4901, %v5395_v12   ;;  %317 = vst.msk [vmem:[#allocation2 + $0x61] sm:$0xff] %vm223_vm0, %v240_v31  ;;  %320 = vst.msk [vmem:[#allocation2 + $0x79] sm:$0xff] %vm223_vm0, %v243_v32  ;;  %v245_v37 = vld [vmem:[%s5385_s25 + $0x78] sm:$0xff]  ;;  %v246_v40 = vld [vmem:[%s5385_s25 + $0x80] sm:$0xff]  ;;  %2994 = vmatprep.subr.bf16.mxu0 %v7987_v29  ;;  %vm3490_vm12 = vcmask 130112   ;;  %vm3509_vm13 = vcmask 195712  }
  0x24   : > { %4893 = vset.pattern.permute.xlu1 %v8003_v20  ;;  %321 = vst.msk [vmem:[#allocation2 + $0x81] sm:$0xff] %vm223_vm0, %v244_v36  ;;  %322 = vst.msk [vmem:[#allocation2 + $0x89] sm:$0xff] %vm223_vm0, %v245_v37  ;;  %v5635_v18 = vld [vmem:[%s7980_s1 + $0x98] sm:$0xff]  ;;  %v248_v19 = vld [vmem:[%s5385_s25 + $0x90] sm:$0xff]  ;;  %vm3528_vm14 = vcmask 261312   ;;  %vm3547_vm15 = vcmask 326912  }
  0x25   : > { %1495 = vperm.xlu1 %4893, %v5345_v1   ;;  %323 = vst.msk [vmem:[#allocation2 + $0x91] sm:$0xff] %vm223_vm0, %v246_v40  ;;  %v5608_v60 = vld [vmem:[#allocation2 + $0x11] sm:$0xff]  ;;  %325 = vst.msk [vmem:[#allocation2 + $0xa1] sm:$0xff] %vm223_vm0, %v248_v19  ;;  %v5646_v31 = vld [vmem:[#allocation2 + $0x29] sm:$0xff]  ;;  %s5258_s15 = smov [#allocation4]  }
  0x26   : > { %v5610_v61 = vld [vmem:[#allocation2 + $0x19] sm:$0xff]  ;;  %v5648_v32 = vld [vmem:[#allocation2 + $0x21] sm:$0xff] }
  0x27   : > { %4931 = vset.pattern.permute.xlu0 %v7991_v21  ;;  %v5612_v62 = vld [vmem:[#allocation2 + $0x1a] sm:$0xff]  ;;  %v5619_v9 = vld [vmem:[#allocation2 + $0x12] sm:$0xff]  ;;  %v5650_v37 = vld [vmem:[#allocation2 + $0x22] sm:$0xff] }
  0x28   : > { %628 = vperm.xlu0 %4931, %v5345_v1   ;;  %8035 = vst [vmem:[#allocation10_spill] sm:$0xff] %v5650_v37 }
  0x29   : > { %4894 = vset.pattern.permute.xlu1 %v7999_v2 }
  0x2a   : > { %1784 = vperm.xlu1 %4894, %v5345_v1  }
  0x2c   : > { %632 = vperm.xlu0 %4931, %v5359_v5  }
  0x2e   : > { %1788 = vperm.xlu1 %4894, %v5359_v5  }
  0x30   : > { %644 = vperm.xlu0 %4931, %v5426_v22  }
  0x32   : > { %4895 = vset.pattern.permute.xlu1 %v7995_v24 }
  0x33   : > { %2077 = vperm.xlu1 %4895, %v5359_v5  }
  0x34   : > { %656 = vperm.xlu0 %4931, %v5433_v23  }
  0x37   : > { %4896 = vset.pattern.permute.xlu1 %v7993_v26 }
  0x38   : > { %668 = vperm.xlu0 %4931, %v5440_v25   ;;  %2362 = vperm.xlu1 %4896, %v5345_v1  }
  0x3c   : > { %680 = vperm.xlu0 %4931, %v5449_v27   ;;  %4897 = vset.pattern.permute.xlu1 %v7991_v21 }
  0x3d   : > { %636 = vperm.xlu1 %4897, %v5340_v0  }
  0x40   : > { %4935 = vset.pattern.permute.xlu0 %v8003_v20 }
  0x41   : > { %1499 = vperm.xlu0 %4935, %v5359_v5   ;;  %640 = vperm.xlu1 %4897, %v5457_v28  }
  0x45   : > { %1511 = vperm.xlu0 %4935, %v5426_v22   ;;  %4898 = vset.pattern.permute.xlu1 %v7997_v3 }
  0x46   : > { %929 = vperm.xlu1 %4898, %v5457_v28  }
  0x49   : > { %1523 = vperm.xlu0 %4935, %v5433_v23  }
  0x4a   : > { %4899 = vset.pattern.permute.xlu1 %v7989_v11 }
  0x4b   : > { %1214 = vperm.xlu1 %4899, %v5340_v0  }
  0x4d   : > { %1535 = vperm.xlu0 %4935, %v5440_v25  }
  0x4f   : > { %4900 = vset.pattern.permute.xlu1 %v8003_v20 }
  0x50   : > { %1503 = vperm.xlu1 %4900, %v5340_v0  }
  0x51   : > { %1547 = vperm.xlu0 %4935, %v5449_v27  }
  0x54   : > { %1507 = vperm.xlu1 %4900, %v5457_v28  }
  0x55   : > { %4939 = vset.pattern.permute.xlu0 %v7995_v24 }
  0x56   : > { %2073 = vperm.xlu0 %4939, %v5345_v1  }
  0x58   : > { %4902 = vset.pattern.permute.xlu1 %v7999_v2 }
  0x59   : > { %1796 = vperm.xlu1 %4902, %v5457_v28  }
  0x5a   : > { %2085 = vperm.xlu0 %4939, %v5457_v28  }
  0x5d   : > { %4903 = vset.pattern.permute.xlu1 %v7995_v24 }
  0x5e   : > { %2097 = vperm.xlu0 %4939, %v5489_v33   ;;  %2081 = vperm.xlu1 %4903, %v5340_v0  }
  0x62   : > { %2109 = vperm.xlu0 %4939, %v5497_v34   ;;  %4904 = vset.pattern.permute.xlu1 %v7993_v26 }
  0x63   : > { %2370 = vperm.xlu1 %4904, %v5340_v0  }
  0x66   : > { %2121 = vperm.xlu0 %4939, %v5505_v35  }
  0x67   : > { %2374 = vperm.xlu1 %4904, %v5457_v28  }
  0x6a   : > { %4941 = vset.pattern.permute.xlu0 %v7993_v26 }
  0x6b   : > { %2366 = vperm.xlu0 %4941, %v5359_v5   ;;  %4905 = vset.pattern.permute.xlu1 %v7991_v21 }
  0x6c   : > { %648 = vperm.xlu1 %4905, %v5354_v4  }
  0x6f   : > { %2378 = vperm.xlu0 %4941, %v5426_v22  }
  0x70   : > { %4906 = vset.pattern.permute.xlu1 %v7997_v3 }
  0x71   : > { %933 = vperm.xlu1 %4906, %v5426_v22  }
  0x73   : > { %2390 = vperm.xlu0 %4941, %v5433_v23  }
  0x75   : > { %4907 = vset.pattern.permute.xlu1 %v7989_v11 }
  0x76   : > { %1222 = vperm.xlu1 %4907, %v5426_v22  }
  0x77   : > { %2402 = vperm.xlu0 %4941, %v5440_v25  }
  0x7a   : > { %1226 = vperm.xlu1 %4907, %v5354_v4  }
  0x7b   : > { %2414 = vperm.xlu0 %4941, %v5449_v27  }
  0x7e   : > { %4908 = vset.pattern.permute.xlu1 %v8003_v20 }
  0x7f   : > { %4944 = vset.pattern.permute.xlu0 %v7997_v3  ;;  %1515 = vperm.xlu1 %4908, %v5354_v4  }
  0x80   : > { %925 = vperm.xlu0 %4944, %v5340_v0  }
  0x83   : > { %4909 = vset.pattern.permute.xlu1 %v7999_v2 }
  0x84   : > { %937 = vperm.xlu0 %4944, %v5354_v4   ;;  %1800 = vperm.xlu1 %4909, %v5426_v22  }
  0x88   : > { %949 = vperm.xlu0 %4944, %v5377_v7   ;;  %4910 = vset.pattern.permute.xlu1 %v7995_v24 }
  0x89   : > { %2089 = vperm.xlu1 %4910, %v5426_v22  }
  0x8c   : > { %961 = vperm.xlu0 %4944, %v5395_v12  }
  0x8d   : > { %2093 = vperm.xlu1 %4910, %v5354_v4  }
  0x90   : > { %977 = vperm.xlu0 %4944, %v5541_v38  }
  0x91   : > { %4911 = vset.pattern.permute.xlu1 %v7993_v26 }
  0x92   : > { %2382 = vperm.xlu1 %4911, %v5354_v4  }
  0x94   : > { %985 = vperm.xlu0 %4944, %v5548_v39  }
  0x96   : > { %4912 = vset.pattern.permute.xlu1 %v7991_v21  ;;  %v5555_v41 = vpop.permute.xlu1 %917  ;;  %v5557_v42 = vpop.permute.xlu0 %1792 }
  0x97   : > { %652 = vperm.xlu1 %4912, %v5489_v33  }
  0x98   : > { %4957 = vset.pattern.permute.xlu0 %v7989_v11 }
  0x99   : > { %1206 = vperm.xlu0 %4957, %v5345_v1  }
  0x9a   : > { %v5562_v43 = vpop.permute.xlu1 %921  ;;  %v5564_v44 = vpop.permute.xlu0 %1804 }
  0x9b   : > { %4913 = vset.pattern.permute.xlu1 %v7997_v3 }
  0x9c   : > { %941 = vperm.xlu1 %4913, %v5489_v33  }
  0x9d   : > { %1218 = vperm.xlu0 %4957, %v5457_v28  }
  0x9e   : > { %v5569_v45 = vpop.permute.xlu0 %1816 }
  0x9f   : > { %v5571_v46 = vpop.permute.xlu1 %1210 }
  0xa0   : > { %945 = vperm.xlu1 %4913, %v5433_v23  }
  0xa1   : > { %1230 = vperm.xlu0 %4957, %v5489_v33  }
  0xa2   : > { %v5575_v47 = vpop.permute.xlu0 %1828 }
  0xa4   : > { %4914 = vset.pattern.permute.xlu1 %v7989_v11  ;;  %v1496_v48 = vpop.permute.xlu1 %1495 }
  0xa5   : > { %1234 = vperm.xlu1 %4914, %v5433_v23   ;;  %1242 = vperm.xlu0 %4957, %v5497_v34   ;;  %v1622_v4 = vmul.f32 %v1496_v48, %v5608_v60 }
  0xa7   : > { %v5580_v49 = vpop.permute.xlu0 %628 }
  0xa9   : > { %4915 = vset.pattern.permute.xlu1 %v8003_v20  ;;  %v1785_v50 = vpop.permute.xlu1 %1784  ;;  %1254 = vperm.xlu0 %4957, %v5505_v35  }
  0xaa   : > { %1519 = vperm.xlu1 %4915, %v5489_v33   ;;  %v1911_v14 = vmul.f32 %v1785_v50, %v5619_v9 }
  0xab   : > { %v5585_v51 = vpop.permute.xlu0 %632 }
  0xad   : > { %v1789_v52 = vpop.permute.xlu1 %1788 }
  0xae   : > { %4916 = vset.pattern.permute.xlu1 %v7999_v2  ;;  %v1912_v10 = vmul.f32 %v1789_v52, %v5612_v62  ;;  %v5656_v52 = vld [vmem:[#allocation2 + $0x2a] sm:$0xff] }
  0xaf   : > { %1808 = vperm.xlu1 %4916, %v5489_v33   ;;  %v5589_v53 = vpop.permute.xlu0 %644  ;;  %8036 = vst [vmem:[#allocation11_spill] sm:$0xff] %v5656_v52 }
  0xb0   : > { %v1943_v16 = vpack.c.bf16 %v1912_v10, %v1911_v14 }
  0xb2   : > { %v5591_v54 = vpop.permute.xlu1 %2077 }
  0xb3   : > { %1812 = vperm.xlu1 %4916, %v5433_v23   ;;  %v5594_v55 = vpop.permute.xlu0 %656 }
  0xb4   : > { %8032 = vst [vmem:[#allocation7_spill] sm:$0xff] %v5594_v55  ;;  %v5823_v55 = vld [vmem:[#allocation2 + $0x59] sm:$0xff] }
  0xb5   : > { %8067 = vst [vmem:[#allocation35_spill] sm:$0xff] %v5823_v55 }
  0xb7   : > { %4917 = vset.pattern.permute.xlu1 %v7995_v24  ;;  %v5597_v56 = vpop.permute.xlu1 %2362  ;;  %v5599_v57 = vpop.permute.xlu0 %668 }
  0xb8   : > { %8033 = vst [vmem:[#allocation8_spill] sm:$0xff] %v5599_v57  ;;  %2101 = vperm.xlu1 %4917, %v5433_v23   ;;  %v249_v23 = vld [vmem:[%s5385_s25 + $0x98] sm:$0xff]  ;;  %v5766_v57 = vld [vmem:[#allocation2 + $0x42] sm:$0xff] }
  0xb9   : > { %326 = vst.msk [vmem:[#allocation2 + $0xa9] sm:$0xff] %vm223_vm0, %v249_v23  ;;  %8052 = vst [vmem:[#allocation26_spill] sm:$0xff] %v5766_v57 }
  0xbb   : > { %v5602_v58 = vpop.permute.xlu0 %680 }
  0xbc   : > { %8034 = vst [vmem:[#allocation9_spill] sm:$0xff] %v5602_v58  ;;  %4918 = vset.pattern.permute.xlu1 %v7993_v26  ;;  %v5605_v59 = vpop.permute.xlu1 %636 }
  0xbd   : > { %2386 = vperm.xlu1 %4918, %v5489_v33  }
  0xc0   : > { %v1500_v63 = vpop.permute.xlu0 %1499  ;;  %v5614_v0 = vpop.permute.xlu1 %640 }
  0xc1   : > { %v1623_v8 = vmul.f32 %v1500_v63, %v5610_v61  ;;  %4919 = vset.pattern.permute.xlu1 %v7991_v21  ;;  %v1913_v63 = vmul.f32 %v5557_v42, %v5650_v37  ;;  %v5671_v42 = vld [vmem:[%s7980_s1 + $0xa8] sm:$0xff] }
  0xc2   : > { %660 = vperm.xlu1 %4919, %v5377_v7  }
  0xc3   : > { %v1654_v13 = vpack.c.bf16 %v1623_v8, %v1622_v4 }
  0xc5   : > { %v5624_v15 = vpop.permute.xlu1 %929  ;;  %1686 = vrot.lane.b32.xlu0 %v1654_v13, %s5244_s11 }
  0xc6   : > { %664 = vperm.xlu1 %4919, %v5497_v34  }
  0xc9   : > { %1975 = vrot.lane.b32.xlu0 %v1943_v16, %s5245_s12 }
  0xca   : > { %4920 = vset.pattern.permute.xlu1 %v7997_v3  ;;  %v5630_v17 = vpop.permute.xlu1 %1214 }
  0xcb   : > { %953 = vperm.xlu1 %4920, %v5497_v34  }
  0xcd   : > { %1282 = vperm.xlu0 %4957, %v5635_v18  }
  0xcf   : > { %4921 = vset.pattern.permute.xlu1 %v7989_v11  ;;  %v1504_v30 = vpop.permute.xlu1 %1503 }
  0xd0   : > { %1238 = vperm.xlu1 %4921, %v5377_v7   ;;  %v1624_v40 = vmul.f32 %v1504_v30, %v5648_v32  ;;  %v250_v30 = vld [vmem:[%s5385_s25 + $0xa0] sm:$0xff] }
  0xd1   : > { %327 = vst.msk [vmem:[#allocation2 + $0xb1] sm:$0xff] %vm223_vm0, %v250_v30 }
  0xd3   : > { %v1508_v36 = vpop.permute.xlu1 %1507 }
  0xd4   : > { %v1625_v48 = vmul.f32 %v1508_v36, %v5646_v31  ;;  %4922 = vset.pattern.permute.xlu1 %v8003_v20  ;;  %v251_v36 = vld [vmem:[%s5385_s25 + $0xa8] sm:$0xff] }
  0xd5   : > { %1527 = vperm.xlu1 %4922, %v5377_v7   ;;  %328 = vst.msk [vmem:[#allocation2 + $0xb9] sm:$0xff] %vm223_vm0, %v251_v36  ;;  %v5710_v36 = vld [vmem:[#allocation2 + $0x32] sm:$0xff] }
  0xd6   : > { %v1655_v50 = vpack.c.bf16 %v1625_v48, %v1624_v40  ;;  %v5701_v48 = vld [vmem:[#allocation2 + $0x31] sm:$0xff]  ;;  %8041 = vst [vmem:[#allocation16_spill] sm:$0xff] %v5710_v36 }
  0xd8   : > { %v1797_v4 = vpop.permute.xlu1 %1796  ;;  %1688 = vrot.lane.b32.xlu0 %v1655_v50, %s5244_s11 }
  0xd9   : > { %v1914_v8 = vmul.f32 %v1797_v4, %v5656_v52  ;;  %1531 = vperm.xlu1 %4922, %v5497_v34  }
  0xdb   : > { %v1944_v10 = vpack.c.bf16 %v1914_v8, %v1913_v63  ;;  %v5704_v63 = vld [vmem:[#allocation2 + $0x39] sm:$0xff] }
  0xdc   : > { %v5706_v8 = vld [vmem:[#allocation2 + $0x3a] sm:$0xff] }
  0xdd   : > { %4923 = vset.pattern.permute.xlu1 %v7999_v2  ;;  %v5664_v13 = vpop.permute.xlu1 %2081  ;;  %1977 = vrot.lane.b32.xlu0 %v1944_v10, %s5245_s12  ;;  %8040 = vst [vmem:[#allocation15_spill] sm:$0xff] %v5706_v8  ;;  %v1916_v6 = vmul.f32 %v5564_v44, %v5706_v8  ;;  %v5726_v44 = vld [vmem:[%s7980_s1 + $0xb8] sm:$0xff] }
  0xde   : > { %1820 = vperm.xlu1 %4923, %v5497_v34  }
  0xe1   : > { %1290 = vperm.xlu0 %4957, %v5671_v42  }
  0xe2   : > { %4924 = vset.pattern.permute.xlu1 %v7995_v24  ;;  %v5675_v14 = vpop.permute.xlu1 %2370 }
  0xe3   : > { %2105 = vperm.xlu1 %4924, %v5377_v7  }
  0xe6   : > { %v5678_v16 = vpop.permute.xlu1 %2374 }
  0xe7   : > { %4925 = vset.pattern.permute.xlu1 %v7993_v26 }
  0xe8   : > { %2394 = vperm.xlu1 %4925, %v5377_v7  }
  0xeb   : > { %v5682_v19 = vpop.permute.xlu1 %648 }
  0xec   : > { %2398 = vperm.xlu1 %4925, %v5497_v34   ;;  %v1512_v34 = vpop.permute.xlu0 %1511 }
  0xed   : > { %v1626_v50 = vmul.f32 %v1512_v34, %v5701_v48 }
  0xf0   : > { %4926 = vset.pattern.permute.xlu1 %v7991_v21  ;;  %v5686_v23 = vpop.permute.xlu1 %933 }
  0xf1   : > { %8037 = vst [vmem:[#allocation12_spill] sm:$0xff] %v5686_v23  ;;  %672 = vperm.xlu1 %4926, %v5395_v12   ;;  %v259_v23 = vld [vmem:[%s5385_s25 + $0xe8] sm:$0xff] }
  0xf2   : > { %336 = vst.msk [vmem:[#allocation2 + $0xf9] sm:$0xff] %vm223_vm0, %v259_v23 }
  0xf5   : > { %4927 = vset.pattern.permute.xlu1 %v7997_v3  ;;  %v5694_v40 = vpop.permute.xlu1 %1222 }
  0xf6   : > { %8038 = vst [vmem:[#allocation13_spill] sm:$0xff] %v5694_v40  ;;  %957 = vperm.xlu1 %4927, %v5440_v25   ;;  %v256_v40 = vld [vmem:[%s5385_s25 + $0xd0] sm:$0xff] }
  0xf7   : > { %333 = vst.msk [vmem:[#allocation2 + $0xe1] sm:$0xff] %vm223_vm0, %v256_v40  ;;  %v247_v40 = vld [vmem:[%s5385_s25 + $0x88] sm:$0xff] }
  0xf8   : > { %324 = vst.msk [vmem:[#allocation2 + $0x99] sm:$0xff] %vm223_vm0, %v247_v40 }
  0xf9   : > { %v5697_v7 = vpop.permute.xlu1 %1226 }
  0xfa   : > { %8039 = vst [vmem:[#allocation14_spill] sm:$0xff] %v5697_v7  ;;  %4928 = vset.pattern.permute.xlu1 %v7989_v11  ;;  %v257_v7 = vld [vmem:[%s5385_s25 + $0xd8] sm:$0xff] }
  0xfb   : > { %1246 = vperm.xlu1 %4928, %v5440_v25   ;;  %334 = vst.msk [vmem:[#allocation2 + $0xe9] sm:$0xff] %vm223_vm0, %v257_v7 }
  0xfe   : > { %v1516_v4 = vpop.permute.xlu1 %1515 }
  0xff   : > { %v1627_v10 = vmul.f32 %v1516_v4, %v5704_v63  ;;  %1250 = vperm.xlu1 %4928, %v5395_v12  }
 0x101   : > { %v1656_v30 = vpack.c.bf16 %v1627_v10, %v1626_v50  ;;  %v252_v10 = vld [vmem:[%s5385_s25 + $0xb0] sm:$0xff] }
 0x102   : > { %329 = vst.msk [vmem:[#allocation2 + $0xc1] sm:$0xff] %vm223_vm0, %v252_v10  ;;  %v8051_v10 = vmov 3  }
 0x103   : > { %4929 = vset.pattern.permute.xlu1 %v8003_v20  ;;  %v1801_v29 = vpop.permute.xlu1 %1800  ;;  %1690 = vrot.lane.b32.xlu0 %v1656_v30, %s5244_s11  ;;  %v253_v30 = vld [vmem:[%s5385_s25 + $0xb8] sm:$0xff] }
 0x104   : > { %v1915_v34 = vmul.f32 %v1801_v29, %v5710_v36  ;;  %1539 = vperm.xlu1 %4929, %v5395_v12   ;;  %330 = vst.msk [vmem:[#allocation2 + $0xc9] sm:$0xff] %vm223_vm0, %v253_v30  ;;  %v254_v36 = vld [vmem:[%s5385_s25 + $0xc0] sm:$0xff] }
 0x105   : > { %331 = vst.msk [vmem:[#allocation2 + $0xd1] sm:$0xff] %vm223_vm0, %v254_v36 }
 0x106   : > { %v1945_v11 = vpack.c.bf16 %v1916_v6, %v1915_v34 }
 0x108   : > { %4930 = vset.pattern.permute.xlu1 %v7999_v2  ;;  %v5719_v4 = vpop.permute.xlu1 %2089  ;;  %1979 = vrot.lane.b32.xlu0 %v1945_v11, %s5245_s12 }
 0x109   : > { %8042 = vst [vmem:[#allocation17_spill] sm:$0xff] %v5719_v4  ;;  %1824 = vperm.xlu1 %4930, %v5440_v25  }
 0x10c   : > { %v5728_v50 = vpop.permute.xlu1 %2093  ;;  %1298 = vperm.xlu0 %4957, %v5726_v44  }
 0x10d   : > { %8043 = vst [vmem:[#allocation18_spill] sm:$0xff] %v5728_v50  ;;  %4932 = vset.pattern.permute.xlu1 %v7995_v24  ;;  %v5758_v24 = vld [vmem:[#allocation2 + $0x41] sm:$0xff] }
 0x10e   : > { %2113 = vperm.xlu1 %4932, %v5440_v25   ;;  %8050 = vst [vmem:[#allocation25_spill] sm:$0xff] %v5758_v24 }
 0x111   : > { %v5733_v6 = vpop.permute.xlu1 %2382 }
 0x112   : > { %8044 = vst [vmem:[#allocation19_spill] sm:$0xff] %v5733_v6  ;;  %2117 = vperm.xlu1 %4932, %v5395_v12  }
 0x116   : > { %4933 = vset.pattern.permute.xlu1 %v7993_v26  ;;  %v5737_v11 = vpop.permute.xlu1 %652 }
 0x117   : > { %8045 = vst [vmem:[#allocation20_spill] sm:$0xff] %v5737_v11  ;;  %2406 = vperm.xlu1 %4933, %v5395_v12   ;;  %v1524_v12 = vpop.permute.xlu0 %1523 }
 0x11b   : > { %4934 = vset.pattern.permute.xlu1 %v7991_v21  ;;  %v5741_v29 = vpop.permute.xlu1 %941  ;;  %v5755_v21 = vld [vmem:[#allocation2 + $0x49] sm:$0xff] }
 0x11c   : > { %8046 = vst [vmem:[#allocation21_spill] sm:$0xff] %v5741_v29  ;;  %676 = vperm.xlu1 %4934, %v5505_v35   ;;  %8049 = vst [vmem:[#allocation24_spill] sm:$0xff] %v5755_v21  ;;  %v1629_v26 = vmul.f32 %v1524_v12, %v5755_v21  ;;  %v1758_v12 = vld [vmem:[#allocation2 + $0x4a] sm:$0xff]  ;;  %v1759_v21 = vld [vmem:[#allocation2 + $0x52] sm:$0xff] }
 0x11d   : > { %v255_v29 = vld [vmem:[%s5385_s25 + $0xc8] sm:$0xff] }
 0x11e   : > { %332 = vst.msk [vmem:[#allocation2 + $0xd9] sm:$0xff] %vm223_vm0, %v255_v29  ;;  %v8057_v29 = vmov 7  }
 0x11f   : > { %v5746_v34 = vpop.permute.xlu1 %945 }
 0x120   : > { %8047 = vst [vmem:[#allocation22_spill] sm:$0xff] %v5746_v34  ;;  %4936 = vset.pattern.permute.xlu1 %v7997_v3 }
 0x121   : > { %965 = vperm.xlu1 %4936, %v5505_v35  }
 0x124   : > { %v5752_v25 = vpop.permute.xlu1 %1234 }
 0x125   : > { %8048 = vst [vmem:[#allocation23_spill] sm:$0xff] %v5752_v25  ;;  %969 = vperm.xlu1 %4936, %v5449_v27  }
 0x129   : > { %4937 = vset.pattern.permute.xlu1 %v8051_v10  ;;  %v1520_v30 = vpop.permute.xlu1 %1519 }
 0x12a   : > { %v1628_v3 = vmul.f32 %v5758_v24, %v1520_v30  ;;  %1258 = vperm.xlu1 %4937, %v5449_v27   ;;  %v8053_v30 = vmov 5   ;;  %v895_v24 = vld [vmem:[#allocation2 + $0x5a] sm:$0xff] }
 0x12c   : > { %v1657_v2 = vpack.c.bf16 %v1629_v26, %v1628_v3  ;;  %v5782_v26 = vld [vmem:[%s7980_s1 + $0xc8] sm:$0xff] }
 0x12e   : > { %4938 = vset.pattern.permute.xlu1 %v8003_v20  ;;  %v1809_v58 = vpop.permute.xlu1 %1808  ;;  %1692 = vrot.lane.b32.xlu0 %v1657_v2, %s5244_s11  ;;  %v8060_v20 = vmov 1  }
 0x12f   : > { %1543 = vperm.xlu1 %4938, %v5505_v35   ;;  %v1917_v8 = vmul.f32 %v1809_v58, %v5766_v57  ;;  %v8055_v58 = vmov 6  }
 0x132   : > { %v1813_v25 = vpop.permute.xlu1 %1812 }
 0x133   : > { %v1918_v34 = vmul.f32 %v1813_v25, %v1758_v12  ;;  %4940 = vset.pattern.permute.xlu1 %v8053_v30  ;;  %v5798_v25 = vld [vmem:[%s7980_s1 + $0x70] sm:$0xff] }
 0x134   : > { %1832 = vperm.xlu1 %4940, %v5505_v35  }
 0x135   : > { %v1946_v2 = vpack.c.bf16 %v1918_v34, %v1917_v8  ;;  %v5789_v8 = vpop.permute.xlu0 %1535 }
 0x137   : > { %v5775_v3 = vpop.permute.xlu1 %2101  ;;  %1981 = vrot.lane.b32.xlu0 %v1946_v2, %s5245_s12 }
 0x138   : > { %8054 = vst [vmem:[#allocation27_spill] sm:$0xff] %v5775_v3  ;;  %1836 = vperm.xlu1 %4940, %v5449_v27  }
 0x139   : > { %v5802_v2 = vpop.permute.xlu0 %1547 }
 0x13b   : > { %1306 = vperm.xlu0 %4957, %v5782_v26  }
 0x13c   : > { %4942 = vset.pattern.permute.xlu1 %v8055_v58  ;;  %v5786_v36 = vpop.permute.xlu1 %2386 }
 0x13d   : > { %8056 = vst [vmem:[#allocation28_spill] sm:$0xff] %v5786_v36  ;;  %2125 = vperm.xlu1 %4942, %v5449_v27   ;;  %v5809_v57 = vpop.permute.xlu0 %2073 }
 0x141   : > { %4943 = vset.pattern.permute.xlu1 %v8057_v29  ;;  %v5792_v34 = vpop.permute.xlu1 %660  ;;  %v5815_v36 = vpop.permute.xlu0 %2085 }
 0x142   : > { %8058 = vst [vmem:[#allocation29_spill] sm:$0xff] %v5792_v34  ;;  %2410 = vperm.xlu1 %4943, %v5505_v35   ;;  %v8062_v35 = vmov 0  }
 0x145   : > { %v5800_v12 = vpop.permute.xlu1 %664  ;;  %v5821_v11 = vpop.permute.xlu0 %2097 }
 0x146   : > { %8059 = vst [vmem:[#allocation30_spill] sm:$0xff] %v5800_v12  ;;  %4945 = vset.pattern.permute.xlu1 %v8060_v20  ;;  %v8064_v12 = vmov 2   ;;  %8066 = vst [vmem:[#allocation34_spill] sm:$0xff] %v5821_v11  ;;  %v1919_v11 = vmul.f32 %v5569_v45, %v1759_v21  ;;  %v5846_v21 = vld [vmem:[%s7980_s1 + $0xd8] sm:$0xff] }
 0x147   : > { %684 = vperm.xlu1 %4945, %v5798_v25  }
 0x149   : > { %v5833_v37 = vpop.permute.xlu0 %2109 }
 0x14a   : > { %v5806_v27 = vpop.permute.xlu1 %953  ;;  %8068 = vst [vmem:[#allocation36_spill] sm:$0xff] %v5833_v37 }
 0x14b   : > { %8061 = vst [vmem:[#allocation31_spill] sm:$0xff] %v5806_v27  ;;  %688 = vperm.xlu1 %4945, %v5541_v38   ;;  %v5819_v27 = vld [vmem:[#allocation2 + $0x51] sm:$0xff] }
 0x14c   : > { %8065 = vst [vmem:[#allocation33_spill] sm:$0xff] %v5819_v27 }
 0x14f   : > { %4946 = vset.pattern.permute.xlu1 %v8062_v35  ;;  %v5812_v34 = vpop.permute.xlu1 %1238 }
 0x150   : > { %8063 = vst [vmem:[#allocation32_spill] sm:$0xff] %v5812_v34  ;;  %378 = vperm.xlu1 %4946, %v5359_v5  }
 0x154   : > { %4947 = vset.pattern.permute.xlu1 %v8064_v12  ;;  %v1528_v3 = vpop.permute.xlu1 %1527 }
 0x155   : > { %973 = vperm.xlu1 %4947, %v5798_v25   ;;  %v1630_v34 = vmul.f32 %v1528_v3, %v5819_v27  ;;  %v8069_v27 = vmov 4  }
 0x158   : > { %v1532_v6 = vpop.permute.xlu1 %1531 }
 0x159   : > { %v1631_v5 = vmul.f32 %v5823_v55, %v1532_v6  ;;  %4948 = vset.pattern.permute.xlu1 %v8051_v10 }
 0x15a   : > { %1262 = vperm.xlu1 %4948, %v5798_v25  }
 0x15b   : > { %v1658_v4 = vpack.c.bf16 %v1631_v5, %v1630_v34 }
 0x15d   : > { %v1821_v50 = vpop.permute.xlu1 %1820  ;;  %1694 = vrot.lane.b32.xlu0 %v1658_v4, %s5244_s11 }
 0x15e   : > { %v1920_v3 = vmul.f32 %v1821_v50, %v895_v24  ;;  %1266 = vperm.xlu1 %4948, %v5541_v38   ;;  %v5848_v24 = vpop.permute.xlu0 %2121 }
 0x15f   : > { %8071 = vst [vmem:[#allocation38_spill] sm:$0xff] %v5848_v24 }
 0x160   : > { %v1947_v6 = vpack.c.bf16 %v1920_v3, %v1919_v11 }
 0x162   : > { %4949 = vset.pattern.permute.xlu1 %v8069_v27  ;;  %v5839_v34 = vpop.permute.xlu1 %2105  ;;  %1983 = vrot.lane.b32.xlu0 %v1947_v6, %s5245_s12  ;;  %v5857_v7 = vpop.permute.xlu0 %2366  ;;  %v8011_v6 = vmov 8  }
 0x163   : > { %8070 = vst [vmem:[#allocation37_spill] sm:$0xff] %v5839_v34  ;;  %1555 = vperm.xlu1 %4949, %v5541_v38   ;;  %v1762_v34 = vld [vmem:[#allocation2 + $0x6a] sm:$0xff] }
 0x166   : > { %1314 = vperm.xlu0 %4957, %v5846_v21   ;;  %v5863_v50 = vpop.permute.xlu0 %2378 }
 0x167   : > { %4950 = vset.pattern.permute.xlu1 %v8053_v30  ;;  %v5852_v45 = vpop.permute.xlu1 %2394  ;;  %8074 = vst [vmem:[#allocation41_spill] sm:$0xff] %v5863_v50  ;;  %v258_v50 = vld [vmem:[%s5385_s25 + $0xe0] sm:$0xff] }
 0x168   : > { %8072 = vst [vmem:[#allocation39_spill] sm:$0xff] %v5852_v45  ;;  %1840 = vperm.xlu1 %4950, %v5798_v25   ;;  %335 = vst.msk [vmem:[#allocation2 + $0xf1] sm:$0xff] %vm223_vm0, %v258_v50  ;;  %v596_v50 = vld [vmem:[#allocation2 + $0x9] sm:$0xff] }
 0x16a   : > { %v5871_v3 = vpop.permute.xlu0 %2390 }
 0x16b   : > { %v5859_v4 = vpop.permute.xlu1 %2398  ;;  %8077 = vst [vmem:[#allocation44_spill] sm:$0xff] %v5871_v3  ;;  %v1761_v3 = vld [vmem:[#allocation2 + $0x62] sm:$0xff] }
 0x16c   : > { %8073 = vst [vmem:[#allocation40_spill] sm:$0xff] %v5859_v4  ;;  %4951 = vset.pattern.permute.xlu1 %v8055_v58 }
 0x16d   : > { %2129 = vperm.xlu1 %4951, %v5798_v25  }
 0x16e   : > { %v5878_v24 = vpop.permute.xlu0 %2402 }
 0x16f   : > { %8079 = vst [vmem:[#allocation46_spill] sm:$0xff] %v5878_v24 }
 0x170   : > { %v5865_v11 = vpop.permute.xlu1 %672 }
 0x171   : > { %8075 = vst [vmem:[#allocation42_spill] sm:$0xff] %v5865_v11  ;;  %2133 = vperm.xlu1 %4951, %v5541_v38   ;;  %v5883_v11 = vld [vmem:[%s7980_s1 + $0x80] sm:$0xff] }
 0x175   : > { %4952 = vset.pattern.permute.xlu1 %v8057_v29  ;;  %v5869_v5 = vpop.permute.xlu1 %957 }
 0x176   : > { %8076 = vst [vmem:[#allocation43_spill] sm:$0xff] %v5869_v5  ;;  %2422 = vperm.xlu1 %4952, %v5541_v38   ;;  %v5889_v5 = vpop.permute.xlu0 %2414 }
 0x177   : > { %8081 = vst [vmem:[#allocation48_spill] sm:$0xff] %v5889_v5  ;;  %v1922_v5 = vmul.f32 %v5575_v47, %v1762_v34  ;;  %v5913_v47 = vld [vmem:[%s7980_s1 + $0xe8] sm:$0xff] }
 0x178   : > { %v595_v34 = vld [vmem:[#allocation2 + $0x1] sm:$0xff] }
 0x17a   : > { %4953 = vset.pattern.permute.xlu1 %v8011_v6  ;;  %v5875_v40 = vpop.permute.xlu1 %1246  ;;  %v1472_v6 = vld [vmem:[#allocation2 + $0x61] sm:$0xff] }
 0x17b   : > { %8078 = vst [vmem:[#allocation45_spill] sm:$0xff] %v5875_v40  ;;  %2651 = vperm.xlu1 %4953, %v5345_v1   ;;  %v608_v40 = vld [vmem:[#allocation2 + $0x69] sm:$0xff]  ;;  %v1632_v24 = vmul.f32 %v5789_v8, %v1472_v6 }
 0x17e   : > { %v5885_v45 = vpop.permute.xlu1 %1250 }
 0x17f   : > { %8080 = vst [vmem:[#allocation47_spill] sm:$0xff] %v5885_v45  ;;  %4954 = vset.pattern.permute.xlu1 %v8060_v20  ;;  %v5893_v45 = vpop.permute.xlu0 %925 }
 0x180   : > { %692 = vperm.xlu1 %4954, %v5883_v11  }
 0x183   : > { %v1540_v1 = vpop.permute.xlu1 %1539 }
 0x184   : > { %v1633_v4 = vmul.f32 %v1540_v1, %v608_v40  ;;  %696 = vperm.xlu1 %4954, %v5548_v39  }
 0x186   : > { %v1659_v37 = vpack.c.bf16 %v1633_v4, %v1632_v24  ;;  %v5907_v4 = vpop.permute.xlu0 %937 }
 0x188   : > { %4955 = vset.pattern.permute.xlu1 %v8062_v35  ;;  %v1825_v55 = vpop.permute.xlu1 %1824  ;;  %1696 = vrot.lane.b32.xlu0 %v1659_v37, %s5244_s11 }
 0x189   : > { %v1921_v52 = vmul.f32 %v1825_v55, %v1761_v3  ;;  %388 = vperm.xlu1 %4955, %v5457_v28   ;;  %v756_v3 = vmul.f32 %v5585_v51, %v596_v50 }
 0x18a   : > { %v5920_v55 = vpop.permute.xlu0 %949 }
 0x18b   : > { %v1948_v8 = vpack.c.bf16 %v1922_v5, %v1921_v52  ;;  %v755_v5 = vmul.f32 %v5580_v49, %v595_v34 }
 0x18d   : > { %4956 = vset.pattern.permute.xlu1 %v8064_v12  ;;  %v5904_v24 = vpop.permute.xlu1 %2113  ;;  %1985 = vrot.lane.b32.xlu0 %v1948_v8, %s5245_s12  ;;  %v787_v1 = vpack.c.bf16 %v756_v3, %v755_v5  ;;  %v885_v8 = vld [vmem:[#allocation2 + $0xa] sm:$0xff]  ;;  %v1475_v5 = vld [vmem:[#allocation2 + $0x79] sm:$0xff] }
 0x18e   : > { %8082 = vst [vmem:[#allocation49_spill] sm:$0xff] %v5904_v24  ;;  %981 = vperm.xlu1 %4956, %v5883_v11   ;;  %v5925_v52 = vpop.permute.xlu0 %961  ;;  %v1045_v49 = vmul.f32 %v5562_v43, %v885_v8  ;;  %v1635_v43 = vmul.f32 %v5802_v2, %v1475_v5  ;;  %v260_v5 = vld [vmem:[%s5385_s25 + $0xf0] sm:$0xff] }
 0x18f   : > { %8085 = vst [vmem:[#allocation52_spill] sm:$0xff] %v5925_v52  ;;  %v899_v52 = vld [vmem:[#allocation2 + $0x7a] sm:$0xff]  ;;  %337 = vst.msk [vmem:[#allocation2 + $0x101] sm:$0xff] %vm223_vm0, %v260_v5 }
 0x191   : > { %v5915_v28 = vpop.permute.xlu1 %2117  ;;  %1322 = vperm.xlu0 %4957, %v5913_v47  }
 0x192   : > { %8083 = vst [vmem:[#allocation50_spill] sm:$0xff] %v5915_v28  ;;  %4958 = vset.pattern.permute.xlu1 %v8051_v10  ;;  %v5933_v6 = vpop.permute.xlu0 %977  ;;  %v8091_v28 = vmov 8  }
 0x193   : > { %1270 = vperm.xlu1 %4958, %v5883_v11   ;;  %8087 = vst [vmem:[#allocation54_spill] sm:$0xff] %v5933_v6  ;;  %v1173_v6 = vld [vmem:[#allocation2 + $0x10] sm:$0xff] }
 0x196   : > { %v5922_v37 = vpop.permute.xlu1 %2406  ;;  %v5942_v24 = vpop.permute.xlu0 %985 }
 0x197   : > { %8084 = vst [vmem:[#allocation51_spill] sm:$0xff] %v5922_v37  ;;  %1274 = vperm.xlu1 %4958, %v5548_v39  }
 0x19a   : > { %v1207_v3 = vpop.permute.xlu0 %1206 }
 0x19b   : > { %4959 = vset.pattern.permute.xlu1 %v8069_v27  ;;  %v5928_v23 = vpop.permute.xlu1 %676 }
 0x19c   : > { %8086 = vst [vmem:[#allocation53_spill] sm:$0xff] %v5928_v23  ;;  %1563 = vperm.xlu1 %4959, %v5548_v39   ;;  %v884_v23 = vld [vmem:[#allocation2 + $0x2] sm:$0xff] }
 0x19d   : > { %v1044_v51 = vmul.f32 %v5555_v41, %v884_v23  ;;  %v1333_v41 = vmul.f32 %v1207_v3, %v1173_v6  ;;  %v261_v6 = vld [vmem:[%s5385_s25 + $0xf8] sm:$0xff]  ;;  %s215_s25 = sand.u32 1, %s5226_s19  }
 0x19e   : > { %338 = vst.msk [vmem:[#allocation2 + $0x109] sm:$0xff] %vm223_vm0, %v261_v6 }
 0x19f   : > { %v1076_v50 = vpack.c.bf16 %v1045_v49, %v1044_v51 }
 0x1a0   : > { %4960 = vset.pattern.permute.xlu1 %v8053_v30  ;;  %v5936_v40 = vpop.permute.xlu1 %965 }
 0x1a1   : > { %8088 = vst [vmem:[#allocation55_spill] sm:$0xff] %v5936_v40  ;;  %1848 = vperm.xlu1 %4960, %v5883_v11   ;;  %v2339_v40 = vld [vmem:[#allocation2 + $0x71] sm:$0xff] }
 0x1a4   : > { %v5939_v37 = vpop.permute.xlu1 %969 }
 0x1a5   : > { %8089 = vst [vmem:[#allocation56_spill] sm:$0xff] %v5939_v37  ;;  %819 = vrot.lane.b32.xlu1 %v787_v1, %s5248_s16  ;;  %v1174_v1 = vld [vmem:[#allocation2 + $0x18] sm:$0xff] }
 0x1a6   : > { %4961 = vset.pattern.permute.xlu1 %v8055_v58  ;;  %v1334_v8 = vmul.f32 %v5571_v46, %v1174_v1  ;;  %v5965_v46 = vld [vmem:[%s7980_s1 + $0x10] sm:$0xff] }
 0x1a7   : > { %v5971_v1 = vld [vmem:[%s7980_s1 + $0x90] sm:$0xff] }
 0x1a8   : > { %v1365_v51 = vpack.c.bf16 %v1334_v8, %v1333_v41  ;;  %v1219_v8 = vpop.permute.xlu0 %1218 }
 0x1a9   : > { %v5947_v34 = vpop.permute.xlu1 %1258  ;;  %2137 = vperm.xlu1 %4961, %v5883_v11  }
 0x1aa   : > { %8090 = vst [vmem:[#allocation57_spill] sm:$0xff] %v5947_v34 }
 0x1ad   : > { %1108 = vrot.lane.b32.xlu1 %v1076_v50, %s5249_s17  ;;  %v1763_v50 = vld [vmem:[#allocation2 + $0x72] sm:$0xff] }
 0x1ae   : > { %v1544_v37 = vpop.permute.xlu1 %1543  ;;  %4962 = vset.pattern.permute.xlu1 %v8057_v29 }
 0x1af   : > { %v1634_v23 = vmul.f32 %v2339_v40, %v1544_v37 }
 0x1b1   : > { %v1660_v49 = vpack.c.bf16 %v1635_v43, %v1634_v23  ;;  %2426 = vperm.xlu1 %4962, %v5883_v11  }
 0x1b3   : > { %v1833_v34 = vpop.permute.xlu1 %1832  ;;  %1698 = vrot.lane.b32.xlu0 %v1660_v49, %s5244_s11  ;;  %v5999_v49 = vpop.permute.xlu0 %1230 }
 0x1b4   : > { %v1923_v37 = vmul.f32 %v1833_v34, %v1763_v50  ;;  %v1175_v50 = vld [vmem:[#allocation2 + $0x20] sm:$0xff] }
 0x1b5   : > { %1397 = vrot.lane.b32.xlu1 %v1365_v51, %s5250_s23 }
 0x1b6   : > { %4963 = vset.pattern.permute.xlu1 %v8091_v28 }
 0x1b7   : > { %v1837_v2 = vpop.permute.xlu1 %1836 }
 0x1b8   : > { %v1924_v40 = vmul.f32 %v1837_v2, %v899_v52  ;;  %v5980_v52 = vld [vmem:[%s7980_s1 + $0xf8] sm:$0xff]  ;;  %v6006_v2 = vpop.permute.xlu0 %1242 }
 0x1b9   : > { %2659 = vperm.xlu1 %4963, %v5965_v46  }
 0x1ba   : > { %v1949_v3 = vpack.c.bf16 %v1924_v40, %v1923_v37 }
 0x1bc   : > { %v5973_v43 = vpop.permute.xlu1 %2125  ;;  %1987 = vrot.lane.b32.xlu0 %v1949_v3, %s5245_s12  ;;  %v6014_v40 = vpop.permute.xlu0 %1254 }
 0x1bd   : > { %8092 = vst [vmem:[#allocation58_spill] sm:$0xff] %v5973_v43  ;;  %4964 = vset.pattern.permute.xlu1 %v8060_v20  ;;  %8097 = vst [vmem:[#allocation63_spill] sm:$0xff] %v6014_v40 }
 0x1be   : > { %700 = vperm.xlu1 %4964, %v5971_v1  }
 0x1c0   : > { %1330 = vperm.xlu0 %4957, %v5980_v52  }
 0x1c1   : > { %v5984_v34 = vpop.permute.xlu1 %2410 }
 0x1c2   : > { %8093 = vst [vmem:[#allocation59_spill] sm:$0xff] %v5984_v34  ;;  %704 = vperm.xlu1 %4964, %v5635_v18   ;;  %v8154_v34 = vld [vmem:[#allocation17_spill] sm:$0xff] }
 0x1c4   : > { %5022 = vset.pattern.permute.xlu0 %v8069_v27 }
 0x1c5   : > { %1551 = vperm.xlu0 %5022, %v5798_v25  }
 0x1c6   : > { %v5989_v41 = vpop.permute.xlu1 %684  ;;  %4965 = vset.pattern.permute.xlu1 %v8062_v35 }
 0x1c7   : > { %8094 = vst [vmem:[#allocation60_spill] sm:$0xff] %v5989_v41  ;;  %393 = vperm.xlu1 %4965, %v5426_v22   ;;  %v2041_v22 = vld [vmem:[#allocation2 + $0x28] sm:$0xff] }
 0x1c8   : > { %v2201_v6 = vmul.f32 %v5591_v54, %v2041_v22  ;;  %v2489_v54 = vmul.f32 %v5597_v56, %v5648_v32  ;;  %v758_v56 = vmul.f32 %v5610_v61, %v5614_v0  ;;  %v1047_v61 = vmul.f32 %v5612_v62, %v5624_v15  ;;  %v8151_v41 = vld [vmem:[#allocation18_spill] sm:$0xff] }
 0x1c9   : > { %1559 = vperm.xlu0 %5022, %v5883_v11   ;;  %v2200_v11 = vmul.f32 %v5809_v57, %v1175_v50  ;;  %v2490_v57 = vmul.f32 %v5857_v7, %v5646_v31  ;;  %v757_v7 = vmul.f32 %v5608_v60, %v5605_v59  ;;  %v1046_v59 = vmul.f32 %v5619_v9, %v5893_v45 }
 0x1ca   : > { %v5994_v23 = vpop.permute.xlu1 %688  ;;  %v1335_v9 = vmul.f32 %v5630_v17, %v1175_v50  ;;  %v5117_v17 = vld [vmem:[%s7980_s1 + $0x20] sm:$0xff] }
 0x1cb   : > { %8095 = vst [vmem:[#allocation61_spill] sm:$0xff] %v5994_v23  ;;  %4966 = vset.pattern.permute.xlu1 %v8064_v12  ;;  %v2232_v37 = vpack.c.bf16 %v2201_v6, %v2200_v11  ;;  %v2521_v11 = vpack.c.bf16 %v2490_v57, %v2489_v54  ;;  %v6029_v6 = vpop.permute.xlu0 %1686  ;;  %v788_v57 = vpack.c.bf16 %v758_v56, %v757_v7  ;;  %v6092_v50 = vld [vmem:[%s7980_s1 + $0xa0] sm:$0xff] }
 0x1cc   : > { %989 = vperm.xlu1 %4966, %v5971_v1   ;;  %8100 = vst [vmem:[#allocation66_spill] sm:$0xff] %v6029_v6  ;;  %v1077_v0 = vpack.c.bf16 %v1047_v61, %v1046_v59  ;;  %v8197_v6 = vld [vmem:[#allocation44_spill] sm:$0xff] }
 0x1cd   : > { %1571 = vperm.xlu0 %5022, %v5635_v18  }
 0x1cf   : > { %v6001_v51 = vpop.permute.xlu1 %378 }
 0x1d0   : > { %993 = vperm.xlu1 %4966, %v5635_v18  }
 0x1d1   : > { %1579 = vperm.xlu0 %5022, %v5671_v42  }
 0x1d4   : > { %v6008_v5 = vpop.permute.xlu1 %973  ;;  %4967 = vset.pattern.permute.xlu1 %v8051_v10 }
 0x1d5   : > { %8096 = vst [vmem:[#allocation62_spill] sm:$0xff] %v6008_v5  ;;  %1587 = vperm.xlu0 %5022, %v5726_v44   ;;  %1278 = vperm.xlu1 %4967, %v5971_v1  }
 0x1d9   : > { %v6016_v3 = vpop.permute.xlu1 %1262  ;;  %1595 = vperm.xlu0 %5022, %v5782_v26   ;;  %2264 = vrot.lane.b32.xlu1 %v2232_v37, %s5251_s9 }
 0x1da   : > { %8098 = vst [vmem:[#allocation64_spill] sm:$0xff] %v6016_v3  ;;  %4968 = vset.pattern.permute.xlu1 %v8069_v27  ;;  %v6040_v3 = vpop.permute.xlu0 %1975 }
 0x1db   : > { %8102 = vst [vmem:[#allocation68_spill] sm:$0xff] %v6040_v3 }
 0x1dd   : > { %v6025_v5 = vpop.permute.xlu1 %1266  ;;  %1603 = vperm.xlu0 %5022, %v5846_v21   ;;  %1567 = vperm.xlu1 %4968, %v5971_v1  }
 0x1de   : > { %8099 = vst [vmem:[#allocation65_spill] sm:$0xff] %v6025_v5 }
 0x1e1   : > { %1611 = vperm.xlu0 %5022, %v5913_v47   ;;  %2553 = vrot.lane.b32.xlu1 %v2521_v11, %s8025_s10  ;;  %v6046_v11 = vpop.permute.xlu0 %1282 }
 0x1e2   : > { %v6033_v37 = vpop.permute.xlu1 %1555  ;;  %4969 = vset.pattern.permute.xlu1 %v8053_v30 }
 0x1e3   : > { %8101 = vst [vmem:[#allocation67_spill] sm:$0xff] %v6033_v37 }
 0x1e5   : > { %1619 = vperm.xlu0 %5022, %v5980_v52   ;;  %1856 = vperm.xlu1 %4969, %v5971_v1   ;;  %v6060_v56 = vpop.permute.xlu0 %1688 }
 0x1e6   : > { %8105 = vst [vmem:[#allocation71_spill] sm:$0xff] %v6060_v56 }
 0x1e7   : > { %v6044_v54 = vpop.permute.xlu1 %1840 }
 0x1e8   : > { %8103 = vst [vmem:[#allocation69_spill] sm:$0xff] %v6044_v54 }
 0x1e9   : > { %5024 = vset.pattern.permute.xlu0 %v8053_v30  ;;  %821 = vrot.lane.b32.xlu1 %v788_v57, %s5248_s16  ;;  %v6068_v45 = vpop.permute.xlu0 %1977 }
 0x1ea   : > { %1844 = vperm.xlu0 %5024, %v5541_v38   ;;  %4970 = vset.pattern.permute.xlu1 %v8055_v58  ;;  %v1336_v38 = vmul.f32 %v2041_v22, %v1219_v8  ;;  %8107 = vst [vmem:[#allocation73_spill] sm:$0xff] %v6068_v45 }
 0x1ec   : > { %v6054_v60 = vpop.permute.xlu1 %2129  ;;  %v1366_v15 = vpack.c.bf16 %v1336_v38, %v1335_v9 }
 0x1ed   : > { %8104 = vst [vmem:[#allocation70_spill] sm:$0xff] %v6054_v60  ;;  %2145 = vperm.xlu1 %4970, %v5971_v1   ;;  %v6074_v57 = vpop.permute.xlu0 %1290 }
 0x1ee   : > { %1852 = vperm.xlu0 %5024, %v5548_v39   ;;  %8108 = vst [vmem:[#allocation74_spill] sm:$0xff] %v6074_v57 }
 0x1f0   : > { %v6062_v7 = vpop.permute.xlu1 %2133 }
 0x1f1   : > { %8106 = vst [vmem:[#allocation72_spill] sm:$0xff] %v6062_v7  ;;  %1110 = vrot.lane.b32.xlu1 %v1077_v0, %s5249_s17  ;;  %v6085_v8 = vpop.permute.xlu0 %1690 }
 0x1f2   : > { %1860 = vperm.xlu0 %5024, %v5635_v18   ;;  %4971 = vset.pattern.permute.xlu1 %v8057_v29  ;;  %8109 = vst [vmem:[#allocation75_spill] sm:$0xff] %v6085_v8 }
 0x1f5   : > { %v6070_v62 = vpop.permute.xlu1 %2422  ;;  %2434 = vperm.xlu1 %4971, %v5971_v1   ;;  %v6099_v0 = vpop.permute.xlu0 %1979 }
 0x1f6   : > { %1868 = vperm.xlu0 %5024, %v5671_v42   ;;  %8112 = vst [vmem:[#allocation78_spill] sm:$0xff] %v6099_v0  ;;  %v6321_v0 = vld [vmem:[%s7980_s1 + $0x48] sm:$0xff] }
 0x1f9   : > { %1399 = vrot.lane.b32.xlu1 %v1366_v15, %s5250_s23  ;;  %v6105_v9 = vpop.permute.xlu0 %1298 }
 0x1fa   : > { %v6077_v59 = vpop.permute.xlu1 %2651  ;;  %1876 = vperm.xlu0 %5024, %v5726_v44   ;;  %4972 = vset.pattern.permute.xlu1 %v8091_v28 }
 0x1fd   : > { %2667 = vperm.xlu1 %4972, %v5117_v17   ;;  %v6113_v17 = vpop.permute.xlu0 %1692 }
 0x1fe   : > { %1884 = vperm.xlu0 %5024, %v5782_v26   ;;  %8114 = vst [vmem:[#allocation80_spill] sm:$0xff] %v6113_v17 }
 0x1ff   : > { %v6087_v22 = vpop.permute.xlu1 %692 }
 0x200   : > { %8110 = vst [vmem:[#allocation76_spill] sm:$0xff] %v6087_v22 }
 0x201   : > { %4973 = vset.pattern.permute.xlu1 %v8060_v20  ;;  %v6120_v22 = vpop.permute.xlu0 %1981 }
 0x202   : > { %1892 = vperm.xlu0 %5024, %v5846_v21   ;;  %708 = vperm.xlu1 %4973, %v6092_v50   ;;  %8116 = vst [vmem:[#allocation82_spill] sm:$0xff] %v6120_v22  ;;  %v8159_v22 = vld [vmem:[#allocation24_spill] sm:$0xff] }
 0x203   : > { %v6097_v61 = vpop.permute.xlu1 %696 }
 0x204   : > { %8111 = vst [vmem:[#allocation77_spill] sm:$0xff] %v6097_v61  ;;  %v2043_v61 = vld [vmem:[#allocation2 + $0x38] sm:$0xff] }
 0x205   : > { %v2203_v7 = vmul.f32 %v5815_v36, %v2043_v61  ;;  %v6128_v54 = vpop.permute.xlu0 %1306 }
 0x206   : > { %1900 = vperm.xlu0 %5024, %v5913_v47   ;;  %712 = vperm.xlu1 %4973, %v5671_v42   ;;  %8118 = vst [vmem:[#allocation84_spill] sm:$0xff] %v6128_v54 }
 0x208   : > { %v6103_v38 = vpop.permute.xlu1 %388 }
 0x209   : > { %8113 = vst [vmem:[#allocation79_spill] sm:$0xff] %v6103_v38  ;;  %v6133_v37 = vpop.permute.xlu0 %1694 }
 0x20a   : > { %1908 = vperm.xlu0 %5024, %v5980_v52   ;;  %4974 = vset.pattern.permute.xlu1 %v8062_v35  ;;  %8119 = vst [vmem:[#allocation85_spill] sm:$0xff] %v6133_v37 }
 0x20b   : > { %403 = vperm.xlu1 %4974, %v5489_v33   ;;  %v2042_v33 = vld [vmem:[#allocation2 + $0x30] sm:$0xff] }
 0x20d   : > { %v6110_v15 = vpop.permute.xlu1 %981 }
 0x20e   : > { %5026 = vset.pattern.permute.xlu0 %v8055_v58 }
 0x20f   : > { %2141 = vperm.xlu0 %5026, %v5548_v39   ;;  %4975 = vset.pattern.permute.xlu1 %v8064_v12  ;;  %v2202_v39 = vmul.f32 %v5664_v13, %v2042_v33  ;;  %v2492_v13 = vmul.f32 %v5678_v16, %v5704_v63  ;;  %v759_v16 = vmul.f32 %v5589_v53, %v5648_v32  ;;  %v8127_v53 = vld [vmem:[#allocation11_spill] sm:$0xff] }
 0x210   : > { %997 = vperm.xlu1 %4975, %v6092_v50  }
 0x212   : > { %v6118_v57 = vpop.permute.xlu1 %1270 }
 0x213   : > { %8115 = vst [vmem:[#allocation81_spill] sm:$0xff] %v6118_v57  ;;  %2149 = vperm.xlu0 %5026, %v5635_v18   ;;  %v2233_v57 = vpack.c.bf16 %v2203_v7, %v2202_v39  ;;  %v2491_v7 = vmul.f32 %v5675_v14, %v5701_v48  ;;  %v6147_v39 = vpop.permute.xlu0 %1983  ;;  %v760_v14 = vmul.f32 %v5646_v31, %v5682_v19 }
 0x214   : > { %1001 = vperm.xlu1 %4975, %v5671_v42   ;;  %8122 = vst [vmem:[#allocation88_spill] sm:$0xff] %v6147_v39  ;;  %v1049_v31 = vmul.f32 %v8127_v53, %v5907_v4  ;;  %v6188_v4 = vld [vmem:[%s7980_s1 + $0x88] sm:$0xff]  ;;  %v8158_v39 = vld [vmem:[#allocation41_spill] sm:$0xff] }
 0x215   : > { %v2522_v54 = vpack.c.bf16 %v2492_v13, %v2491_v7  ;;  %v789_v7 = vpack.c.bf16 %v760_v14, %v759_v16  ;;  %v8130_v16 = vld [vmem:[#allocation12_spill] sm:$0xff]  ;;  %v8131_v14 = vld [vmem:[#allocation10_spill] sm:$0xff] }
 0x216   : > { %v6124_v60 = vpop.permute.xlu1 %1274 }
 0x217   : > { %8117 = vst [vmem:[#allocation83_spill] sm:$0xff] %v6124_v60  ;;  %2157 = vperm.xlu0 %5026, %v5671_v42   ;;  %v1048_v60 = vmul.f32 %v8131_v14, %v8130_v16 }
 0x218   : > { %4976 = vset.pattern.permute.xlu1 %v8051_v10 }
 0x219   : > { %1286 = vperm.xlu1 %4976, %v6092_v50  }
 0x21b   : > { %v6135_v5 = vpop.permute.xlu1 %1563  ;;  %2165 = vperm.xlu0 %5026, %v5726_v44  }
 0x21c   : > { %8120 = vst [vmem:[#allocation86_spill] sm:$0xff] %v6135_v5  ;;  %v6153_v5 = vpop.permute.xlu0 %1314 }
 0x21d   : > { %2266 = vrot.lane.b32.xlu1 %v2233_v57, %s5251_s9  ;;  %8124 = vst [vmem:[#allocation90_spill] sm:$0xff] %v6153_v5  ;;  %v6293_v5 = vld [vmem:[%s7980_s1 + $0x28] sm:$0xff] }
 0x21e   : > { %4977 = vset.pattern.permute.xlu1 %v8069_v27 }
 0x21f   : > { %2173 = vperm.xlu0 %5026, %v5782_v26  }
 0x220   : > { %v6143_v36 = vpop.permute.xlu1 %1848  ;;  %v6164_v13 = vpop.permute.xlu0 %1696 }
 0x221   : > { %8121 = vst [vmem:[#allocation87_spill] sm:$0xff] %v6143_v36  ;;  %1575 = vperm.xlu1 %4977, %v6092_v50   ;;  %8125 = vst [vmem:[#allocation91_spill] sm:$0xff] %v6164_v13  ;;  %v1078_v13 = vpack.c.bf16 %v1049_v31, %v1048_v60  ;;  %v8136_v31 = vld [vmem:[#allocation13_spill] sm:$0xff] }
 0x223   : > { %2181 = vperm.xlu0 %5026, %v5846_v21  }
 0x224   : > { %v6151_v57 = vpop.permute.xlu1 %819  ;;  %v6174_v32 = vpop.permute.xlu0 %1985 }
 0x225   : > { %8123 = vst [vmem:[#allocation89_spill] sm:$0xff] %v6151_v57  ;;  %2555 = vrot.lane.b32.xlu1 %v2522_v54, %s8025_s10  ;;  %8128 = vst [vmem:[#allocation11_spill] sm:$0xff] %v6174_v32  ;;  %v1765_v57 = vld [vmem:[#allocation2 + $0x82] sm:$0xff] }
 0x226   : > { %4978 = vset.pattern.permute.xlu1 %v8053_v30 }
 0x227   : > { %2189 = vperm.xlu0 %5026, %v5913_v47  }
 0x228   : > { %v6162_v36 = vpop.permute.xlu1 %2137 }
 0x229   : > { %1864 = vperm.xlu1 %4978, %v6092_v50  }
 0x22b   : > { %2197 = vperm.xlu0 %5026, %v5980_v52  }
 0x22c   : > { %v6168_v54 = vpop.permute.xlu1 %1108 }
 0x22d   : > { %8126 = vst [vmem:[#allocation92_spill] sm:$0xff] %v6168_v54  ;;  %823 = vrot.lane.b32.xlu1 %v789_v7, %s5248_s16  ;;  %v6183_v7 = vpop.permute.xlu0 %1322 }
 0x22e   : > { %4979 = vset.pattern.permute.xlu1 %v8055_v58  ;;  %8132 = vst [vmem:[#allocation12_spill] sm:$0xff] %v6183_v7  ;;  %v1337_v7 = vmul.f32 %v2042_v33, %v8136_v31  ;;  %v5119_v33 = vld [vmem:[%s7980_s1 + $0x30] sm:$0xff] }
 0x22f   : > { %5028 = vset.pattern.permute.xlu0 %v8057_v29 }
 0x230   : > { %2418 = vperm.xlu0 %5028, %v5798_v25   ;;  %v6178_v19 = vpop.permute.xlu1 %2426  ;;  %v8134_v25 = vld [vmem:[#allocation14_spill] sm:$0xff] }
 0x231   : > { %8129 = vst [vmem:[#allocation93_spill] sm:$0xff] %v6178_v19  ;;  %2153 = vperm.xlu1 %4979, %v6092_v50   ;;  %v1338_v16 = vmul.f32 %v2043_v61, %v8134_v25  ;;  %v6196_v14 = vpop.permute.xlu0 %1698 }
 0x232   : > { %8135 = vst [vmem:[#allocation14_spill] sm:$0xff] %v6196_v14  ;;  %v5121_v14 = vld [vmem:[%s7980_s1 + $0x8] sm:$0xff] }
 0x233   : > { %v1367_v19 = vpack.c.bf16 %v1338_v16, %v1337_v7 }
 0x234   : > { %2430 = vperm.xlu0 %5028, %v6188_v4   ;;  %v6191_v53 = vpop.permute.xlu1 %1397 }
 0x235   : > { %8133 = vst [vmem:[#allocation10_spill] sm:$0xff] %v6191_v53  ;;  %1112 = vrot.lane.b32.xlu1 %v1078_v13, %s5249_s17  ;;  %v6203_v32 = vpop.permute.xlu0 %1987  ;;  %v8199_v53 = vld [vmem:[#allocation28_spill] sm:$0xff] }
 0x236   : > { %4980 = vset.pattern.permute.xlu1 %v8057_v29  ;;  %8137 = vst [vmem:[#allocation13_spill] sm:$0xff] %v6203_v32 }
 0x238   : > { %2438 = vperm.xlu0 %5028, %v5635_v18   ;;  %v6199_v60 = vpop.permute.xlu1 %2659 }
 0x239   : > { %2442 = vperm.xlu1 %4980, %v6092_v50  }
 0x23c   : > { %2446 = vperm.xlu0 %5028, %v5671_v42   ;;  %v6221_v42 = vld [vmem:[%s7980_s1 + $0xb0] sm:$0xff] }
 0x23d   : > { %v6206_v13 = vpop.permute.xlu1 %700  ;;  %1401 = vrot.lane.b32.xlu1 %v1367_v19, %s5250_s23 }
 0x23e   : > { %4981 = vset.pattern.permute.xlu1 %v8091_v28 }
 0x23f   : > { %v6210_v61 = vpop.permute.xlu0 %1330 }
 0x240   : > { %8138 = vst [vmem:[#allocation94_spill] sm:$0xff] %v6210_v61  ;;  %2454 = vperm.xlu0 %5028, %v5726_v44   ;;  %v6245_v61 = vld [vmem:[%s7980_s1 + $0x40] sm:$0xff] }
 0x241   : > { %v6213_v18 = vpop.permute.xlu1 %704  ;;  %2675 = vperm.xlu1 %4981, %v5119_v33  }
 0x244   : > { %2462 = vperm.xlu0 %5028, %v5782_v26   ;;  %v6224_v19 = vpop.permute.xlu0 %1551 }
 0x245   : > { %8139 = vst [vmem:[#allocation95_spill] sm:$0xff] %v6224_v19  ;;  %4982 = vset.pattern.permute.xlu1 %v8060_v20  ;;  %v8150_v19 = vmov 0.0  }
 0x246   : > { %v6227_v7 = vpop.permute.xlu1 %393  ;;  %716 = vperm.xlu1 %4982, %v6221_v42  }
 0x247   : > { %8140 = vst [vmem:[#allocation96_spill] sm:$0xff] %v6227_v7  ;;  %v8198_v7 = vld [vmem:[#allocation33_spill] sm:$0xff] }
 0x248   : > { %2470 = vperm.xlu0 %5028, %v5846_v21   ;;  %v6231_v25 = vpop.permute.xlu0 %1559  ;;  %v2495_v54 = vmul.f32 %v8199_v53, %v8198_v7  ;;  %v5063_v7 = vld [vmem:[%s7982_s3] sm:$0xff]  }
 0x249   : > { %8141 = vst [vmem:[#allocation97_spill] sm:$0xff] %v6231_v25  ;;  %v6272_v25 = vld [vmem:[#allocation2 + $0x40] sm:$0xff]  ;;  %2995 = vmatpush1.bf16.msra.mxu0 %v5063_v7 }
 0x24a   : > { %720 = vperm.xlu1 %4982, %v5726_v44   ;;  %8149 = vst [vmem:[#allocation105_spill] sm:$0xff] %v6272_v25  ;;  %2996 = vmatprep.subr.bf16.mxu0 %v8062_v35 }
 0x24b   : > { %v6234_v16 = vpop.permute.xlu1 %989 }
 0x24c   : > { %8142 = vst [vmem:[#allocation98_spill] sm:$0xff] %v6234_v16  ;;  %2478 = vperm.xlu0 %5028, %v5913_v47   ;;  %v6237_v31 = vpop.permute.xlu0 %1571 }
 0x24d   : > { %8143 = vst [vmem:[#allocation99_spill] sm:$0xff] %v6237_v31  ;;  %v6261_v31 = vld [vmem:[#allocation2 + $0x40] sm:$0xff] }
 0x24e   : > { %4983 = vset.pattern.permute.xlu1 %v8062_v35  ;;  %v2204_v43 = vmul.f32 %v8154_v34, %v6261_v31  ;;  %v8157_v34 = vld [vmem:[#allocation25_spill] sm:$0xff] }
 0x24f   : > { %v6240_v33 = vpop.permute.xlu1 %993  ;;  %413 = vperm.xlu1 %4983, %v6245_v61   ;;  %v2493_v37 = vmul.f32 %v8158_v39, %v8157_v34 }
 0x250   : > { %8144 = vst [vmem:[#allocation100_spill] sm:$0xff] %v6240_v33  ;;  %2486 = vperm.xlu0 %5028, %v5980_v52   ;;  %v6249_v21 = vpop.permute.xlu0 %1579  ;;  %v6263_v52 = vld [vmem:[#allocation2 + $0x48] sm:$0xff] }
 0x251   : > { %8145 = vst [vmem:[#allocation101_spill] sm:$0xff] %v6249_v21  ;;  %v6270_v33 = vld [vmem:[#allocation2 + $0x42] sm:$0xff]  ;;  %v2205_v23 = vmul.f32 %v8151_v41, %v6263_v52 }
 0x253   : > { %4984 = vset.pattern.permute.xlu1 %v8064_v12 }
 0x254   : > { %5030 = vset.pattern.permute.xlu0 %v8091_v28  ;;  %v6253_v47 = vpop.permute.xlu1 %1278  ;;  %1005 = vperm.xlu1 %4984, %v6221_v42   ;;  %v6256_v32 = vpop.permute.xlu0 %1587 }
 0x255   : > { %8146 = vst [vmem:[#allocation102_spill] sm:$0xff] %v6256_v32  ;;  %2655 = vperm.xlu0 %5030, %v5121_v14   ;;  %v6274_v32 = vld [vmem:[#allocation2 + $0x3a] sm:$0xff] }
 0x256   : > { %v5122_v14 = vld [vmem:[%s7980_s1 + $0x18] sm:$0xff]  ;;  %3297 = vst.msk [vmem:[#allocation2 + $0x40] sm:$0xff] %vm223_vm0, %v8150_v19 }
 0x258   : > { %v6265_v21 = vpop.permute.xlu1 %2264  ;;  %1009 = vperm.xlu1 %4984, %v5726_v44   ;;  %v6268_v16 = vpop.permute.xlu0 %1595 }
 0x259   : > { %8147 = vst [vmem:[#allocation103_spill] sm:$0xff] %v6265_v21  ;;  %8148 = vst [vmem:[#allocation104_spill] sm:$0xff] %v6268_v16  ;;  %2663 = vperm.xlu0 %5030, %v5122_v14   ;;  %v2234_v14 = vpack.c.bf16 %v2205_v23, %v2204_v43  ;;  %v8160_v43 = vld [vmem:[#allocation19_spill] sm:$0xff] }
 0x25a   : > { %v2494_v23 = vmul.f32 %v8160_v43, %v8159_v22  ;;  %v6332_v22 = vld [vmem:[%s7980_s1 + $0x58] sm:$0xff]  ;;  %v8165_v43 = vld [vmem:[#allocation7_spill] sm:$0xff] }
 0x25b   : > { %v8191_v21 = vld [vmem:[#allocation27_spill] sm:$0xff] }
 0x25c   : > { %v6283_v44 = vpop.permute.xlu1 %1567  ;;  %4985 = vset.pattern.permute.xlu1 %v8051_v10  ;;  %v6286_v16 = vpop.permute.xlu0 %1603 }
 0x25d   : > { %8152 = vst [vmem:[#allocation18_spill] sm:$0xff] %v6283_v44  ;;  %8153 = vst [vmem:[#allocation106_spill] sm:$0xff] %v6286_v16  ;;  %2671 = vperm.xlu0 %5030, %v6293_v5   ;;  %1294 = vperm.xlu1 %4985, %v6221_v42   ;;  %v6304_v16 = vld [vmem:[%s7980_s1 + $0x38] sm:$0xff] }
 0x260   : > { %v6297_v41 = vpop.permute.xlu1 %2553  ;;  %v6299_v44 = vpop.permute.xlu0 %1611 }
 0x261   : > { %8155 = vst [vmem:[#allocation17_spill] sm:$0xff] %v6297_v41  ;;  %8156 = vst [vmem:[#allocation107_spill] sm:$0xff] %v6299_v44  ;;  %2679 = vperm.xlu0 %5030, %v6304_v16   ;;  %2268 = vrot.lane.b32.xlu1 %v2234_v14, %s5251_s9  ;;  %v2523_v14 = vpack.c.bf16 %v2494_v23, %v2493_v37 }
 0x262   : > { %4986 = vset.pattern.permute.xlu1 %v8069_v27 }
 0x264   : > { %v6313_v17 = vpop.permute.xlu1 %1856  ;;  %v6315_v44 = vpop.permute.xlu0 %1619 }
 0x265   : > { %8161 = vst [vmem:[#allocation25_spill] sm:$0xff] %v6313_v17  ;;  %8162 = vst [vmem:[#allocation41_spill] sm:$0xff] %v6315_v44  ;;  %1583 = vperm.xlu1 %4986, %v6221_v42   ;;  %2687 = vperm.xlu0 %5030, %v6321_v0   ;;  %v762_v44 = vmul.f32 %v8165_v43, %v5704_v63  ;;  %v8166_v17 = vld [vmem:[#allocation20_spill] sm:$0xff]  ;;  %v8172_v43 = vld [vmem:[#allocation15_spill] sm:$0xff] }
 0x266   : > { %v761_v37 = vmul.f32 %v5701_v48, %v8166_v17  ;;  %v6359_v48 = vld [vmem:[%s7980_s1 + $0x78] sm:$0xff]  ;;  %v8171_v17 = vld [vmem:[#allocation22_spill] sm:$0xff] }
 0x268   : > { %v6324_v8 = vpop.permute.xlu1 %821  ;;  %v790_v25 = vpack.c.bf16 %v762_v44, %v761_v37  ;;  %v8173_v44 = vld [vmem:[#allocation21_spill] sm:$0xff]  ;;  %v8174_v37 = vld [vmem:[#allocation16_spill] sm:$0xff] }
 0x269   : > { %8163 = vst [vmem:[#allocation24_spill] sm:$0xff] %v6324_v8  ;;  %v6326_v39 = vpop.permute.xlu0 %1844  ;;  %2557 = vrot.lane.b32.xlu1 %v2523_v14, %s8025_s10  ;;  %2695 = vperm.xlu0 %5030, %v6332_v22   ;;  %v6348_v14 = vld [vmem:[%s7980_s1 + $0x68] sm:$0xff]  ;;  %v1050_v56 = vmul.f32 %v8174_v37, %v8173_v44 }
 0x26a   : > { %8164 = vst [vmem:[#allocation19_spill] sm:$0xff] %v6326_v39  ;;  %4987 = vset.pattern.permute.xlu1 %v8053_v30 }
 0x26c   : > { %v6340_v23 = vpop.permute.xlu1 %2145 }
 0x26d   : > { %8167 = vst [vmem:[#allocation7_spill] sm:$0xff] %v6340_v23  ;;  %v6342_v39 = vpop.permute.xlu0 %1852  ;;  %1872 = vperm.xlu1 %4987, %v6221_v42   ;;  %2703 = vperm.xlu0 %5030, %v6348_v14   ;;  %v1051_v23 = vmul.f32 %v8172_v43, %v8171_v17  ;;  %v1339_v17 = vmul.f32 %v6261_v31, %v5999_v49  ;;  %v8178_v43 = vld [vmem:[#allocation23_spill] sm:$0xff] }
 0x26e   : > { %8168 = vst [vmem:[#allocation20_spill] sm:$0xff] %v6342_v39  ;;  %v1340_v44 = vmul.f32 %v6263_v52, %v8178_v43 }
 0x270   : > { %v6351_v45 = vpop.permute.xlu1 %1110 }
 0x271   : > { %8169 = vst [vmem:[#allocation108_spill] sm:$0xff] %v6351_v45  ;;  %v6353_v63 = vpop.permute.xlu0 %1860  ;;  %825 = vrot.lane.b32.xlu1 %v790_v25, %s5248_s16  ;;  %2711 = vperm.xlu0 %5030, %v6359_v48  }
 0x272   : > { %8170 = vst [vmem:[#allocation109_spill] sm:$0xff] %v6353_v63  ;;  %4988 = vset.pattern.permute.xlu1 %v8055_v58  ;;  %v1079_v63 = vpack.c.bf16 %v1051_v23, %v1050_v56  ;;  %v1368_v56 = vpack.c.bf16 %v1340_v44, %v1339_v17 }
 0x274   : > { %v6365_v39 = vpop.permute.xlu1 %2434 }
 0x275   : > { %2161 = vperm.xlu1 %4988, %v6221_v42   ;;  %v6370_v25 = vpop.permute.xlu0 %1868  ;;  %2719 = vperm.xlu0 %5030, %v6188_v4  }
 0x276   : > { %8175 = vst [vmem:[#allocation22_spill] sm:$0xff] %v6370_v25 }
 0x278   : > { %v6373_v41 = vpop.permute.xlu1 %1399 }
 0x279   : > { %8176 = vst [vmem:[#allocation15_spill] sm:$0xff] %v6373_v41  ;;  %1114 = vrot.lane.b32.xlu1 %v1079_v63, %s5249_s17  ;;  %v6376_v45 = vpop.permute.xlu0 %1876 }
 0x27a   : > { %8177 = vst [vmem:[#allocation21_spill] sm:$0xff] %v6376_v45  ;;  %4989 = vset.pattern.permute.xlu1 %v8057_v29 }
 0x27c   : > { %v6383_v37 = vpop.permute.xlu1 %2667 }
 0x27d   : > { %2450 = vperm.xlu1 %4989, %v6221_v42   ;;  %v6386_v25 = vpop.permute.xlu0 %1884  ;;  %v6402_v42 = vld [vmem:[%s7980_s1 + $0xc0] sm:$0xff] }
 0x27e   : > { %8179 = vst [vmem:[#allocation16_spill] sm:$0xff] %v6386_v25 }
 0x281   : > { %1403 = vrot.lane.b32.xlu1 %v1368_v56, %s5250_s23  ;;  %v6389_v23 = vpop.permute.xlu1 %708  ;;  %v6391_v63 = vpop.permute.xlu0 %1892  ;;  %v6421_v56 = vld [vmem:[%s7980_s1 + $0x50] sm:$0xff] }
 0x282   : > { %8180 = vst [vmem:[#allocation23_spill] sm:$0xff] %v6389_v23  ;;  %8181 = vst [vmem:[#allocation110_spill] sm:$0xff] %v6391_v63  ;;  %4990 = vset.pattern.permute.xlu1 %v8091_v28  ;;  %v6434_v23 = vld [vmem:[#allocation2 + $0x50] sm:$0xff] }
 0x285   : > { %2683 = vperm.xlu1 %4990, %v6245_v61   ;;  %v6395_v49 = vpop.permute.xlu1 %712  ;;  %v6397_v31 = vpop.permute.xlu0 %1900 }
 0x286   : > { %8182 = vst [vmem:[#allocation111_spill] sm:$0xff] %v6395_v49  ;;  %8183 = vst [vmem:[#allocation112_spill] sm:$0xff] %v6397_v31  ;;  %v6436_v49 = vld [vmem:[#allocation2 + $0x58] sm:$0xff] }
 0x287   : > { %v2207_v8 = vmul.f32 %v8191_v21, %v6436_v49 }
 0x289   : > { %4991 = vset.pattern.permute.xlu1 %v8060_v20  ;;  %v6405_v52 = vpop.permute.xlu0 %1908 }
 0x28a   : > { %8184 = vst [vmem:[#allocation113_spill] sm:$0xff] %v6405_v52  ;;  %724 = vperm.xlu1 %4991, %v6402_v42   ;;  %v6408_v17 = vpop.permute.xlu1 %403 }
 0x28b   : > { %8185 = vst [vmem:[#allocation114_spill] sm:$0xff] %v6408_v17  ;;  %v8190_v17 = vld [vmem:[#allocation34_spill] sm:$0xff] }
 0x28c   : > { %v2206_v41 = vmul.f32 %v8190_v17, %v6434_v23  ;;  %v8196_v17 = vld [vmem:[#allocation35_spill] sm:$0xff] }
 0x28d   : > { %v2496_v21 = vmul.f32 %v8197_v6, %v8196_v17  ;;  %v8203_v6 = vld [vmem:[#allocation30_spill] sm:$0xff] }
 0x28e   : > { %v6410_v43 = vpop.permute.xlu0 %2141  ;;  %728 = vperm.xlu1 %4991, %v5782_v26   ;;  %v2235_v3 = vpack.c.bf16 %v2207_v8, %v2206_v41 }
 0x28f   : > { %v6413_v61 = vpop.permute.xlu1 %997  ;;  %v2524_v8 = vpack.c.bf16 %v2496_v21, %v2495_v54 }
 0x292   : > { %v6415_v44 = vpop.permute.xlu0 %2149  ;;  %4992 = vset.pattern.permute.xlu1 %v8062_v35 }
 0x293   : > { %8186 = vst [vmem:[#allocation115_spill] sm:$0xff] %v6415_v44  ;;  %423 = vperm.xlu1 %4992, %v6421_v56   ;;  %v6424_v52 = vpop.permute.xlu1 %1001 }
 0x296   : > { %v6426_v63 = vpop.permute.xlu0 %2157 }
 0x297   : > { %4993 = vset.pattern.permute.xlu1 %v8064_v12 }
 0x298   : > { %1013 = vperm.xlu1 %4993, %v6402_v42   ;;  %v6430_v25 = vpop.permute.xlu1 %1286 }
 0x299   : > { %8187 = vst [vmem:[#allocation116_spill] sm:$0xff] %v6430_v25 }
 0x29a   : > { %v6432_v45 = vpop.permute.xlu0 %2165 }
 0x29b   : > { %8188 = vst [vmem:[#allocation117_spill] sm:$0xff] %v6432_v45 }
 0x29c   : > { %1017 = vperm.xlu1 %4993, %v5782_v26   ;;  %v6439_v44 = vpop.permute.xlu1 %2266 }
 0x29d   : > { %8189 = vst [vmem:[#allocation118_spill] sm:$0xff] %v6439_v44 }
 0x29e   : > { %v6441_v31 = vpop.permute.xlu0 %2173 }
 0x2a0   : > { %4994 = vset.pattern.permute.xlu1 %v8051_v10  ;;  %v6448_v25 = vpop.permute.xlu1 %1575 }
 0x2a1   : > { %8192 = vst [vmem:[#allocation34_spill] sm:$0xff] %v6448_v25  ;;  %1302 = vperm.xlu1 %4994, %v6402_v42  }
 0x2a2   : > { %v6451_v45 = vpop.permute.xlu0 %2181 }
 0x2a3   : > { %8193 = vst [vmem:[#allocation27_spill] sm:$0xff] %v6451_v45 }
 0x2a4   : > { %v6453_v26 = vpop.permute.xlu1 %2555 }
 0x2a5   : > { %8194 = vst [vmem:[#allocation119_spill] sm:$0xff] %v6453_v26  ;;  %2270 = vrot.lane.b32.xlu1 %v2235_v3, %s5251_s9  ;;  %v6470_v3 = vld [vmem:[#allocation2 + $0x99] sm:$0xff]  ;;  %v6475_v26 = vld [vmem:[#allocation2 + $0x91] sm:$0xff] }
 0x2a6   : > { %v6456_v44 = vpop.permute.xlu0 %2189  ;;  %4995 = vset.pattern.permute.xlu1 %v8069_v27  ;;  %v2504_v54 = vmul.f32 %v6070_v62, %v6470_v3  ;;  %v5064_v62 = vld [vmem:[%s7982_s3 + $0x8] sm:$0xff]  }
 0x2a7   : > { %8195 = vst [vmem:[#allocation120_spill] sm:$0xff] %v6456_v44  ;;  %v5130_v44 = vld [vmem:[#allocation2 + $0x49] sm:$0xff]  ;;  %2997 = vmatpush1.bf16.msra.mxu0 %v5064_v62  ;;  %v8209_v62 = vld [vmem:[#allocation32_spill] sm:$0xff] }
 0x2a8   : > { %v6463_v25 = vpop.permute.xlu1 %1864  ;;  %v764_v17 = vmul.f32 %v5130_v44, %v8203_v6  ;;  %v1060_v44 = vmul.f32 %v1765_v57, %v6110_v15  ;;  %2998 = vmatprep.subr.bf16.mxu0 %v8062_v35  ;;  %v8205_v57 = vld [vmem:[#allocation26_spill] sm:$0xff] }
 0x2a9   : > { %8200 = vst [vmem:[#allocation35_spill] sm:$0xff] %v6463_v25  ;;  %1591 = vperm.xlu1 %4995, %v6402_v42   ;;  %v8204_v25 = vld [vmem:[#allocation29_spill] sm:$0xff] }
 0x2aa   : > { %v6466_v45 = vpop.permute.xlu0 %2197 }
 0x2ab   : > { %8201 = vst [vmem:[#allocation44_spill] sm:$0xff] %v6466_v45 }
 0x2ac   : > { %v6468_v41 = vpop.permute.xlu1 %823 }
 0x2ad   : > { %8202 = vst [vmem:[#allocation33_spill] sm:$0xff] %v6468_v41  ;;  %2559 = vrot.lane.b32.xlu1 %v2524_v8, %s8025_s10  ;;  %v901_v8 = vld [vmem:[#allocation2 + $0x8a] sm:$0xff]  ;;  %v763_v41 = vmul.f32 %v8157_v34, %v8204_v25  ;;  %v1052_v25 = vmul.f32 %v5920_v55, %v8205_v57 }
 0x2ae   : > { %4996 = vset.pattern.permute.xlu1 %v8053_v30 }
 0x2af   : > { %v2419_v53 = vpop.permute.xlu0 %2418  ;;  %v791_v40 = vpack.c.bf16 %v764_v17, %v763_v41  ;;  %v5131_v41 = vld [vmem:[#allocation2 + $0x4a] sm:$0xff] }
 0x2b0   : > { %v2503_v21 = vmul.f32 %v2419_v53, %v6475_v26  ;;  %v6483_v45 = vpop.permute.xlu1 %2153  ;;  %v1061_v53 = vmul.f32 %v5942_v24, %v901_v8  ;;  %v8206_v17 = vld [vmem:[#allocation31_spill] sm:$0xff]  ;;  %v5066_v8 = vld [vmem:[%s7982_s3 + $0x18] sm:$0xff]  }
 0x2b1   : > { %1880 = vperm.xlu1 %4996, %v6402_v42   ;;  %v1053_v7 = vmul.f32 %v5131_v41, %v8206_v17  ;;  %v5065_v24 = vld [vmem:[%s7982_s3 + $0x10] sm:$0xff]  }
 0x2b2   : > { %v2528_v6 = vpack.c.bf16 %v2504_v54, %v2503_v21  ;;  %v1084_v15 = vpack.c.bf16 %v1061_v53, %v1060_v44  ;;  %2999 = vmatpush1.bf16.msra.mxu0 %v5065_v24  ;;  %v1341_v53 = vmul.f32 %v6434_v23, %v8209_v62  ;;  %v2623_v62 = vld [vmem:[#allocation2 + $0x4a] sm:$0xff] }
 0x2b3   : > { %v6490_v38 = vpop.permute.xlu0 %2430  ;;  %3000 = vmatprep.subr.bf16.mxu0 %v8062_v35  ;;  %v1080_v21 = vpack.c.bf16 %v1053_v7, %v1052_v25  ;;  %v5132_v25 = vld [vmem:[%s7980_s1] sm:$0xff]  ;;  %v5069_v7 = vld [vmem:[%s7982_s3 + $0x30] sm:$0xff]  }
 0x2b4   : > { %2567 = vrot.lane.b32.xlu0 %v2528_v6, %s8025_s10  ;;  %v6497_v34 = vpop.permute.xlu1 %1112  ;;  %v1342_v6 = vmul.f32 %v6006_v2, %v6436_v49  ;;  %v5068_v49 = vld [vmem:[%s7982_s3 + $0x28] sm:$0xff]  }
 0x2b5   : > { %827 = vrot.lane.b32.xlu1 %v791_v40, %s5248_s16 }
 0x2b6   : > { %4997 = vset.pattern.permute.xlu1 %v8055_v58  ;;  %3001 = vmatpush1.bf16.msra.mxu0 %v5066_v8  ;;  %v1369_v2 = vpack.c.bf16 %v1342_v6, %v1341_v53  ;;  %v5070_v8 = vld [vmem:[%s7982_s3 + $0x38] sm:$0xff]   ;;  %v5071_v6 = vld [vmem:[%s7982_s3 + $0x40] sm:$0xff]   ;;  %v6585_v53 = vld [vmem:[#allocation2 + $0x48] sm:$0xff] }
 0x2b7   : > { %v6505_v54 = vpop.permute.xlu0 %2438  ;;  %3002 = vmatprep.subr.bf16.mxu0 %v8062_v35  ;;  %3298 = vst.msk [vmem:[#allocation2 + $0x48] sm:$0xff] %vm223_vm0, %v8150_v19 }
 0x2b8   : > { %1124 = vrot.lane.b32.xlu0 %v1084_v15, %s5249_s17  ;;  %v6511_v40 = vpop.permute.xlu1 %2442 }
 0x2b9   : > { %8207 = vst [vmem:[#allocation28_spill] sm:$0xff] %v6511_v40  ;;  %2169 = vperm.xlu1 %4997, %v6402_v42  }
 0x2bb   : > { %v6515_v55 = vpop.permute.xlu0 %2446 }
 0x2bc   : > { %8208 = vst [vmem:[#allocation30_spill] sm:$0xff] %v6515_v55  ;;  %2723 = vperm.xlu0 %5030, %v5971_v1   ;;  %v6521_v44 = vpop.permute.xlu1 %1401  ;;  %v5067_v1 = vld [vmem:[%s7982_s3 + $0x20] sm:$0xff]  }
 0x2bd   : > { %1116 = vrot.lane.b32.xlu1 %v1080_v21, %s5249_s17  ;;  %3003 = vmatpush1.bf16.msra.mxu0 %v5067_v1  ;;  %v6568_v21 = vld [vmem:[%s7980_s1 + $0xd0] sm:$0xff]  ;;  %v6593_v1 = vld [vmem:[%s7980_s1 + $0xd8] sm:$0xff] }
 0x2be   : > { %4998 = vset.pattern.permute.xlu1 %v8057_v29  ;;  %3004 = vmatprep.subr.bf16.mxu0 %v8062_v35  ;;  %v2629_v55 = vld [vmem:[#allocation2 + $0x7a] sm:$0xff] }
 0x2bf   : > { %v6530_v15 = vpop.permute.xlu0 %2454 }
 0x2c0   : > { %5033 = vset.pattern.permute.xlu0 %v8062_v35  ;;  %v6536_v57 = vpop.permute.xlu1 %2675 }
 0x2c1   : > { %373 = vperm.xlu0 %5033, %v5132_v25   ;;  %2458 = vperm.xlu1 %4998, %v6402_v42   ;;  %v2619_v25 = vld [vmem:[#allocation2 + $0x2a] sm:$0xff] }
 0x2c2   : > { %3005 = vmatpush1.bf16.msra.mxu0 %v5068_v49 }
 0x2c3   : > { %v6542_v23 = vpop.permute.xlu0 %2462  ;;  %3006 = vmatprep.subr.bf16.mxu0 %v8062_v35 }
 0x2c4   : > { %8210 = vst [vmem:[#allocation29_spill] sm:$0xff] %v6542_v23 }
 0x2c5   : > { %383 = vperm.xlu0 %5033, %v5965_v46   ;;  %1405 = vrot.lane.b32.xlu1 %v1369_v2, %s5250_s23  ;;  %v6550_v41 = vpop.permute.xlu1 %716 }
 0x2c6   : > { %4999 = vset.pattern.permute.xlu1 %v8091_v28  ;;  %3007 = vmatpush1.bf16.msra.mxu0 %v5069_v7 }
 0x2c7   : > { %v6553_v17 = vpop.permute.xlu0 %2470  ;;  %3008 = vmatprep.subr.bf16.mxu0 %v8062_v35 }
 0x2c9   : > { %398 = vperm.xlu0 %5033, %v6293_v5   ;;  %2691 = vperm.xlu1 %4999, %v6421_v56   ;;  %v6561_v46 = vpop.permute.xlu1 %720 }
 0x2ca   : > { %3009 = vmatpush1.bf16.msra.mxu0 %v5070_v8 }
 0x2cb   : > { %v6563_v24 = vpop.permute.xlu0 %2478  ;;  %3010 = vmatprep.subr.bf16.mxu0 %v8062_v35 }
 0x2cd   : > { %408 = vperm.xlu0 %5033, %v6304_v16   ;;  %5000 = vset.pattern.permute.xlu1 %v8060_v20  ;;  %v2618_v16 = vld [vmem:[#allocation2 + $0x22] sm:$0xff] }
 0x2ce   : > { %732 = vperm.xlu1 %5000, %v6568_v21   ;;  %v6577_v5 = vpop.permute.xlu1 %413  ;;  %3011 = vmatpush1.bf16.msra.mxu0 %v5071_v6 }
 0x2cf   : > { %v6579_v56 = vpop.permute.xlu0 %2486  ;;  %4776 = vmatprep.subr.bf16.mxu0 %v8150_v19  ;;  %v5135_v19 = vld [vmem:[#allocation2 + $0x32] sm:$0xff] }
 0x2d0   : > { %8211 = vst [vmem:[#allocation26_spill] sm:$0xff] %v6579_v56  ;;  %v6605_v56 = vld [vmem:[%s7980_s1 + $0x60] sm:$0xff] }
 0x2d1   : > { %418 = vperm.xlu0 %5033, %v6321_v0   ;;  %v2778_v0 = vmul.f32 %v6077_v59, %v2618_v16 }
 0x2d2   : > { %736 = vperm.xlu1 %5000, %v6593_v1  }
 0x2d3   : > { %v6596_v2 = vpop.permute.xlu1 %1005 }
 0x2d4   : > { %8212 = vst [vmem:[#allocation31_spill] sm:$0xff] %v6596_v2  ;;  %v2656_v49 = vpop.permute.xlu0 %2655  ;;  %v2780_v2 = vmul.f32 %v5135_v19, %v6199_v60  ;;  %v2624_v19 = vld [vmem:[#allocation2 + $0x52] sm:$0xff] }
 0x2d5   : > { %v2779_v7 = vmul.f32 %v2656_v49, %v2619_v25  ;;  %428 = vperm.xlu0 %5033, %v6332_v22   ;;  %v2782_v49 = vmul.f32 %v6383_v37, %v6270_v33  ;;  %v2784_v33 = vmul.f32 %v6536_v57, %v2624_v19  ;;  %v2056_v57 = vld [vmem:[#allocation2 + $0xa0] sm:$0xff] }
 0x2d6   : > { %5001 = vset.pattern.permute.xlu1 %v8062_v35 }
 0x2d7   : > { %v2810_v8 = vpack.c.bf16 %v2779_v7, %v2778_v0  ;;  %433 = vperm.xlu1 %5001, %v6605_v56   ;;  %v6608_v6 = vpop.permute.xlu1 %1009 }
 0x2d8   : > { %8213 = vst [vmem:[#allocation32_spill] sm:$0xff] %v6608_v6  ;;  %v2664_v23 = vpop.permute.xlu0 %2663 }
 0x2d9   : > { %2826 = vst.msk [vmem:[#allocation3 + $0x8] sm:$0xff] %vm223_vm0, %v2810_v8  ;;  %v2781_v59 = vmul.f32 %v2664_v23, %v6274_v32  ;;  %438 = vperm.xlu0 %5033, %v6348_v14   ;;  %v2625_v32 = vld [vmem:[#allocation2 + $0x5a] sm:$0xff]  ;;  %v6622_v14 = vld [vmem:[#allocation2 + $0x68] sm:$0xff] }
 0x2db   : > { %v2811_v22 = vpack.c.bf16 %v2781_v59, %v2780_v2  ;;  %5002 = vset.pattern.permute.xlu1 %v8064_v12  ;;  %v6624_v2 = vld [vmem:[#allocation2 + $0x60] sm:$0xff] }
 0x2dc   : > { %v2672_v16 = vpop.permute.xlu0 %2671  ;;  %1021 = vperm.xlu1 %5002, %v6568_v21   ;;  %v6616_v25 = vpop.permute.xlu1 %1294  ;;  %v8215_v59 = vld [vmem:[#allocation37_spill] sm:$0xff] }
 0x2dd   : > { %2827 = vst.msk [vmem:[#allocation3 + $0x18] sm:$0xff] %vm223_vm0, %v2811_v22  ;;  %v2783_v60 = vmul.f32 %v2672_v16, %v2623_v62  ;;  %448 = vperm.xlu0 %5033, %v6359_v48   ;;  %v8214_v48 = vld [vmem:[#allocation36_spill] sm:$0xff]  ;;  %v2208_v22 = vmul.f32 %v8215_v59, %v6624_v2  ;;  %v6663_v59 = vld [vmem:[#allocation2 + $0x61] sm:$0xff] }
 0x2de   : > { %v2209_v62 = vmul.f32 %v8214_v48, %v6622_v14  ;;  %v774_v48 = vmul.f32 %v6470_v3, %v6213_v18  ;;  %v1351_v18 = vmul.f32 %v2056_v57, %v6253_v47  ;;  %v6686_v47 = vld [vmem:[#allocation2 + $0xb1] sm:$0xff] }
 0x2df   : > { %v2812_v23 = vpack.c.bf16 %v2783_v60, %v2782_v49  ;;  %v2057_v49 = vld [vmem:[#allocation2 + $0xa8] sm:$0xff] }
 0x2e0   : > { %v2680_v0 = vpop.permute.xlu0 %2679  ;;  %1025 = vperm.xlu1 %5002, %v6593_v1   ;;  %v6627_v7 = vpop.permute.xlu1 %2268  ;;  %v2843_v8 = vld [vmem:[#allocation3 + $0x8] sm:$0xff]  ;;  %v2236_v19 = vpack.c.bf16 %v2209_v62, %v2208_v22  ;;  %v773_v22 = vmul.f32 %v6206_v13, %v6475_v26  ;;  %v5139_v13 = vld [vmem:[#allocation2 + $0x59] sm:$0xff]  ;;  %v8220_v26 = vld [vmem:[#allocation42_spill] sm:$0xff] }
 0x2e1   : > { %2828 = vst.msk [vmem:[#allocation3 + $0x28] sm:$0xff] %vm223_vm0, %v2812_v23  ;;  %v2785_v37 = vmul.f32 %v2680_v0, %v2625_v32  ;;  %458 = vperm.xlu0 %5033, %v6188_v4   ;;  %4563 = vmatprep.mubr.msk.bf16.mxu0 %vm223_vm0, %v2843_v8  ;;  %v6644_v4 = vld [vmem:[%s7980_s1 + $0x98] sm:$0xff]  ;;  %v2217_v32 = vmul.f32 %v6410_v43, %v2057_v49  ;;  %v6655_v8 = vld [vmem:[#allocation2 + $0x69] sm:$0xff] }
 0x2e2   : > { %v2216_v0 = vmul.f32 %v6162_v36, %v2056_v57  ;;  %v8219_v36 = vld [vmem:[#allocation39_spill] sm:$0xff] }
 0x2e3   : > { %v2813_v16 = vpack.c.bf16 %v2785_v37, %v2784_v33  ;;  %v8217_v33 = vld [vmem:[#allocation40_spill] sm:$0xff] }
 0x2e4   : > { %5003 = vset.pattern.permute.xlu1 %v8051_v10  ;;  %v6638_v60 = vpop.permute.xlu1 %1583  ;;  %v2498_v37 = vmul.f32 %v6655_v8, %v8217_v33  ;;  %v2240_v62 = vpack.c.bf16 %v2217_v32, %v2216_v0  ;;  %v766_v0 = vmul.f32 %v5139_v13, %v8220_v26  ;;  %v5143_v13 = vld [vmem:[#allocation2 + $0x52] sm:$0xff]  ;;  %v8225_v26 = vld [vmem:[#allocation43_spill] sm:$0xff] }
 0x2e5   : > { %8216 = vst [vmem:[#allocation36_spill] sm:$0xff] %v6638_v60  ;;  %2829 = vst.msk [vmem:[#allocation3 + $0x38] sm:$0xff] %vm223_vm0, %v2813_v16  ;;  %468 = vperm.xlu0 %5033, %v6644_v4   ;;  %1310 = vperm.xlu1 %5003, %v6568_v21   ;;  %v1192_v16 = vld [vmem:[#allocation2 + $0xa8] sm:$0xff] }
 0x2e6   : > { %v1352_v32 = vmul.f32 %v6046_v11, %v1192_v16  ;;  %v6684_v11 = vld [vmem:[#allocation2 + $0xb9] sm:$0xff]  ;;  %v2507_v16 = vmul.f32 %v6365_v39, %v6686_v47 }
 0x2e7   : > { %v778_v6 = vmul.f32 %v6684_v11, %v6561_v46 }
 0x2e8   : > { %v6649_v23 = vpop.permute.xlu1 %2557  ;;  %v1374_v33 = vpack.c.bf16 %v1352_v32, %v1351_v18  ;;  %v5142_v18 = vld [vmem:[#allocation2 + $0x5a] sm:$0xff] }
 0x2e9   : > { %473 = vperm.xlu0 %5033, %v6092_v50   ;;  %2272 = vrot.lane.b32.xlu1 %v2236_v19, %s5251_s9  ;;  %v2497_v50 = vmul.f32 %v6663_v59, %v8219_v36  ;;  %v796_v19 = vpack.c.bf16 %v774_v48, %v773_v22  ;;  %v8222_v48 = vld [vmem:[#allocation8_spill] sm:$0xff] }
 0x2ea   : > { %5004 = vset.pattern.permute.xlu1 %v8069_v27 }
 0x2eb   : > { %v2525_v49 = vpack.c.bf16 %v2498_v37, %v2497_v50  ;;  %v5140_v37 = vld [vmem:[#allocation2 + $0x51] sm:$0xff]  ;;  %v2508_v50 = vmul.f32 %v6505_v54, %v6684_v11 }
 0x2ec   : > { %v6661_v43 = vpop.permute.xlu1 %1872  ;;  %v765_v36 = vmul.f32 %v5140_v37, %v8222_v48  ;;  %v8224_v54 = vld [vmem:[#allocation52_spill] sm:$0xff]  ;;  %v6708_v37 = vld [vmem:[#allocation2 + $0xa2] sm:$0xff] }
 0x2ed   : > { %8218 = vst [vmem:[#allocation37_spill] sm:$0xff] %v6661_v43  ;;  %2280 = vrot.lane.b32.xlu0 %v2240_v62, %s5251_s9  ;;  %1599 = vperm.xlu1 %5004, %v6568_v21   ;;  %v1055_v32 = vmul.f32 %v5142_v18, %v8224_v54  ;;  %v2060_v18 = vld [vmem:[#allocation2 + $0xc0] sm:$0xff] }
 0x2ee   : > { %v792_v57 = vpack.c.bf16 %v766_v0, %v765_v36  ;;  %v1054_v0 = vmul.f32 %v5143_v13, %v8225_v26  ;;  %v1064_v36 = vmul.f32 %v6708_v37, %v6413_v61  ;;  %v2627_v13 = vld [vmem:[#allocation2 + $0x6a] sm:$0xff]  ;;  %v2688_v26 = vpop.permute.xlu0 %2687 }
 0x2ef   : > { %v8226_v61 = vld [vmem:[#allocation47_spill] sm:$0xff] }
 0x2f0   : > { %v6672_v3 = vpop.permute.xlu1 %825 }
 0x2f1   : > { %837 = vrot.lane.b32.xlu0 %v796_v19, %s5248_s16  ;;  %2561 = vrot.lane.b32.xlu1 %v2525_v49, %s8025_s10  ;;  %v6697_v49 = vld [vmem:[%s7980_s1 + $0xb8] sm:$0xff]  ;;  %v6701_v19 = vld [vmem:[#allocation2 + $0xaa] sm:$0xff] }
 0x2f2   : > { %5005 = vset.pattern.permute.xlu1 %v8053_v30  ;;  %8223 = vst [vmem:[#allocation39_spill] sm:$0xff] %v6697_v49  ;;  %v1065_v39 = vmul.f32 %v6701_v19, %v6424_v52  ;;  %v1196_v52 = vld [vmem:[#allocation2 + $0xc8] sm:$0xff] }
 0x2f4   : > { %v6679_v62 = vpop.permute.xlu1 %2161 }
 0x2f5   : > { %8221 = vst [vmem:[#allocation40_spill] sm:$0xff] %v6679_v62  ;;  %1415 = vrot.lane.b32.xlu0 %v1374_v33, %s5250_s23  ;;  %1888 = vperm.xlu1 %5005, %v6568_v21   ;;  %v2530_v33 = vpack.c.bf16 %v2508_v50, %v2507_v16  ;;  %v1086_v62 = vpack.c.bf16 %v1065_v39, %v1064_v36  ;;  %v2626_v50 = vld [vmem:[#allocation2 + $0x62] sm:$0xff]  ;;  %v8227_v36 = vld [vmem:[#allocation45_spill] sm:$0xff] }
 0x2f6   : > { %v1344_v16 = vmul.f32 %v6622_v14, %v8226_v61  ;;  %v1343_v43 = vmul.f32 %v6624_v2, %v8227_v36  ;;  %v1355_v2 = vmul.f32 %v2060_v18, %v6616_v25  ;;  %v6761_v25 = vld [vmem:[%s7980_s1 + $0xe8] sm:$0xff]  ;;  %v6787_v36 = vld [vmem:[#allocation2 + $0x78] sm:$0xff] }
 0x2f8   : > { %v6690_v22 = vpop.permute.xlu1 %1114 }
 0x2f9   : > { %488 = vperm.xlu0 %5033, %v6697_v49   ;;  %829 = vrot.lane.b32.xlu1 %v792_v57, %s5248_s16  ;;  %v1081_v57 = vpack.c.bf16 %v1055_v32, %v1054_v0  ;;  %v2220_v32 = vmul.f32 %v6483_v45, %v2060_v18  ;;  %v2787_v0 = vmul.f32 %v2688_v26, %v2627_v13  ;;  %v1487_v13 = vld [vmem:[#allocation2 + $0xd9] sm:$0xff]  ;;  %v6748_v26 = vld [vmem:[#allocation2 + $0xd1] sm:$0xff] }
 0x2fa   : > { %5006 = vset.pattern.permute.xlu1 %v8055_v58 }
 0x2fc   : > { %v2451_v48 = vpop.permute.xlu1 %2450 }
 0x2fd   : > { %2571 = vrot.lane.b32.xlu0 %v2530_v33, %s8025_s10  ;;  %2177 = vperm.xlu1 %5006, %v6568_v21   ;;  %v2221_v33 = vmul.f32 %v6426_v63, %v1196_v52  ;;  %v777_v63 = vmul.f32 %v6686_v47, %v6550_v41 }
 0x300   : > { %v6714_v54 = vpop.permute.xlu1 %1403 }
 0x301   : > { %1128 = vrot.lane.b32.xlu0 %v1086_v62, %s5249_s17  ;;  %1118 = vrot.lane.b32.xlu1 %v1081_v57, %s5249_s17  ;;  %v1370_v62 = vpack.c.bf16 %v1344_v16, %v1343_v43  ;;  %v2242_v57 = vpack.c.bf16 %v2221_v33, %v2220_v32  ;;  %v1356_v43 = vmul.f32 %v6105_v9, %v1196_v52 }
 0x302   : > { %5007 = vset.pattern.permute.xlu1 %v8057_v29 }
 0x303   : > { %v1376_v46 = vpack.c.bf16 %v1356_v43, %v1355_v2  ;;  %v8235_v43 = vld [vmem:[#allocation49_spill] sm:$0xff] }
 0x304   : > { %v2684_v39 = vpop.permute.xlu1 %2683 }
 0x305   : > { %v2786_v60 = vmul.f32 %v2684_v39, %v2626_v50  ;;  %493 = vperm.xlu0 %5033, %v6402_v42   ;;  %2466 = vperm.xlu1 %5007, %v6568_v21   ;;  %v798_v42 = vpack.c.bf16 %v778_v6, %v777_v63  ;;  %v2511_v6 = vmul.f32 %v2451_v48, %v6748_v26  ;;  %v6764_v50 = vpop.permute.xlu0 %2695  ;;  %v6770_v48 = vld [vmem:[#allocation2 + $0xc2] sm:$0xff] }
 0x306   : > { %8231 = vst [vmem:[#allocation43_spill] sm:$0xff] %v6770_v48  ;;  %v8233_v63 = vld [vmem:[#allocation50_spill] sm:$0xff] }
 0x307   : > { %v2814_v14 = vpack.c.bf16 %v2787_v0, %v2786_v60  ;;  %v6746_v60 = vld [vmem:[%s7980_s1 + $0xe0] sm:$0xff] }
 0x309   : > { %2830 = vst.msk [vmem:[#allocation3 + $0x48] sm:$0xff] %vm223_vm0, %v2814_v14  ;;  %2284 = vrot.lane.b32.xlu0 %v2242_v57, %s5251_s9  ;;  %1407 = vrot.lane.b32.xlu1 %v1370_v62, %s5250_s23  ;;  %v6734_v45 = vpop.permute.xlu1 %724  ;;  %v6780_v0 = vpop.permute.xlu0 %2703  ;;  %v6795_v14 = vld [vmem:[#allocation2 + $0x70] sm:$0xff] }
 0x30a   : > { %8228 = vst [vmem:[#allocation42_spill] sm:$0xff] %v6734_v45  ;;  %5008 = vset.pattern.permute.xlu1 %v8091_v28 }
 0x30d   : > { %2699 = vperm.xlu1 %5008, %v6605_v56   ;;  %841 = vrot.lane.b32.xlu0 %v798_v42, %s5248_s16  ;;  %v6741_v41 = vpop.permute.xlu1 %728  ;;  %v2512_v56 = vmul.f32 %v6530_v15, %v1487_v13  ;;  %v6768_v15 = vld [vmem:[#allocation2 + $0xca] sm:$0xff]  ;;  %v6793_v57 = vpop.permute.xlu0 %2711  ;;  %v2211_v42 = vmul.f32 %v8233_v63, %v6787_v36 }
 0x30e   : > { %8229 = vst [vmem:[#allocation8_spill] sm:$0xff] %v6741_v41  ;;  %8230 = vst [vmem:[#allocation52_spill] sm:$0xff] %v6768_v15 }
 0x30f   : > { %v2532_v18 = vpack.c.bf16 %v2512_v56, %v2511_v6 }
 0x311   : > { %5009 = vset.pattern.permute.xlu1 %v8060_v20  ;;  %1419 = vrot.lane.b32.xlu0 %v1376_v46, %s5250_s23  ;;  %v2210_v46 = vmul.f32 %v8235_v43, %v6795_v14  ;;  %v6805_v56 = vpop.permute.xlu0 %2719 }
 0x312   : > { %740 = vperm.xlu1 %5009, %v6746_v60   ;;  %v6753_v9 = vpop.permute.xlu1 %423  ;;  %8236 = vst [vmem:[#allocation50_spill] sm:$0xff] %v6805_v56 }
 0x313   : > { %v2237_v13 = vpack.c.bf16 %v2211_v42, %v2210_v46 }
 0x315   : > { %508 = vperm.xlu0 %5033, %v6593_v1   ;;  %v6775_v1 = vld [vmem:[%s7980_s1 + $0x70] sm:$0xff] }
 0x316   : > { %744 = vperm.xlu1 %5009, %v6761_v25  }
 0x317   : > { %v1014_v52 = vpop.permute.xlu1 %1013 }
 0x318   : > { %v1068_v16 = vmul.f32 %v6770_v48, %v1014_v52  ;;  %v8237_v52 = vld [vmem:[#allocation51_spill] sm:$0xff] }
 0x319   : > { %2575 = vrot.lane.b32.xlu0 %v2532_v18, %s8025_s10  ;;  %v6811_v18 = vld [vmem:[#allocation2 + $0x79] sm:$0xff] }
 0x31a   : > { %5010 = vset.pattern.permute.xlu1 %v8062_v35 }
 0x31b   : > { %443 = vperm.xlu1 %5010, %v6775_v1   ;;  %v1018_v61 = vpop.permute.xlu1 %1017 }
 0x31c   : > { %v1069_v33 = vmul.f32 %v6768_v15, %v1018_v61  ;;  %v2500_v61 = vmul.f32 %v6811_v18, %v8237_v52  ;;  %v6830_v52 = vld [vmem:[#allocation2 + $0xe0] sm:$0xff] }
 0x31e   : > { %v1088_v32 = vpack.c.bf16 %v1069_v33, %v1068_v16  ;;  %v6817_v33 = vld [vmem:[#allocation2 + $0x71] sm:$0xff] }
 0x31f   : > { %5011 = vset.pattern.permute.xlu1 %v8064_v12 }
 0x320   : > { %1029 = vperm.xlu1 %5011, %v6746_v60   ;;  %1132 = vrot.lane.b32.xlu0 %v1088_v32, %s5249_s17  ;;  %v6785_v39 = vpop.permute.xlu1 %1302  ;;  %v8239_v32 = vld [vmem:[#allocation46_spill] sm:$0xff] }
 0x321   : > { %8232 = vst [vmem:[#allocation47_spill] sm:$0xff] %v6785_v39  ;;  %v2499_v63 = vmul.f32 %v6817_v33, %v8239_v32 }
 0x323   : > { %v2526_v43 = vpack.c.bf16 %v2500_v61, %v2499_v63  ;;  %v8243_v61 = vld [vmem:[#allocation9_spill] sm:$0xff] }
 0x324   : > { %1033 = vperm.xlu1 %5011, %v6761_v25   ;;  %v6790_v62 = vpop.permute.xlu1 %2270  ;;  %513 = vperm.xlu0 %5033, %v6746_v60   ;;  %v768_v63 = vmul.f32 %v6655_v8, %v8243_v61  ;;  %v8245_v8 = vld [vmem:[#allocation56_spill] sm:$0xff] }
 0x326   : > { %v6821_v42 = vpop.permute.xlu0 %2567 }
 0x327   : > { %8240 = vst [vmem:[#allocation51_spill] sm:$0xff] %v6821_v42 }
 0x328   : > { %5012 = vset.pattern.permute.xlu1 %v8051_v10  ;;  %v6800_v2 = vpop.permute.xlu1 %1591 }
 0x329   : > { %8234 = vst [vmem:[#allocation45_spill] sm:$0xff] %v6800_v2  ;;  %1318 = vperm.xlu1 %5012, %v6746_v60  }
 0x32a   : > { %v6836_v42 = vpop.permute.xlu0 %1124 }
 0x32b   : > { %8242 = vst [vmem:[#allocation46_spill] sm:$0xff] %v6836_v42 }
 0x32c   : > { %v6807_v6 = vpop.permute.xlu1 %2559 }
 0x32d   : > { %2274 = vrot.lane.b32.xlu1 %v2237_v13, %s5251_s9  ;;  %v6827_v13 = vld [vmem:[#allocation2 + $0xe8] sm:$0xff] }
 0x32e   : > { %5013 = vset.pattern.permute.xlu1 %v8069_v27  ;;  %v2225_v32 = vmul.f32 %v6441_v31, %v6827_v13  ;;  %v340_v31 = vld [vmem:[#allocation2 + $0x8] sm:$0xff] }
 0x330   : > { %v6815_v16 = vpop.permute.xlu1 %1880 }
 0x331   : > { %8238 = vst [vmem:[#allocation49_spill] sm:$0xff] %v6815_v16  ;;  %1607 = vperm.xlu1 %5013, %v6746_v60   ;;  %v8241_v16 = vld [vmem:[#allocation53_spill] sm:$0xff] }
 0x332   : > { %v767_v2 = vmul.f32 %v6663_v59, %v8241_v16  ;;  %v339_v59 = vld [vmem:[#allocation2] sm:$0xff]  ;;  %v5148_v16 = vld [vmem:[#allocation2 + $0x6a] sm:$0xff] }
 0x333   : > { %v1057_v61 = vmul.f32 %v5148_v16, %v8245_v8  ;;  %v8248_v8 = vld [vmem:[#allocation79_spill] sm:$0xff] }
 0x334   : > { %v6824_v46 = vpop.permute.xlu1 %827  ;;  %v793_v39 = vpack.c.bf16 %v768_v63, %v767_v2  ;;  %v5149_v2 = vld [vmem:[#allocation2 + $0x62] sm:$0xff] }
 0x335   : > { %2563 = vrot.lane.b32.xlu1 %v2526_v43, %s8025_s10 }
 0x336   : > { %5014 = vset.pattern.permute.xlu1 %v8053_v30 }
 0x338   : > { %v2170_v56 = vpop.permute.xlu1 %2169 }
 0x339   : > { %v2224_v43 = vmul.f32 %v2170_v56, %v6830_v52  ;;  %1896 = vperm.xlu1 %5014, %v6746_v60  }
 0x33b   : > { %v2244_v45 = vpack.c.bf16 %v2225_v32, %v2224_v43  ;;  %v6842_v41 = vpop.permute.xlu0 %2723  ;;  %v8247_v32 = vld [vmem:[#allocation55_spill] sm:$0xff]  ;;  %v532_v43 = vmul.f32 %v6001_v51, %v340_v31 }
 0x33c   : > { %8244 = vst [vmem:[#allocation53_spill] sm:$0xff] %v6842_v41  ;;  %v6844_v48 = vpop.permute.xlu1 %1116  ;;  %v1056_v63 = vmul.f32 %v5149_v2, %v8247_v32  ;;  %v8249_v51 = vld [vmem:[#allocation63_spill] sm:$0xff]  ;;  %v8251_v32 = vld [vmem:[#allocation57_spill] sm:$0xff] }
 0x33d   : > { %831 = vrot.lane.b32.xlu1 %v793_v39, %s5248_s16  ;;  %2288 = vrot.lane.b32.xlu0 %v2244_v45, %s5251_s9  ;;  %v342_v39 = vld [vmem:[#allocation2 + $0x18] sm:$0xff]  ;;  %v341_v45 = vld [vmem:[#allocation2 + $0x10] sm:$0xff]  ;;  %v1345_v31 = vmul.f32 %v8249_v51, %v6795_v14  ;;  %v8253_v14 = vld [vmem:[#allocation10_spill] sm:$0xff] }
 0x33e   : > { %5015 = vset.pattern.permute.xlu1 %v8055_v58  ;;  %v1082_v15 = vpack.c.bf16 %v1057_v61, %v1056_v63  ;;  %v8250_v61 = vld [vmem:[#allocation89_spill] sm:$0xff]  ;;  %v1346_v63 = vmul.f32 %v6787_v36, %v8251_v32  ;;  %v8255_v51 = vld [vmem:[#allocation66_spill] sm:$0xff]  ;;  %v345_v36 = vld [vmem:[#allocation2 + $0x30] sm:$0xff] }
 0x340   : > { %v374_v56 = vpop.permute.xlu0 %373  ;;  %v6850_v42 = vpop.permute.xlu1 %2458  ;;  %v1371_v32 = vpack.c.bf16 %v1346_v63, %v1345_v31 }
 0x341   : > { %8246 = vst [vmem:[#allocation9_spill] sm:$0xff] %v6850_v42  ;;  %v531_v41 = vmul.f32 %v374_v56, %v339_v59  ;;  %2185 = vperm.xlu1 %5015, %v6746_v60   ;;  %v534_v42 = vmul.f32 %v8248_v8, %v342_v39  ;;  %v343_v59 = vld [vmem:[#allocation2 + $0x20] sm:$0xff]  ;;  %v2628_v56 = vld [vmem:[#allocation2 + $0x72] sm:$0xff] }
 0x343   : > { %v563_v40 = vpack.c.bf16 %v532_v43, %v531_v41  ;;  %v344_v41 = vld [vmem:[#allocation2 + $0x28] sm:$0xff] }
 0x344   : > { %v384_v49 = vpop.permute.xlu0 %383  ;;  %v6855_v16 = vpop.permute.xlu1 %1405 }
 0x345   : > { %579 = vst.msk [vmem:[#allocation3] sm:$0xff] %vm223_vm0, %v563_v40  ;;  %v533_v2 = vmul.f32 %v384_v49, %v341_v45  ;;  %1120 = vrot.lane.b32.xlu1 %v1082_v15, %s5249_s17  ;;  %v2789_v40 = vmul.f32 %v6764_v50, %v2629_v55  ;;  %v8252_v49 = vld [vmem:[#allocation92_spill] sm:$0xff] }
 0x346   : > { %868 = vst.msk [vmem:[#allocation3] sm:$0xff] %vm867_vm1, %v8250_v61  ;;  %5016 = vset.pattern.permute.xlu1 %v8057_v29  ;;  %v8254_v45 = vld [vmem:[#allocation96_spill] sm:$0xff] }
 0x347   : > { %1157 = vst.msk [vmem:[#allocation3] sm:$0xff] %vm1156_vm2, %v8252_v49  ;;  %v564_v15 = vpack.c.bf16 %v534_v42, %v533_v2  ;;  %v535_v8 = vmul.f32 %v8254_v45, %v343_v59  ;;  %v8256_v42 = vld [vmem:[#allocation68_spill] sm:$0xff]  ;;  %v8258_v59 = vld [vmem:[#allocation103_spill] sm:$0xff] }
 0x348   : > { %1446 = vst.msk [vmem:[#allocation3] sm:$0xff] %vm1445_vm3, %v8253_v14  ;;  %v399_v43 = vpop.permute.xlu0 %398  ;;  %v2692_v39 = vpop.permute.xlu1 %2691  ;;  %v8257_v2 = vld [vmem:[#allocation24_spill] sm:$0xff]  ;;  %v8263_v45 = vld [vmem:[#allocation71_spill] sm:$0xff] }
 0x349   : > { %1735 = vst.msk [vmem:[#allocation3] sm:$0xff] %vm1734_vm4, %v8255_v51  ;;  %v536_v55 = vmul.f32 %v399_v43, %v344_v41  ;;  %v2788_v50 = vmul.f32 %v2692_v39, %v2628_v56  ;;  %2474 = vperm.xlu1 %5016, %v6746_v60   ;;  %v346_v61 = vld [vmem:[#allocation2 + $0x38] sm:$0xff]  ;;  %v8261_v60 = vld [vmem:[#allocation15_spill] sm:$0xff]  ;;  %v8262_v43 = vld [vmem:[#allocation114_spill] sm:$0xff] }
 0x34a   : > { %580 = vst.msk [vmem:[#allocation3 + $0x10] sm:$0xff] %vm223_vm0, %v564_v15  ;;  %v8259_v49 = vld [vmem:[#allocation108_spill] sm:$0xff]  ;;  %v8260_v56 = vld [vmem:[#allocation17_spill] sm:$0xff]  ;;  %v537_v39 = vmul.f32 %v8262_v43, %v345_v36  ;;  %v8266_v51 = vld [vmem:[#allocation118_spill] sm:$0xff] }
 0x34b   : > { %2024 = vst.msk [vmem:[#allocation3] sm:$0xff] %vm8029_vm5, %v8256_v42  ;;  %v565_v15 = vpack.c.bf16 %v536_v55, %v535_v8  ;;  %v2815_v41 = vpack.c.bf16 %v2789_v40, %v2788_v50  ;;  %v8264_v40 = vld [vmem:[#allocation73_spill] sm:$0xff]  ;;  %v8267_v36 = vld [vmem:[#allocation119_spill] sm:$0xff] }
 0x34c   : > { %869 = vst.msk [vmem:[#allocation3 + $0x10] sm:$0xff] %vm867_vm1, %v8257_v2  ;;  %v409_v14 = vpop.permute.xlu0 %408  ;;  %v8265_v8 = vld [vmem:[#allocation33_spill] sm:$0xff]  ;;  %v352_v43 = vld [vmem:[#allocation2 + $0x68] sm:$0xff] }
 0x34d   : > { %2313 = vst.msk [vmem:[#allocation3] sm:$0xff] %vm8028_vm6, %v8258_v59  ;;  %v538_v31 = vmul.f32 %v409_v14, %v346_v61  ;;  %1409 = vrot.lane.b32.xlu1 %v1371_v32, %s5250_s23  ;;  %v733_v63 = vpop.permute.xlu1 %732  ;;  %v622_v50 = vld [vmem:[#allocation2 + $0xd9] sm:$0xff]  ;;  %v8269_v32 = vld [vmem:[#allocation75_spill] sm:$0xff] }
 0x34e   : > { %1158 = vst.msk [vmem:[#allocation3 + $0x10] sm:$0xff] %vm1156_vm2, %v8259_v49  ;;  %5017 = vset.pattern.permute.xlu1 %v8091_v28  ;;  %v8268_v2 = vld [vmem:[#allocation105_spill] sm:$0xff]  ;;  %v349_v49 = vld [vmem:[#allocation2 + $0x50] sm:$0xff] }
 0x34f   : > { %2602 = vst.msk [vmem:[#allocation3] sm:$0xff] %vm8027_vm7, %v8260_v56  ;;  %v566_v55 = vpack.c.bf16 %v538_v31, %v537_v39  ;;  %v539_v61 = vmul.f32 %v6577_v5, %v8268_v2  ;;  %v6927_v56 = vld [vmem:[%s7980_s1 + $0xf0] sm:$0xff]  ;;  %v8275_v2 = vld [vmem:[#allocation90_spill] sm:$0xff] }
 0x350   : > { %1447 = vst.msk [vmem:[#allocation3 + $0x10] sm:$0xff] %vm1445_vm3, %v8261_v60  ;;  %v419_v42 = vpop.permute.xlu0 %418  ;;  %v541_v60 = vmul.f32 %v6753_v9, %v349_v49 }
 0x351   : > { %1736 = vst.msk [vmem:[#allocation3 + $0x10] sm:$0xff] %vm1734_vm4, %v8263_v45  ;;  %v540_v59 = vmul.f32 %v419_v42, %v6585_v53  ;;  %2707 = vperm.xlu1 %5017, %v6775_v1   ;;  %v8273_v45 = vld [vmem:[#allocation85_spill] sm:$0xff] }
 0x352   : > { %581 = vst.msk [vmem:[#allocation3 + $0x20] sm:$0xff] %vm223_vm0, %v565_v15  ;;  %2831 = vst.msk [vmem:[#allocation3 + $0x58] sm:$0xff] %vm223_vm0, %v2815_v41  ;;  %v8270_v15 = vld [vmem:[#allocation78_spill] sm:$0xff]  ;;  %v350_v41 = vld [vmem:[#allocation2 + $0x58] sm:$0xff] }
 0x353   : > { %2025 = vst.msk [vmem:[#allocation3 + $0x10] sm:$0xff] %vm8029_vm5, %v8264_v40  ;;  %v567_v53 = vpack.c.bf16 %v540_v59, %v539_v61  ;;  %v8274_v40 = vld [vmem:[#allocation88_spill] sm:$0xff]  ;;  %v2849_v42 = vld [vmem:[#allocation3 + $0x38] sm:$0xff]  ;;  %v1360_v61 = vmul.f32 %v8275_v2, %v6827_v13 }
 0x354   : > { %870 = vst.msk [vmem:[#allocation3 + $0x20] sm:$0xff] %vm867_vm1, %v8265_v8  ;;  %v2847_v8 = vld [vmem:[#allocation3 + $0x28] sm:$0xff] }
 0x355   : > { %2314 = vst.msk [vmem:[#allocation3 + $0x10] sm:$0xff] %vm8028_vm6, %v8266_v51  ;;  %5018 = vset.pattern.permute.xlu1 %v8060_v20  ;;  %v6972_v51 = vld [vmem:[%s7980_s1 + $0x80] sm:$0xff] }
 0x356   : > { %1159 = vst.msk [vmem:[#allocation3 + $0x20] sm:$0xff] %vm1156_vm2, %v6497_v34  ;;  %v737_v34 = vpop.permute.xlu1 %736  ;;  %v2842_v1 = vld [vmem:[#allocation3] sm:$0xff]  ;;  %748 = vperm.xlu1 %5018, %v6927_v56  }
 0x357   : > { %2603 = vst.msk [vmem:[#allocation3 + $0x10] sm:$0xff] %vm8027_vm7, %v8267_v36  ;;  %v782_v5 = vmul.f32 %v737_v34, %v622_v50  ;;  %3027 = vmatmul.mubr.bf16.vlgmr.msra.gmra.mrb[0].mxu0 %v2842_v1  ;;  %v6983_v34 = vld [vmem:[#allocation2 + $0x88] sm:$0xff]  ;;  %v2851_v1 = vld [vmem:[#allocation3 + $0x48] sm:$0xff] }
 0x358   : > { %1448 = vst.msk [vmem:[#allocation3 + $0x20] sm:$0xff] %vm1445_vm3, %v6521_v44  ;;  %v781_v44 = vmul.f32 %v6748_v26, %v733_v63  ;;  %v429_v26 = vpop.permute.xlu0 %428 }
 0x359   : > { %1737 = vst.msk [vmem:[#allocation3 + $0x20] sm:$0xff] %vm1734_vm4, %v8269_v32  ;;  %v542_v14 = vmul.f32 %v429_v26, %v350_v41  ;;  %v8277_v41 = vld [vmem:[#allocation38_spill] sm:$0xff] }
 0x35a   : > { %582 = vst.msk [vmem:[#allocation3 + $0x30] sm:$0xff] %vm223_vm0, %v566_v55  ;;  %583 = vst.msk [vmem:[#allocation3 + $0x40] sm:$0xff] %vm223_vm0, %v567_v53  ;;  %v434_v9 = vpop.permute.xlu1 %433  ;;  %v7000_v26 = vld [vmem:[#allocation2 + $0x81] sm:$0xff] }
 0x35b   : > { %2026 = vst.msk [vmem:[#allocation3 + $0x20] sm:$0xff] %vm8029_vm5, %v8270_v15  ;;  %v568_v39 = vpack.c.bf16 %v542_v14, %v541_v60  ;;  %v6988_v15 = vld [vmem:[#allocation2 + $0x80] sm:$0xff]  ;;  %v7005_v60 = vld [vmem:[#allocation2 + $0x89] sm:$0xff] }
 0x35c   : > { %871 = vst.msk [vmem:[#allocation3 + $0x30] sm:$0xff] %vm867_vm1, %v6672_v3  ;;  %v800_v3 = vpack.c.bf16 %v782_v5, %v781_v44  ;;  %872 = vst.msk [vmem:[#allocation3 + $0x40] sm:$0xff] %vm867_vm1, %v6824_v46  ;;  %v439_v46 = vpop.permute.xlu0 %438  ;;  %v8276_v44 = vld [vmem:[#allocation58_spill] sm:$0xff]  ;;  %v2212_v53 = vmul.f32 %v8277_v41, %v6988_v15  ;;  %v8278_v14 = vld [vmem:[#allocation59_spill] sm:$0xff] }
 0x35d   : > { %2315 = vst.msk [vmem:[#allocation3 + $0x20] sm:$0xff] %vm8028_vm6, %v6627_v7  ;;  %v2845_v7 = vld [vmem:[#allocation3 + $0x18] sm:$0xff]  ;;  %v544_v63 = vmul.f32 %v439_v46, %v352_v43  ;;  %v2213_v5 = vmul.f32 %v8276_v44, %v6983_v34 }
 0x35e   : > { %1160 = vst.msk [vmem:[#allocation3 + $0x30] sm:$0xff] %vm1156_vm2, %v6690_v22  ;;  %v8271_v22 = vld [vmem:[#allocation80_spill] sm:$0xff]  ;;  %4564 = vmatprep.mubr.msk.bf16.mxu0 %vm223_vm0, %v2845_v7  ;;  %845 = vrot.lane.b32.xlu0 %v800_v3, %s5248_s16  ;;  %1161 = vst.msk [vmem:[#allocation3 + $0x40] sm:$0xff] %vm1156_vm2, %v6844_v48  ;;  %v5156_v44 = vld [vmem:[#allocation2 + $0x7a] sm:$0xff] }
 0x35f   : > { %2604 = vst.msk [vmem:[#allocation3 + $0x20] sm:$0xff] %vm8027_vm7, %v6649_v23  ;;  %v8272_v23 = vld [vmem:[#allocation82_spill] sm:$0xff]  ;;  %v6961_v48 = vld [vmem:[%s7980_s1 + $0xf8] sm:$0xff]  ;;  %v2238_v3 = vpack.c.bf16 %v2213_v5, %v2212_v53 }
 0x360   : > { %1449 = vst.msk [vmem:[#allocation3 + $0x30] sm:$0xff] %vm1445_vm3, %v6714_v54  ;;  %v351_v54 = vld [vmem:[#allocation2 + $0x60] sm:$0xff]  ;;  %1450 = vst.msk [vmem:[#allocation3 + $0x40] sm:$0xff] %vm1445_vm3, %v6855_v16  ;;  %752 = vperm.xlu1 %5018, %v6961_v48   ;;  %v2844_v16 = vld [vmem:[#allocation3 + $0x10] sm:$0xff] }
 0x361   : > { %1738 = vst.msk [vmem:[#allocation3 + $0x30] sm:$0xff] %vm1734_vm4, %v8271_v22  ;;  %1739 = vst.msk [vmem:[#allocation3 + $0x40] sm:$0xff] %vm1734_vm4, %v8273_v45  ;;  %v543_v31 = vmul.f32 %v434_v9, %v351_v54  ;;  %3035 = vmatmul.mubr.bf16.gmra.mrb[4].mxu0 %v2844_v16  ;;  %v7010_v22 = vld [vmem:[%s7980_s1 + $0xa8] sm:$0xff]  ;;  %v8279_v9 = vld [vmem:[#allocation48_spill] sm:$0xff] }
 0x362   : > { %2027 = vst.msk [vmem:[#allocation3 + $0x30] sm:$0xff] %vm8029_vm5, %v8272_v23  ;;  %2028 = vst.msk [vmem:[#allocation3 + $0x40] sm:$0xff] %vm8029_vm5, %v8274_v40  ;;  %4565 = vmatprep.mubr.msk.bf16.mxu0 %vm223_vm0, %v2847_v8  ;;  %v2501_v23 = vmul.f32 %v8278_v14, %v7000_v26  ;;  %v2502_v43 = vmul.f32 %v8279_v9, %v7005_v60  ;;  %v7032_v40 = vld [vmem:[%s7980_s1 + $0xc8] sm:$0xff]  ;;  %v8285_v14 = vld [vmem:[#allocation65_spill] sm:$0xff] }
 0x363   : > { %2316 = vst.msk [vmem:[#allocation3 + $0x30] sm:$0xff] %vm8028_vm6, %v6790_v62  ;;  %v569_v62 = vpack.c.bf16 %v544_v63, %v543_v31  ;;  %v2853_v63 = vld [vmem:[#allocation3 + $0x58] sm:$0xff] }
 0x364   : > { %2605 = vst.msk [vmem:[#allocation3 + $0x30] sm:$0xff] %vm8027_vm7, %v6807_v6  ;;  %v6964_v6 = vpop.permute.xlu1 %1021  ;;  %5019 = vset.pattern.permute.xlu1 %v8062_v35  ;;  %v2527_v46 = vpack.c.bf16 %v2502_v43, %v2501_v23  ;;  %v8283_v5 = vld [vmem:[#allocation54_spill] sm:$0xff]  ;;  %v1348_v23 = vmul.f32 %v6983_v34, %v8285_v14  ;;  %v8286_v43 = vld [vmem:[#allocation11_spill] sm:$0xff]  ;;  %v8292_v14 = vld [vmem:[#allocation72_spill] sm:$0xff] }
 0x365   : > { %584 = vst.msk [vmem:[#allocation3 + $0x50] sm:$0xff] %vm223_vm0, %v568_v39  ;;  %585 = vst.msk [vmem:[#allocation3 + $0x60] sm:$0xff] %vm223_vm0, %v569_v62  ;;  %453 = vperm.xlu1 %5019, %v6972_v51   ;;  %v7024_v39 = vld [vmem:[%s7980_s1 + $0xb0] sm:$0xff]  ;;  %v8280_v62 = vld [vmem:[#allocation61_spill] sm:$0xff] }
 0x366   : > { %v2846_v50 = vld [vmem:[#allocation3 + $0x20] sm:$0xff]  ;;  %v770_v16 = vmul.f32 %v6811_v18, %v8280_v62  ;;  %v7051_v18 = vld [vmem:[#allocation2 + $0xf1] sm:$0xff] }
 0x368   : > { %v6975_v55 = vpop.permute.xlu1 %1025 }
 0x369   : > { %5020 = vset.pattern.permute.xlu1 %v8064_v12  ;;  %3043 = vmatmul.mubr.bf16.gmra.mrb[8].mxu0 %v2846_v50  ;;  %v8281_v50 = vld [vmem:[#allocation60_spill] sm:$0xff] }
 0x36a   : > { %1037 = vperm.xlu1 %5020, %v6927_v56   ;;  %4566 = vmatprep.mubr.msk.bf16.mxu0 %vm223_vm0, %v2849_v42 }
 0x36b   : > { %v2848_v13 = vld [vmem:[#allocation3 + $0x30] sm:$0xff] }
 0x36c   : > { %v1311_v36 = vpop.permute.xlu1 %1310 }
 0x36d   : > { %v1359_v32 = vmul.f32 %v6830_v52, %v1311_v36  ;;  %v769_v36 = vmul.f32 %v6817_v33, %v8281_v50  ;;  %v8282_v33 = vld [vmem:[#allocation62_spill] sm:$0xff] }
 0x36e   : > { %1041 = vperm.xlu1 %5020, %v6961_v48  }
 0x36f   : > { %v1378_v59 = vpack.c.bf16 %v1360_v61, %v1359_v32  ;;  %v794_v42 = vpack.c.bf16 %v770_v16, %v769_v36  ;;  %v7047_v61 = vld [vmem:[#allocation2 + $0xf9] sm:$0xff]  ;;  %v8289_v36 = vld [vmem:[#allocation67_spill] sm:$0xff] }
 0x370   : > { %v2273_v49 = vpop.permute.xlu1 %2272  ;;  %v5155_v32 = vld [vmem:[#allocation2 + $0x72] sm:$0xff] }
 0x371   : > { %2317 = vst.msk [vmem:[#allocation3 + $0x40] sm:$0xff] %vm8028_vm6, %v2273_v49  ;;  %1423 = vrot.lane.b32.xlu0 %v1378_v59, %s5250_s23  ;;  %3051 = vmatmul.mubr.bf16.gmra.mrb[12].mxu0 %v2848_v13  ;;  %v1058_v59 = vmul.f32 %v5155_v32, %v8282_v33  ;;  %v1059_v13 = vmul.f32 %v5156_v44, %v8283_v5  ;;  %v449_v33 = vpop.permute.xlu0 %448  ;;  %v8290_v44 = vld [vmem:[#allocation19_spill] sm:$0xff] }
 0x372   : > { %5021 = vset.pattern.permute.xlu1 %v8051_v10  ;;  %4567 = vmatprep.mubr.msk.bf16.mxu0 %vm223_vm0, %v2851_v1 }
 0x373   : > { %1326 = vperm.xlu1 %5021, %v6927_v56   ;;  %v1083_v53 = vpack.c.bf16 %v1059_v13, %v1058_v59  ;;  %v353_v59 = vld [vmem:[#allocation2 + $0x70] sm:$0xff] }
 0x374   : > { %v6993_v52 = vpop.permute.xlu1 %1599 }
 0x375   : > { %528 = vperm.xlu0 %5033, %v6961_v48  }
 0x377   : > { %2276 = vrot.lane.b32.xlu1 %v2238_v3, %s5251_s9  ;;  %v1766_v3 = vld [vmem:[#allocation2 + $0x8a] sm:$0xff] }
 0x378   : > { %v2562_v7 = vpop.permute.xlu1 %2561  ;;  %5023 = vset.pattern.permute.xlu1 %v8069_v27  ;;  %v2791_v9 = vmul.f32 %v6780_v0, %v1766_v3  ;;  %v8288_v0 = vld [vmem:[#allocation95_spill] sm:$0xff]  ;;  %v1926_v5 = vmul.f32 %v8290_v44, %v1766_v3 }
 0x379   : > { %2606 = vst.msk [vmem:[#allocation3 + $0x40] sm:$0xff] %vm8027_vm7, %v2562_v7  ;;  %5046 = vset.pattern.permute.xlu0 %v8091_v28  ;;  %v8284_v7 = vld [vmem:[#allocation91_spill] sm:$0xff]  ;;  %v1636_v34 = vmul.f32 %v7000_v26, %v8288_v0 }
 0x37a   : > { %2735 = vperm.xlu0 %5046, %v7010_v22  }
 0x37b   : > { %1615 = vperm.xlu1 %5023, %v6927_v56  }
 0x37c   : > { %v7016_v54 = vpop.permute.xlu1 %1888 }
 0x37e   : > { %2739 = vperm.xlu0 %5046, %v7024_v39  }
 0x37f   : > { %2565 = vrot.lane.b32.xlu1 %v2527_v46, %s8025_s10 }
 0x380   : > { %v830_v45 = vpop.permute.xlu1 %829  ;;  %v2850_v31 = vld [vmem:[#allocation3 + $0x40] sm:$0xff]  ;;  %5025 = vset.pattern.permute.xlu1 %v8053_v30 }
 0x381   : > { %873 = vst.msk [vmem:[#allocation3 + $0x50] sm:$0xff] %vm867_vm1, %v830_v45  ;;  %3059 = vmatmul.mubr.bf16.gmra.mrb[16].mxu0 %v2850_v31  ;;  %v8287_v45 = vld [vmem:[#allocation64_spill] sm:$0xff] }
 0x382   : > { %2751 = vperm.xlu0 %5046, %v7032_v40   ;;  %4568 = vmatprep.mubr.msk.bf16.mxu0 %vm223_vm0, %v2853_v63  ;;  %v1347_v31 = vmul.f32 %v6988_v15, %v8287_v45  ;;  %v7096_v45 = vld [vmem:[#allocation2 + $0xea] sm:$0xff] }
 0x383   : > { %1904 = vperm.xlu1 %5025, %v6927_v56  }
 0x384   : > { %v7039_v8 = vpop.permute.xlu1 %2177  ;;  %v1372_v62 = vpack.c.bf16 %v1348_v23, %v1347_v31 }
 0x386   : > { %2755 = vperm.xlu0 %5046, %v6568_v21   ;;  %v2516_v21 = vmul.f32 %v6553_v17, %v7047_v61  ;;  %v2630_v17 = vld [vmem:[#allocation2 + $0x82] sm:$0xff] }
 0x387   : > { %833 = vrot.lane.b32.xlu1 %v794_v42, %s5248_s16  ;;  %v1637_v42 = vmul.f32 %v7005_v60, %v8289_v36 }
 0x388   : > { %v1119_v2 = vpop.permute.xlu1 %1118  ;;  %5027 = vset.pattern.permute.xlu1 %v8055_v58 }
 0x389   : > { %1162 = vst.msk [vmem:[#allocation3 + $0x50] sm:$0xff] %vm1156_vm2, %v1119_v2  ;;  %v354_v2 = vld [vmem:[#allocation2 + $0x78] sm:$0xff]  ;;  %v1661_v32 = vpack.c.bf16 %v1637_v42, %v1636_v34 }
 0x38a   : > { %2767 = vperm.xlu0 %5046, %v6761_v25   ;;  %v8295_v42 = vld [vmem:[#allocation76_spill] sm:$0xff] }
 0x38b   : > { %2193 = vperm.xlu1 %5027, %v6927_v56  }
 0x38c   : > { %v2467_v49 = vpop.permute.xlu1 %2466 }
 0x38d   : > { %v2515_v41 = vmul.f32 %v2467_v49, %v7051_v18 }
 0x38f   : > { %v2534_v25 = vpack.c.bf16 %v2516_v21, %v2515_v41  ;;  %1122 = vrot.lane.b32.xlu1 %v1083_v53, %s5249_s17  ;;  %v546_v21 = vmul.f32 %v449_v33, %v354_v2  ;;  %v2055_v41 = vld [vmem:[#allocation2 + $0x98] sm:$0xff]  ;;  %v5157_v53 = vld [vmem:[#allocation2 + $0x82] sm:$0xff]  ;;  %v771_v2 = vmul.f32 %v7000_v26, %v8295_v42 }
 0x390   : > { %v1408_v1 = vpop.permute.xlu1 %1407  ;;  %5029 = vset.pattern.permute.xlu1 %v8057_v29  ;;  %v2215_v23 = vmul.f32 %v8292_v14, %v2055_v41  ;;  %v5159_v26 = vld [vmem:[#allocation2 + $0x91] sm:$0xff]  ;;  %v7133_v42 = vld [vmem:[#allocation2 + $0xa1] sm:$0xff] }
 0x391   : > { %1451 = vst.msk [vmem:[#allocation3 + $0x50] sm:$0xff] %vm1445_vm3, %v1408_v1  ;;  %2579 = vrot.lane.b32.xlu0 %v2534_v25, %s8025_s10  ;;  %v8291_v25 = vld [vmem:[#allocation69_spill] sm:$0xff] }
 0x392   : > { %1740 = vst.msk [vmem:[#allocation3 + $0x50] sm:$0xff] %vm1734_vm4, %v8284_v7  ;;  %v1925_v1 = vmul.f32 %v5157_v53, %v8291_v25  ;;  %v5158_v7 = vld [vmem:[%s7980_s1 + $0x90] sm:$0xff]  ;;  %v8298_v53 = vld [vmem:[#allocation97_spill] sm:$0xff] }
 0x393   : > { %2029 = vst.msk [vmem:[#allocation3 + $0x50] sm:$0xff] %vm8029_vm5, %v8286_v43  ;;  %2482 = vperm.xlu1 %5029, %v6927_v56   ;;  %v1638_v25 = vmul.f32 %v5159_v26, %v8298_v53 }
 0x394   : > { %v2700_v46 = vpop.permute.xlu1 %2699 }
 0x395   : > { %v2790_v63 = vmul.f32 %v2700_v46, %v2630_v17  ;;  %v2054_v17 = vld [vmem:[#allocation2 + $0x90] sm:$0xff]  ;;  %v8293_v46 = vld [vmem:[#allocation70_spill] sm:$0xff] }
 0x396   : > { %v2214_v3 = vmul.f32 %v8293_v46, %v2054_v17  ;;  %v7126_v46 = vld [vmem:[#allocation2 + $0xf2] sm:$0xff] }
 0x397   : > { %v2816_v16 = vpack.c.bf16 %v2791_v9, %v2790_v63  ;;  %1411 = vrot.lane.b32.xlu1 %v1372_v62, %s5250_s23  ;;  %v1950_v9 = vpack.c.bf16 %v1926_v5, %v1925_v1  ;;  %v8294_v63 = vld [vmem:[#allocation77_spill] sm:$0xff] }
 0x398   : > { %v7075_v50 = vpop.permute.xlu1 %740  ;;  %5031 = vset.pattern.permute.xlu1 %v8091_v28  ;;  %v2239_v31 = vpack.c.bf16 %v2215_v23, %v2214_v3  ;;  %v772_v62 = vmul.f32 %v7005_v60, %v8294_v63  ;;  %v8297_v60 = vld [vmem:[#allocation81_spill] sm:$0xff]  ;;  %v1767_v23 = vld [vmem:[#allocation2 + $0x92] sm:$0xff] }
 0x399   : > { %2832 = vst.msk [vmem:[#allocation3 + $0x68] sm:$0xff] %vm223_vm0, %v2816_v16  ;;  %v7101_v16 = vld [vmem:[#allocation2 + $0xe2] sm:$0xff]  ;;  %v1349_v44 = vmul.f32 %v2054_v17, %v8297_v60  ;;  %v5160_v1 = vld [vmem:[#allocation2 + $0x99] sm:$0xff] }
 0x39a   : > { %v795_v33 = vpack.c.bf16 %v772_v62, %v771_v2  ;;  %v8300_v3 = vld [vmem:[#allocation20_spill] sm:$0xff]  ;;  %v8301_v62 = vld [vmem:[#allocation87_spill] sm:$0xff] }
 0x39b   : > { %2715 = vperm.xlu1 %5031, %v6972_v51   ;;  %v1481_v2 = vld [vmem:[#allocation2 + $0xa9] sm:$0xff] }
 0x39c   : > { %v7083_v15 = vpop.permute.xlu1 %744 }
 0x39f   : > { %1700 = vrot.lane.b32.xlu1 %v1661_v32, %s5244_s11 }
 0x3a0   : > { %v444_v49 = vpop.permute.xlu1 %443  ;;  %5032 = vset.pattern.permute.xlu1 %v8062_v35 }
 0x3a1   : > { %v545_v13 = vmul.f32 %v444_v49, %v353_v59  ;;  %v8296_v59 = vld [vmem:[#allocation83_spill] sm:$0xff] }
 0x3a3   : > { %v570_v51 = vpack.c.bf16 %v546_v21, %v545_v13  ;;  %463 = vperm.xlu1 %5032, %v5158_v7   ;;  %v1350_v21 = vmul.f32 %v2055_v41, %v8296_v59 }
 0x3a4   : > { %v1030_v43 = vpop.permute.xlu1 %1029 }
 0x3a5   : > { %586 = vst.msk [vmem:[#allocation3 + $0x70] sm:$0xff] %vm223_vm0, %v570_v51  ;;  %v1072_v34 = vmul.f32 %v7101_v16, %v1030_v43  ;;  %v1373_v5 = vpack.c.bf16 %v1350_v21, %v1349_v44  ;;  %v8299_v51 = vld [vmem:[#allocation86_spill] sm:$0xff]  ;;  %v1780_v43 = vld [vmem:[#allocation2 + $0xfa] sm:$0xff] }
 0x3a6   : > { %v1639_v7 = vmul.f32 %v5160_v1, %v8299_v51  ;;  %v8303_v44 = vld [vmem:[#allocation93_spill] sm:$0xff] }
 0x3a7   : > { %1989 = vrot.lane.b32.xlu1 %v1950_v9, %s5245_s12  ;;  %v903_v9 = vld [vmem:[#allocation2 + $0x9a] sm:$0xff] }
 0x3a8   : > { %5034 = vset.pattern.permute.xlu1 %v8091_v28  ;;  %v1034_v0 = vpop.permute.xlu1 %1033  ;;  %v1662_v17 = vpack.c.bf16 %v1639_v7, %v1638_v25  ;;  %v8305_v25 = vld [vmem:[#allocation98_spill] sm:$0xff] }
 0x3a9   : > { %v1073_v36 = vmul.f32 %v1034_v0, %v7096_v45  ;;  %v1927_v0 = vmul.f32 %v8301_v62, %v1767_v23  ;;  %v1062_v1 = vmul.f32 %v1767_v23, %v8305_v25  ;;  %v1194_v25 = vld [vmem:[#allocation2 + $0xb8] sm:$0xff] }
 0x3ab   : > { %2278 = vrot.lane.b32.xlu1 %v2239_v31, %s5251_s9  ;;  %v1090_v32 = vpack.c.bf16 %v1073_v36, %v1072_v34  ;;  %v1928_v31 = vmul.f32 %v8300_v3, %v903_v9  ;;  %v8302_v34 = vld [vmem:[#allocation112_spill] sm:$0xff]  ;;  %v8307_v3 = vld [vmem:[#allocation18_spill] sm:$0xff] }
 0x3ac   : > { %v7110_v49 = vpop.permute.xlu1 %1318 }
 0x3ad   : > { %1136 = vrot.lane.b32.xlu0 %v1090_v32, %s5249_s17  ;;  %v1951_v32 = vpack.c.bf16 %v1928_v31, %v1927_v0  ;;  %v1640_v31 = vmul.f32 %v7133_v42, %v8307_v3 }
 0x3af   : > { %835 = vrot.lane.b32.xlu1 %v795_v33, %s5248_s16  ;;  %v2506_v33 = vmul.f32 %v6490_v38, %v1481_v2 }
 0x3b0   : > { %v2275_v13 = vpop.permute.xlu1 %2274 }
 0x3b1   : > { %2771 = vperm.xlu0 %5046, %v6927_v56   ;;  %2318 = vst.msk [vmem:[#allocation3 + $0x50] sm:$0xff] %vm8028_vm6, %v2275_v13  ;;  %v8304_v13 = vld [vmem:[#allocation100_spill] sm:$0xff] }
 0x3b2   : > { %v1063_v26 = vmul.f32 %v8304_v13, %v903_v9  ;;  %v8311_v13 = vld [vmem:[#allocation25_spill] sm:$0xff] }
 0x3b3   : > { %1413 = vrot.lane.b32.xlu1 %v1373_v5, %s5250_s23  ;;  %v2505_v5 = vmul.f32 %v8303_v44, %v7133_v42  ;;  %v459_v44 = vpop.permute.xlu0 %458 }
 0x3b4   : > { %v7118_v41 = vpop.permute.xlu1 %1607  ;;  %v1085_v51 = vpack.c.bf16 %v1063_v26, %v1062_v1  ;;  %v1929_v26 = vmul.f32 %v8311_v13, %v6708_v37  ;;  %v2058_v1 = vld [vmem:[#allocation2 + $0xb0] sm:$0xff] }
 0x3b5   : > { %5048 = vset.pattern.permute.xlu0 %v8060_v20  ;;  %v2529_v53 = vpack.c.bf16 %v2506_v33, %v2505_v5  ;;  %v8308_v33 = vld [vmem:[#allocation14_spill] sm:$0xff]  ;;  %v8310_v5 = vld [vmem:[#allocation13_spill] sm:$0xff]  ;;  %v8314_v37 = vld [vmem:[#allocation111_spill] sm:$0xff] }
 0x3b7   : > { %2727 = vperm.xlu1 %5034, %v6644_v4   ;;  %v1940_v4 = vmul.f32 %v8302_v34, %v1780_v43  ;;  %v5161_v34 = vld [vmem:[%s7980_s1 + $0xa0] sm:$0xff] }
 0x3b8   : > { %v2564_v14 = vpop.permute.xlu1 %2563 }
 0x3b9   : > { %2607 = vst.msk [vmem:[#allocation3 + $0x50] sm:$0xff] %vm8027_vm7, %v2564_v14  ;;  %v8306_v14 = vld [vmem:[#allocation99_spill] sm:$0xff] }
 0x3ba   : > { %v1641_v43 = vmul.f32 %v8306_v14, %v1481_v2 }
 0x3bb   : > { %1702 = vrot.lane.b32.xlu1 %v1662_v17, %s5244_s11  ;;  %v7150_v17 = vld [vmem:[#allocation2 + $0x101] sm:$0xff] }
 0x3bc   : > { %5035 = vset.pattern.permute.xlu1 %v8062_v35  ;;  %v1897_v63 = vpop.permute.xlu1 %1896 }
 0x3bd   : > { %v1939_v36 = vmul.f32 %v1897_v63, %v7126_v46  ;;  %v7155_v63 = vld [vmem:[#allocation2 + $0x109] sm:$0xff] }
 0x3be   : > { %v2518_v23 = vmul.f32 %v6563_v24, %v7155_v63  ;;  %v2632_v24 = vld [vmem:[#allocation2 + $0x92] sm:$0xff] }
 0x3bf   : > { %478 = vperm.xlu1 %5035, %v7010_v22   ;;  %v1957_v59 = vpack.c.bf16 %v1940_v4, %v1939_v36  ;;  %v2855_v22 = vld [vmem:[#allocation3 + $0x68] sm:$0xff]  ;;  %v1663_v4 = vpack.c.bf16 %v1641_v43, %v1640_v31 }
 0x3c0   : > { %v832_v21 = vpop.permute.xlu1 %831  ;;  %v2852_v60 = vld [vmem:[#allocation3 + $0x50] sm:$0xff] }
 0x3c1   : > { %874 = vst.msk [vmem:[#allocation3 + $0x60] sm:$0xff] %vm867_vm1, %v832_v21  ;;  %2003 = vrot.lane.b32.xlu0 %v1957_v59, %s5245_s12  ;;  %3067 = vmatmul.mubr.bf16.gmra.mrb[20].mxu0 %v2852_v60  ;;  %v8309_v59 = vld [vmem:[#allocation109_spill] sm:$0xff]  ;;  %v2793_v60 = vmul.f32 %v6793_v57, %v903_v9  ;;  %v7179_v57 = vpop.permute.xlu0 %468 }
 0x3c2   : > { %4569 = vmatprep.mubr.msk.bf16.mxu0 %vm223_vm0, %v2855_v22  ;;  %v1930_v21 = vmul.f32 %v8309_v59, %v6701_v19  ;;  %v8313_v19 = vld [vmem:[#allocation7_spill] sm:$0xff]  ;;  %v8317_v59 = vld [vmem:[#allocation74_spill] sm:$0xff] }
 0x3c3   : > { %1991 = vrot.lane.b32.xlu1 %v1951_v32, %s5245_s12  ;;  %v2218_v3 = vmul.f32 %v8313_v19, %v2058_v1 }
 0x3c4   : > { %5036 = vset.pattern.permute.xlu1 %v8091_v28  ;;  %v7144_v38 = vpop.permute.xlu1 %2185 }
 0x3c7   : > { %2569 = vrot.lane.b32.xlu1 %v2529_v53, %s8025_s10 }
 0x3c8   : > { %v1121_v7 = vpop.permute.xlu1 %1120 }
 0x3c9   : > { %1163 = vst.msk [vmem:[#allocation3 + $0x60] sm:$0xff] %vm1156_vm2, %v1121_v7  ;;  %v8312_v7 = vld [vmem:[#allocation115_spill] sm:$0xff] }
 0x3ca   : > { %v2219_v14 = vmul.f32 %v8312_v7, %v1194_v25  ;;  %v7206_v7 = vld [vmem:[#allocation2 + $0xfa] sm:$0xff] }
 0x3cb   : > { %1126 = vrot.lane.b32.xlu1 %v1085_v51, %s5249_s17  ;;  %v1952_v51 = vpack.c.bf16 %v1930_v21, %v1929_v26  ;;  %v1354_v21 = vmul.f32 %v8317_v59, %v1194_v25  ;;  %v8318_v26 = vld [vmem:[#allocation101_spill] sm:$0xff] }
 0x3cc   : > { %v2475_v62 = vpop.permute.xlu1 %2474  ;;  %v2241_v31 = vpack.c.bf16 %v2219_v14, %v2218_v3  ;;  %v1772_v3 = vld [vmem:[#allocation2 + $0xba] sm:$0xff] }
 0x3cd   : > { %v2517_v0 = vmul.f32 %v2475_v62, %v7150_v17  ;;  %v8315_v62 = vld [vmem:[#allocation23_spill] sm:$0xff] }
 0x3cf   : > { %2731 = vperm.xlu1 %5036, %v5161_v34   ;;  %v2535_v36 = vpack.c.bf16 %v2518_v23, %v2517_v0  ;;  %v775_v23 = vmul.f32 %v7133_v42, %v8315_v62  ;;  %v356_v34 = vld [vmem:[#allocation2 + $0x88] sm:$0xff] }
 0x3d0   : > { %v1410_v32 = vpop.permute.xlu1 %1409 }
 0x3d1   : > { %1452 = vst.msk [vmem:[#allocation3 + $0x60] sm:$0xff] %vm1445_vm3, %v1410_v32  ;;  %2581 = vrot.lane.b32.xlu0 %v2535_v36, %s8025_s10  ;;  %v8316_v36 = vld [vmem:[#allocation116_spill] sm:$0xff] }
 0x3d2   : > { %1741 = vst.msk [vmem:[#allocation3 + $0x60] sm:$0xff] %vm1734_vm4, %v8308_v33  ;;  %v1353_v32 = vmul.f32 %v2058_v1, %v8316_v36  ;;  %v7193_v33 = vpop.permute.xlu0 %473  ;;  %v8319_v1 = vld [vmem:[#allocation34_spill] sm:$0xff] }
 0x3d3   : > { %1704 = vrot.lane.b32.xlu1 %v1663_v4, %s5244_s11  ;;  %2030 = vst.msk [vmem:[#allocation3 + $0x60] sm:$0xff] %vm8029_vm5, %v8310_v5 }
 0x3d4   : > { %5037 = vset.pattern.permute.xlu1 %v8062_v35  ;;  %v2708_v22 = vpop.permute.xlu1 %2707  ;;  %v1375_v5 = vpack.c.bf16 %v1354_v21, %v1353_v32  ;;  %v8323_v21 = vld [vmem:[#allocation30_spill] sm:$0xff] }
 0x3d5   : > { %v2792_v53 = vmul.f32 %v2708_v22, %v2632_v24  ;;  %v355_v24 = vld [vmem:[#allocation2 + $0x80] sm:$0xff] }
 0x3d6   : > { %v7197_v42 = vpop.permute.xlu0 %2280 }
 0x3d7   : > { %483 = vperm.xlu1 %5037, %v7024_v39   ;;  %v2817_v43 = vpack.c.bf16 %v2793_v60, %v2792_v53  ;;  %v776_v39 = vmul.f32 %v1481_v2, %v8314_v37  ;;  %v548_v60 = vmul.f32 %v459_v44, %v356_v34  ;;  %v1643_v53 = vmul.f32 %v8318_v26, %v6684_v11  ;;  %v8320_v44 = vld [vmem:[#allocation39_spill] sm:$0xff]  ;;  %v7210_v37 = vld [vmem:[#allocation2 + $0xb2] sm:$0xff] }
 0x3d8   : > { %v7183_v9 = vpop.permute.xlu1 %748  ;;  %v8325_v26 = vld [vmem:[#allocation32_spill] sm:$0xff] }
 0x3d9   : > { %2833 = vst.msk [vmem:[#allocation3 + $0x78] sm:$0xff] %vm223_vm0, %v2817_v43  ;;  %v797_v4 = vpack.c.bf16 %v776_v39, %v775_v23  ;;  %v8322_v23 = vld [vmem:[#allocation35_spill] sm:$0xff] }
 0x3da   : > { %v7208_v43 = vpop.permute.xlu0 %837  ;;  %v1931_v34 = vmul.f32 %v8322_v23, %v7210_v37 }
 0x3db   : > { %1993 = vrot.lane.b32.xlu1 %v1952_v51, %s5245_s12  ;;  %v1642_v51 = vmul.f32 %v6686_v47, %v8319_v1 }
 0x3dc   : > { %5038 = vset.pattern.permute.xlu1 %v8091_v28 }
 0x3dd   : > { %v1664_v14 = vpack.c.bf16 %v1643_v53, %v1642_v51  ;;  %v1067_v53 = vmul.f32 %v1772_v3, %v8325_v26  ;;  %v8326_v51 = vld [vmem:[#allocation41_spill] sm:$0xff]  ;;  %v8330_v26 = vld [vmem:[#allocation52_spill] sm:$0xff] }
 0x3de   : > { %v7224_v32 = vpop.permute.xlu0 %1415 }
 0x3df   : > { %2282 = vrot.lane.b32.xlu1 %v2241_v31, %s5251_s9  ;;  %v7190_v0 = vpop.permute.xlu1 %752  ;;  %v8321_v31 = vld [vmem:[#allocation22_spill] sm:$0xff] }
 0x3e0   : > { %v1932_v62 = vmul.f32 %v8321_v31, %v1772_v3 }
 0x3e2   : > { %v1953_v59 = vpack.c.bf16 %v1932_v62, %v1931_v34  ;;  %v8329_v62 = vld [vmem:[#allocation36_spill] sm:$0xff]  ;;  %v5162_v34 = vld [vmem:[%s7980_s1 + $0xc0] sm:$0xff] }
 0x3e3   : > { %839 = vrot.lane.b32.xlu1 %v797_v4, %s5248_s16  ;;  %v7219_v4 = vld [vmem:[#allocation2 + $0xc9] sm:$0xff] }
 0x3e4   : > { %v454_v2 = vpop.permute.xlu1 %453 }
 0x3e5   : > { %v547_v22 = vmul.f32 %v454_v2, %v355_v24  ;;  %v7227_v24 = vld [vmem:[#allocation2 + $0xc1] sm:$0xff] }
 0x3e6   : > { %v1644_v23 = vmul.f32 %v7227_v24, %v8329_v62  ;;  %v1198_v62 = vld [vmem:[#allocation2 + $0xd8] sm:$0xff] }
 0x3e7   : > { %v571_v13 = vpack.c.bf16 %v548_v60, %v547_v22  ;;  %1417 = vrot.lane.b32.xlu1 %v1375_v5, %s5250_s23  ;;  %v2510_v60 = vmul.f32 %v8323_v21, %v7219_v4  ;;  %v8324_v5 = vld [vmem:[#allocation28_spill] sm:$0xff] }
 0x3e8   : > { %v2509_v22 = vmul.f32 %v8324_v5, %v7227_v24  ;;  %v2857_v5 = vld [vmem:[#allocation3 + $0x78] sm:$0xff] }
 0x3e9   : > { %587 = vst.msk [vmem:[#allocation3 + $0x80] sm:$0xff] %vm223_vm0, %v571_v13  ;;  %v1038_v25 = vpop.permute.xlu1 %1037 }
 0x3ea   : > { %v1074_v39 = vmul.f32 %v7126_v46, %v1038_v25  ;;  %v2531_v13 = vpack.c.bf16 %v2510_v60, %v2509_v22  ;;  %v1653_v25 = vmul.f32 %v8326_v51, %v7155_v63  ;;  %v8328_v63 = vld [vmem:[#allocation102_spill] sm:$0xff]  ;;  %v2071_v22 = vld [vmem:[#allocation2 + $0x118] sm:$0xff]  ;;  %v8332_v51 = vld [vmem:[#allocation43_spill] sm:$0xff] }
 0x3eb   : > { %2743 = vperm.xlu1 %5038, %v8320_v44   ;;  %v8327_v44 = vld [vmem:[#allocation31_spill] sm:$0xff]  ;;  %v1645_v3 = vmul.f32 %v8328_v63, %v7219_v4 }
 0x3ed   : > { %v1042_v19 = vpop.permute.xlu1 %1041 }
 0x3ee   : > { %v1075_v11 = vmul.f32 %v1042_v19, %v7206_v7 }
 0x3ef   : > { %1706 = vrot.lane.b32.xlu1 %v1664_v14, %s5244_s11  ;;  %v1066_v14 = vmul.f32 %v7210_v37, %v8327_v44 }
 0x3f0   : > { %v1091_v47 = vpack.c.bf16 %v1075_v11, %v1074_v39  ;;  %5039 = vset.pattern.permute.xlu1 %v8062_v35 }
 0x3f1   : > { %v1087_v39 = vpack.c.bf16 %v1067_v53, %v1066_v14  ;;  %v8331_v53 = vld [vmem:[#allocation21_spill] sm:$0xff]  ;;  %v2062_v14 = vld [vmem:[#allocation2 + $0xd0] sm:$0xff] }
 0x3f2   : > { %1138 = vrot.lane.b32.xlu0 %v1091_v47, %s5249_s17  ;;  %v7222_v36 = vpop.permute.xlu1 %1326 }
 0x3f3   : > { %498 = vperm.xlu1 %5039, %v7032_v40   ;;  %v7237_v40 = vpop.permute.xlu0 %488 }
 0x3f6   : > { %v2277_v2 = vpop.permute.xlu1 %2276 }
 0x3f7   : > { %2319 = vst.msk [vmem:[#allocation3 + $0x60] sm:$0xff] %vm8028_vm6, %v2277_v2  ;;  %1995 = vrot.lane.b32.xlu1 %v1953_v59, %s5245_s12  ;;  %v7245_v31 = vpop.permute.xlu0 %2571  ;;  %v1665_v59 = vpack.c.bf16 %v1645_v3, %v1644_v23  ;;  %v5163_v3 = vld [vmem:[%s7980_s1 + $0xd0] sm:$0xff]  ;;  %v8335_v23 = vld [vmem:[#allocation117_spill] sm:$0xff] }
 0x3f8   : > { %5040 = vset.pattern.permute.xlu1 %v8091_v28 }
 0x3fa   : > { %v1616_v1 = vpop.permute.xlu1 %1615 }
 0x3fb   : > { %v1652_v19 = vmul.f32 %v7150_v17, %v1616_v1  ;;  %2573 = vrot.lane.b32.xlu1 %v2531_v13, %s8025_s10  ;;  %v7259_v21 = vpop.permute.xlu0 %1128  ;;  %v2070_v13 = vld [vmem:[#allocation2 + $0x110] sm:$0xff]  ;;  %v1934_v1 = vmul.f32 %v8331_v53, %v8330_v26 }
 0x3fd   : > { %v1669_v11 = vpack.c.bf16 %v1653_v25, %v1652_v19  ;;  %v8333_v25 = vld [vmem:[#allocation37_spill] sm:$0xff] }
 0x3fe   : > { %v2566_v47 = vpop.permute.xlu1 %2565  ;;  %v1933_v44 = vmul.f32 %v8333_v25, %v8332_v51 }
 0x3ff   : > { %2608 = vst.msk [vmem:[#allocation3 + $0x60] sm:$0xff] %vm8027_vm7, %v2566_v47  ;;  %1130 = vrot.lane.b32.xlu1 %v1087_v39, %s5249_s17  ;;  %1716 = vrot.lane.b32.xlu0 %v1669_v11, %s5244_s11  ;;  %v8334_v39 = vld [vmem:[#allocation44_spill] sm:$0xff]  ;;  %v7270_v47 = vpop.permute.xlu0 %493 }
 0x400   : > { %v2231_v11 = vmul.f32 %v8334_v39, %v2071_v22  ;;  %v8339_v39 = vld [vmem:[#allocation47_spill] sm:$0xff] }
 0x402   : > { %v7254_v17 = vpop.permute.xlu1 %1904 }
 0x403   : > { %2747 = vperm.xlu1 %5040, %v5162_v34   ;;  %v2223_v34 = vmul.f32 %v8335_v23, %v1198_v62  ;;  %v7283_v51 = vpop.permute.xlu0 %2284 }
 0x406   : > { %v834_v60 = vpop.permute.xlu1 %833  ;;  %v2854_v2 = vld [vmem:[#allocation3 + $0x60] sm:$0xff] }
 0x407   : > { %875 = vst.msk [vmem:[#allocation3 + $0x70] sm:$0xff] %vm867_vm1, %v834_v60  ;;  %1708 = vrot.lane.b32.xlu1 %v1665_v59, %s5244_s11  ;;  %3075 = vmatmul.mubr.bf16.gmra.mrb[24].mxu0 %v2854_v2  ;;  %v1954_v59 = vpack.c.bf16 %v1934_v1, %v1933_v44  ;;  %v8336_v60 = vld [vmem:[#allocation40_spill] sm:$0xff]  ;;  %v8338_v1 = vld [vmem:[#allocation42_spill] sm:$0xff] }
 0x408   : > { %4570 = vmatprep.mubr.msk.bf16.mxu0 %vm223_vm0, %v2857_v5  ;;  %5041 = vset.pattern.permute.xlu1 %v8062_v35  ;;  %v2222_v2 = vmul.f32 %v8336_v60, %v2062_v14  ;;  %v779_v44 = vmul.f32 %v7227_v24, %v8338_v1 }
 0x40a   : > { %v2194_v19 = vpop.permute.xlu1 %2193  ;;  %v2243_v22 = vpack.c.bf16 %v2223_v34, %v2222_v2  ;;  %v5164_v2 = vld [vmem:[#allocation2 + $0xaa] sm:$0xff] }
 0x40b   : > { %v2230_v63 = vmul.f32 %v2194_v19, %v2070_v13  ;;  %503 = vperm.xlu1 %5041, %v5163_v3   ;;  %v8337_v13 = vld [vmem:[#allocation8_spill] sm:$0xff] }
 0x40c   : > { %v780_v53 = vmul.f32 %v7219_v4, %v8337_v13  ;;  %v8340_v3 = vld [vmem:[#allocation84_spill] sm:$0xff]  ;;  %v2634_v4 = vld [vmem:[#allocation2 + $0xa2] sm:$0xff] }
 0x40d   : > { %v2247_v5 = vpack.c.bf16 %v2231_v11, %v2230_v63  ;;  %v1357_v11 = vmul.f32 %v2062_v14, %v8339_v39  ;;  %v1358_v23 = vmul.f32 %v8340_v3, %v1198_v62  ;;  %v8342_v14 = vld [vmem:[#allocation104_spill] sm:$0xff]  ;;  %v8343_v62 = vld [vmem:[#allocation45_spill] sm:$0xff] }
 0x40e   : > { %v1123_v26 = vpop.permute.xlu1 %1122  ;;  %v799_v19 = vpack.c.bf16 %v780_v53, %v779_v44  ;;  %v5166_v53 = vld [vmem:[#allocation2 + $0xd1] sm:$0xff] }
 0x40f   : > { %1164 = vst.msk [vmem:[#allocation3 + $0x70] sm:$0xff] %vm1156_vm2, %v1123_v26  ;;  %1997 = vrot.lane.b32.xlu1 %v1954_v59, %s5245_s12  ;;  %2294 = vrot.lane.b32.xlu0 %v2247_v5, %s5251_s9  ;;  %v7292_v59 = vpop.permute.xlu0 %841  ;;  %v1377_v34 = vpack.c.bf16 %v1358_v23, %v1357_v11  ;;  %v8341_v5 = vld [vmem:[#allocation50_spill] sm:$0xff]  ;;  %v1646_v1 = vmul.f32 %v5166_v53, %v8343_v62  ;;  %v5167_v11 = vld [vmem:[%s7980_s1 + $0xd8] sm:$0xff]  ;;  %v357_v3 = vld [vmem:[#allocation2 + $0x90] sm:$0xff] }
 0x410   : > { %5042 = vset.pattern.permute.xlu1 %v8091_v28  ;;  %v2795_v24 = vmul.f32 %v5164_v2, %v8341_v5 }
 0x412   : > { %v7285_v25 = vpop.permute.xlu1 %2482 }
 0x413   : > { %2286 = vrot.lane.b32.xlu1 %v2243_v22, %s5251_s9  ;;  %v5165_v22 = vld [vmem:[#allocation2 + $0xd9] sm:$0xff]  ;;  %v7300_v44 = vpop.permute.xlu0 %1419 }
 0x414   : > { %v1647_v13 = vmul.f32 %v5165_v22, %v8342_v14  ;;  %v8345_v14 = vld [vmem:[#allocation49_spill] sm:$0xff] }
 0x416   : > { %v1412_v63 = vpop.permute.xlu1 %1411  ;;  %v1666_v23 = vpack.c.bf16 %v1647_v13, %v1646_v1  ;;  %v1489_v13 = vld [vmem:[#allocation2 + $0xe9] sm:$0xff]  ;;  %v7317_v1 = vld [vmem:[#allocation2 + $0xe1] sm:$0xff] }
 0x417   : > { %1453 = vst.msk [vmem:[#allocation3 + $0x70] sm:$0xff] %vm1445_vm3, %v1412_v63  ;;  %843 = vrot.lane.b32.xlu1 %v799_v19, %s5248_s16  ;;  %v358_v63 = vld [vmem:[#allocation2 + $0x98] sm:$0xff]  ;;  %v7310_v5 = vpop.permute.xlu0 %508 }
 0x41a   : > { %v2716_v60 = vpop.permute.xlu1 %2715 }
 0x41b   : > { %v2794_v26 = vmul.f32 %v2716_v60, %v2634_v4  ;;  %1421 = vrot.lane.b32.xlu1 %v1377_v34, %s5250_s23  ;;  %v550_v4 = vmul.f32 %v7179_v57, %v358_v63  ;;  %v1776_v34 = vld [vmem:[#allocation2 + $0xda] sm:$0xff]  ;;  %v7308_v60 = vld [vmem:[#allocation2 + $0xd2] sm:$0xff] }
 0x41c   : > { %v1935_v53 = vmul.f32 %v8345_v14, %v7308_v60  ;;  %v8346_v63 = vld [vmem:[#allocation29_spill] sm:$0xff] }
 0x41d   : > { %v2818_v39 = vpack.c.bf16 %v2795_v24, %v2794_v26  ;;  %v8344_v26 = vld [vmem:[#allocation16_spill] sm:$0xff] }
 0x41e   : > { %v1701_v19 = vpop.permute.xlu1 %1700  ;;  %v1936_v22 = vmul.f32 %v8344_v26, %v1776_v34  ;;  %v7331_v34 = vld [vmem:[#allocation2 + $0xda] sm:$0xff] }
 0x41f   : > { %2834 = vst.msk [vmem:[#allocation3 + $0x88] sm:$0xff] %vm223_vm0, %v2818_v39  ;;  %2759 = vperm.xlu1 %5042, %v5167_v11   ;;  %v5168_v39 = vld [vmem:[%s7980_s1 + $0xe8] sm:$0xff]  ;;  %v1071_v26 = vmul.f32 %v6975_v55, %v7331_v34 }
 0x420   : > { %1742 = vst.msk [vmem:[#allocation3 + $0x70] sm:$0xff] %vm1734_vm4, %v1701_v19  ;;  %v2514_v19 = vmul.f32 %v8346_v63, %v1489_v13  ;;  %v1955_v11 = vpack.c.bf16 %v1936_v22, %v1935_v53  ;;  %v8349_v63 = vld [vmem:[#allocation46_spill] sm:$0xff] }
 0x422   : > { %v464_v2 = vpop.permute.xlu1 %463 }
 0x423   : > { %v549_v24 = vmul.f32 %v464_v2, %v357_v3  ;;  %1710 = vrot.lane.b32.xlu1 %v1666_v23, %s5244_s11  ;;  %v8347_v3 = vld [vmem:[#allocation9_spill] sm:$0xff] }
 0x424   : > { %5043 = vset.pattern.permute.xlu1 %v8062_v35  ;;  %v2513_v23 = vmul.f32 %v8347_v3, %v7317_v1 }
 0x425   : > { %v572_v62 = vpack.c.bf16 %v550_v4, %v549_v24  ;;  %v7329_v4 = vpop.permute.xlu0 %2575  ;;  %v8348_v24 = vld [vmem:[#allocation51_spill] sm:$0xff] }
 0x426   : > { %v1990_v57 = vpop.permute.xlu1 %1989 }
 0x427   : > { %588 = vst.msk [vmem:[#allocation3 + $0x90] sm:$0xff] %vm223_vm0, %v572_v62  ;;  %518 = vperm.xlu1 %5043, %v5168_v39   ;;  %v1070_v62 = vmul.f32 %v7308_v60, %v6964_v6 }
 0x428   : > { %2031 = vst.msk [vmem:[#allocation3 + $0x70] sm:$0xff] %vm8029_vm5, %v1990_v57 }
 0x429   : > { %877 = vst.msk [vmem:[#allocation3 + $0x90] sm:$0xff] %vm867_vm1, %v7208_v43  ;;  %v2533_v43 = vpack.c.bf16 %v2514_v19, %v2513_v23  ;;  %v7344_v57 = vpop.permute.xlu0 %1132 }
 0x42a   : > { %v2279_v2 = vpop.permute.xlu1 %2278  ;;  %v7340_v22 = vpop.f32.mrb[0].mxu0 }
 0x42b   : > { %2320 = vst.msk [vmem:[#allocation3 + $0x70] sm:$0xff] %vm8028_vm6, %v2279_v2  ;;  %1999 = vrot.lane.b32.xlu1 %v1955_v11, %s5245_s12  ;;  %v3030_v14 = vpop.f32.mrb[1].mxu0  ;;  %v1089_v11 = vpack.c.bf16 %v1071_v26, %v1070_v62  ;;  %v2859_v2 = vld [vmem:[#allocation3 + $0x88] sm:$0xff]  ;;  %v8350_v62 = vld [vmem:[#allocation106_spill] sm:$0xff] }
 0x42c   : > { %2609 = vst.msk [vmem:[#allocation3 + $0x70] sm:$0xff] %vm8027_vm7, %v8348_v24  ;;  %5044 = vset.pattern.permute.xlu1 %v8091_v28  ;;  %v7347_v39 = vpop.f32.mrb[2].mxu0  ;;  %v2637_v24 = vld [vmem:[#allocation2 + $0xba] sm:$0xff] }
 0x42d   : > { %v3033_v19 = vpop.f32.mrb[3].mxu0  ;;  %v7354_v23 = vpop.permute.xlu0 %513 }
 0x42e   : > { %v836_v53 = vpop.permute.xlu1 %835  ;;  %v8351_v19 = vld [vmem:[#allocation53_spill] sm:$0xff] }
 0x42f   : > { %876 = vst.msk [vmem:[#allocation3 + $0x80] sm:$0xff] %vm867_vm1, %v836_v53  ;;  %2577 = vrot.lane.b32.xlu1 %v2533_v43, %s8025_s10  ;;  %v1648_v43 = vmul.f32 %v7317_v1, %v6993_v52  ;;  %v1202_v52 = vld [vmem:[#allocation2 + $0xf8] sm:$0xff] }
 0x430   : > { %1165 = vst.msk [vmem:[#allocation3 + $0x80] sm:$0xff] %vm1156_vm2, %v8349_v63  ;;  %v1649_v63 = vmul.f32 %v8350_v62, %v1489_v13  ;;  %v359_v13 = vld [vmem:[#allocation2 + $0xa0] sm:$0xff] }
 0x431   : > { %v7373_v29 = vpop.permute.xlu0 %2288 }
 0x432   : > { %v1414_v3 = vpop.permute.xlu1 %1413 }
 0x433   : > { %1454 = vst.msk [vmem:[#allocation3 + $0x80] sm:$0xff] %vm1445_vm3, %v1414_v3  ;;  %1134 = vrot.lane.b32.xlu1 %v1089_v11, %s5249_s17  ;;  %v2856_v6 = vld [vmem:[#allocation3 + $0x70] sm:$0xff]  ;;  %v2796_v3 = vmul.f32 %v8351_v19, %v7210_v37  ;;  %v5169_v11 = vld [vmem:[%s7980_s1 + $0xe0] sm:$0xff]  ;;  %v1778_v37 = vld [vmem:[#allocation2 + $0xea] sm:$0xff] }
 0x434   : > { %3083 = vmatmul.mubr.bf16.gmra.mrb[28].mxu0 %v2856_v6  ;;  %v7360_v14 = vpop.f32.mrb[4].mxu0 }
 0x435   : > { %4571 = vmatprep.mubr.msk.bf16.mxu0 %vm223_vm0, %v2859_v2  ;;  %v3038_v26 = vpop.f32.mrb[5].mxu0  ;;  %v1667_v2 = vpack.c.bf16 %v1649_v63, %v1648_v43  ;;  %v7382_v43 = vpop.permute.xlu0 %845  ;;  %v7386_v63 = vld [vmem:[#allocation2 + $0xf0] sm:$0xff] }
 0x436   : > { %v2728_v53 = vpop.permute.xlu1 %2727  ;;  %v7369_v6 = vpop.f32.mrb[6].mxu0  ;;  %v2226_v27 = vmul.f32 %v7039_v8, %v7386_v63 }
 0x437   : > { %v2797_v55 = vmul.f32 %v2728_v53, %v2637_v24  ;;  %2763 = vperm.xlu1 %5044, %v5169_v11   ;;  %v3041_v58 = vpop.f32.mrb[7].mxu0  ;;  %v360_v24 = vld [vmem:[#allocation2 + $0xa8] sm:$0xff]  ;;  %v551_v53 = vmul.f32 %v7193_v33, %v359_v13 }
 0x438   : > { %v1937_v58 = vmul.f32 %v7016_v54, %v7101_v16  ;;  %v8352_v11 = vld [vmem:[#allocation110_spill] sm:$0xff]  ;;  %v8353_v13 = vld [vmem:[#allocation27_spill] sm:$0xff] }
 0x439   : > { %v2819_v26 = vpack.c.bf16 %v2797_v55, %v2796_v3  ;;  %v7397_v10 = vpop.permute.xlu0 %1423 }
 0x43a   : > { %v1703_v62 = vpop.permute.xlu1 %1702 }
 0x43b   : > { %2835 = vst.msk [vmem:[#allocation3 + $0x98] sm:$0xff] %vm223_vm0, %v2819_v26  ;;  %1712 = vrot.lane.b32.xlu1 %v1667_v2, %s5244_s11  ;;  %v1938_v26 = vmul.f32 %v8352_v11, %v1778_v37  ;;  %v624_v37 = vld [vmem:[#allocation2 + $0xe9] sm:$0xff] }
 0x43c   : > { %1743 = vst.msk [vmem:[#allocation3 + $0x80] sm:$0xff] %vm1734_vm4, %v1703_v62  ;;  %5045 = vset.pattern.permute.xlu1 %v8062_v35  ;;  %v7384_v55 = vpop.f32.mrb[8].mxu0  ;;  %v2227_v35 = vmul.f32 %v8353_v13, %v1202_v52  ;;  %v8354_v13 = vld [vmem:[#allocation12_spill] sm:$0xff] }
 0x43d   : > { %v3046_v3 = vpop.f32.mrb[9].mxu0  ;;  %v1956_v30 = vpack.c.bf16 %v1938_v26, %v1937_v58  ;;  %v784_v58 = vmul.f32 %v7083_v15, %v624_v37  ;;  %v7406_v8 = vpop.permute.xlu0 %528  ;;  %v783_v26 = vmul.f32 %v7317_v1, %v7075_v50  ;;  %v2638_v1 = vld [vmem:[#allocation2 + $0xc2] sm:$0xff] }
 0x43e   : > { %v479_v19 = vpop.permute.xlu1 %478  ;;  %v7390_v62 = vpop.f32.mrb[10].mxu0 }
 0x43f   : > { %v552_v2 = vmul.f32 %v479_v19, %v360_v24  ;;  %523 = vperm.xlu1 %5045, %v6927_v56   ;;  %v3157_v33 = vpack.c.bf16 %v7390_v62, %v7384_v55  ;;  %v3049_v54 = vpop.f32.mrb[11].mxu0  ;;  %v2245_v56 = vpack.c.bf16 %v2227_v35, %v2226_v27  ;;  %v801_v15 = vpack.c.bf16 %v784_v58, %v783_v26  ;;  %v2068_v26 = vld [vmem:[#allocation2 + $0x100] sm:$0xff] }
 0x441   : > { %v573_v3 = vpack.c.bf16 %v552_v2, %v551_v53  ;;  %v2639_v2 = vld [vmem:[#allocation2 + $0xca] sm:$0xff]  ;;  %v2736_v50 = vpop.permute.xlu0 %2735 }
 0x442   : > { %v1992_v24 = vpop.permute.xlu1 %1991 }
 0x443   : > { %589 = vst.msk [vmem:[#allocation3 + $0xa0] sm:$0xff] %vm223_vm0, %v573_v3  ;;  %2001 = vrot.lane.b32.xlu1 %v1956_v30, %s5245_s12  ;;  %v1362_v3 = vmul.f32 %v8354_v13, %v1202_v52  ;;  %v1650_v52 = vmul.f32 %v7051_v18, %v7118_v41 }
 0x444   : > { %2032 = vst.msk [vmem:[#allocation3 + $0x80] sm:$0xff] %vm8029_vm5, %v1992_v24  ;;  %5047 = vset.pattern.permute.xlu1 %v8091_v28  ;;  %v7408_v19 = vpop.f32.mrb[12].mxu0  ;;  %v2799_v24 = vmul.f32 %v2736_v50, %v2639_v2  ;;  %v2228_v50 = vmul.f32 %v7144_v38, %v2068_v26 }
 0x445   : > { %2321 = vst.msk [vmem:[#allocation3 + $0x80] sm:$0xff] %vm8028_vm6, %v7197_v42  ;;  %v3054_v11 = vpop.f32.mrb[13].mxu0  ;;  %v1361_v42 = vmul.f32 %v7386_v63, %v7110_v49  ;;  %v2861_v49 = vld [vmem:[#allocation3 + $0x98] sm:$0xff] }
 0x446   : > { %v2570_v53 = vpop.permute.xlu1 %2569  ;;  %v7414_v30 = vpop.f32.mrb[14].mxu0 }
 0x447   : > { %2610 = vst.msk [vmem:[#allocation3 + $0x80] sm:$0xff] %vm8027_vm7, %v2570_v53  ;;  %2290 = vrot.lane.b32.xlu1 %v2245_v56, %s5251_s9  ;;  %v3158_v27 = vpack.c.bf16 %v7414_v30, %v7408_v19  ;;  %v3057_v35 = vpop.f32.mrb[15].mxu0  ;;  %v1379_v37 = vpack.c.bf16 %v1362_v3, %v1361_v42  ;;  %v361_v3 = vld [vmem:[#allocation2 + $0xb0] sm:$0xff] }
 0x44a   : > { %v1127_v54 = vpop.permute.xlu1 %1126 }
 0x44b   : > { %1166 = vst.msk [vmem:[#allocation3 + $0x90] sm:$0xff] %vm1156_vm2, %v1127_v54  ;;  %847 = vrot.lane.b32.xlu1 %v801_v15, %s5248_s16  ;;  %v362_v54 = vld [vmem:[#allocation2 + $0xb8] sm:$0xff] }
 0x44c   : > { %1455 = vst.msk [vmem:[#allocation3 + $0x90] sm:$0xff] %vm1445_vm3, %v7224_v32  ;;  %v8355_v32 = vld [vmem:[#allocation107_spill] sm:$0xff] }
 0x44d   : > { %v1651_v42 = vmul.f32 %v8355_v32, %v7047_v61  ;;  %v626_v61 = vld [vmem:[#allocation2 + $0xf9] sm:$0xff]  ;;  %v785_v32 = vmul.f32 %v7051_v18, %v7183_v9  ;;  %v1782_v18 = vld [vmem:[#allocation2 + $0x10a] sm:$0xff] }
 0x44e   : > { %v2732_v56 = vpop.permute.xlu1 %2731  ;;  %v2858_v58 = vld [vmem:[#allocation3 + $0x80] sm:$0xff] }
 0x44f   : > { %v2798_v53 = vmul.f32 %v2732_v56, %v2638_v1  ;;  %1425 = vrot.lane.b32.xlu1 %v1379_v37, %s5250_s23  ;;  %3091 = vmatmul.mubr.bf16.gmra.mrb[32].mxu0 %v2858_v58  ;;  %v1668_v41 = vpack.c.bf16 %v1651_v42, %v1650_v52  ;;  %v8356_v58 = vld [vmem:[#allocation120_spill] sm:$0xff]  ;;  %v786_v52 = vmul.f32 %v7190_v0, %v626_v61  ;;  %v7454_v42 = vld [vmem:[#allocation2 + $0x102] sm:$0xff] }
 0x450   : > { %4572 = vmatprep.mubr.msk.bf16.mxu0 %vm223_vm0, %v2861_v49  ;;  %v554_v49 = vmul.f32 %v7237_v40, %v362_v54  ;;  %v8359_v61 = vld [vmem:[#allocation26_spill] sm:$0xff] }
 0x451   : > { %v2820_v11 = vpack.c.bf16 %v2799_v24, %v2798_v53  ;;  %v1204_v24 = vld [vmem:[#allocation2 + $0x108] sm:$0xff]  ;;  %v802_v40 = vpack.c.bf16 %v786_v52, %v785_v32  ;;  %v5170_v32 = vld [vmem:[#allocation2 + $0xc0] sm:$0xff] }
 0x452   : > { %v1705_v35 = vpop.permute.xlu1 %1704  ;;  %v2229_v53 = vmul.f32 %v8356_v58, %v1204_v24  ;;  %v2740_v58 = vpop.permute.xlu0 %2739 }
 0x453   : > { %2836 = vst.msk [vmem:[#allocation3 + $0xa8] sm:$0xff] %vm223_vm0, %v2820_v11  ;;  %2775 = vperm.xlu1 %5047, %v6961_v48  }
 0x454   : > { %v7429_v15 = vpop.f32.mrb[16].mxu0  ;;  %1744 = vst.msk [vmem:[#allocation3 + $0x90] sm:$0xff] %vm1734_vm4, %v1705_v35  ;;  %v2246_v11 = vpack.c.bf16 %v2229_v53, %v2228_v50  ;;  %v2360_v50 = vld [vmem:[#allocation2 + $0x119] sm:$0xff] }
 0x455   : > { %v3062_v2 = vpop.f32.mrb[17].mxu0 }
 0x456   : > { %v7436_v13 = vpop.f32.mrb[18].mxu0  ;;  %v484_v56 = vpop.permute.xlu1 %483  ;;  %v8357_v2 = vld [vmem:[#allocation94_spill] sm:$0xff] }
 0x457   : > { %v3159_v1 = vpack.c.bf16 %v7436_v13, %v7429_v15  ;;  %v3065_v37 = vpop.f32.mrb[19].mxu0  ;;  %v553_v48 = vmul.f32 %v484_v56, %v361_v3  ;;  %1714 = vrot.lane.b32.xlu1 %v1668_v41, %s5244_s11  ;;  %v1364_v54 = vmul.f32 %v8357_v2, %v1204_v24  ;;  %v2359_v3 = vld [vmem:[#allocation2 + $0x111] sm:$0xff]  ;;  %v2520_v56 = vmul.f32 %v8359_v61, %v2360_v50 }
 0x458   : > { %5049 = vset.pattern.permute.xlu1 %v8060_v20  ;;  %v1363_v20 = vmul.f32 %v2068_v26, %v7222_v36  ;;  %v8358_v36 = vld [vmem:[#allocation113_spill] sm:$0xff]  ;;  %v2519_v24 = vmul.f32 %v7285_v25, %v2359_v3 }
 0x459   : > { %v574_v38 = vpack.c.bf16 %v554_v49, %v553_v48  ;;  %v1942_v26 = vmul.f32 %v8358_v36, %v1782_v18  ;;  %v2800_v49 = vmul.f32 %v2740_v58, %v7308_v60  ;;  %v366_v36 = vld [vmem:[#allocation2 + $0xd8] sm:$0xff] }
 0x45a   : > { %v1994_v35 = vpop.permute.xlu1 %1993  ;;  %v1380_v9 = vpack.c.bf16 %v1364_v54, %v1363_v20  ;;  %v2863_v53 = vld [vmem:[#allocation3 + $0xa8] sm:$0xff]  ;;  %v2536_v48 = vpack.c.bf16 %v2520_v56, %v2519_v24  ;;  %v2752_v54 = vpop.permute.xlu0 %2751 }
 0x45b   : > { %590 = vst.msk [vmem:[#allocation3 + $0xb0] sm:$0xff] %vm223_vm0, %v574_v38  ;;  %2292 = vrot.lane.b32.xlu1 %v2246_v11, %s5251_s9  ;;  %v364_v38 = vld [vmem:[#allocation2 + $0xc8] sm:$0xff] }
 0x45c   : > { %2033 = vst.msk [vmem:[#allocation3 + $0x90] sm:$0xff] %vm8029_vm5, %v1994_v35 }
 0x45d   : > { %879 = vst.msk [vmem:[#allocation3 + $0xb0] sm:$0xff] %vm867_vm1, %v7292_v59  ;;  %v1941_v59 = vmul.f32 %v7254_v17, %v7454_v42 }
 0x45e   : > { %v2283_v0 = vpop.permute.xlu1 %2282 }
 0x45f   : > { %2322 = vst.msk [vmem:[#allocation3 + $0x90] sm:$0xff] %vm8028_vm6, %v2283_v0  ;;  %849 = vrot.lane.b32.xlu1 %v802_v40, %s5248_s16  ;;  %v1958_v37 = vpack.c.bf16 %v1942_v26, %v1941_v59  ;;  %v555_v40 = vmul.f32 %v5170_v32, %v7270_v47  ;;  %v2803_v47 = vmul.f32 %v2752_v54, %v7096_v45  ;;  %v365_v26 = vld [vmem:[#allocation2 + $0xd0] sm:$0xff] }
 0x460   : > { %2611 = vst.msk [vmem:[#allocation3 + $0x90] sm:$0xff] %vm8027_vm7, %v7245_v31 }
 0x462   : > { %v840_v41 = vpop.permute.xlu1 %839 }
 0x463   : > { %878 = vst.msk [vmem:[#allocation3 + $0xa0] sm:$0xff] %vm867_vm1, %v840_v41  ;;  %1427 = vrot.lane.b32.xlu1 %v1380_v9, %s5250_s23 }
 0x464   : > { %1167 = vst.msk [vmem:[#allocation3 + $0xa0] sm:$0xff] %vm1156_vm2, %v7259_v21 }
 0x466   : > { %v1418_v31 = vpop.permute.xlu1 %1417 }
 0x467   : > { %1456 = vst.msk [vmem:[#allocation3 + $0xa0] sm:$0xff] %vm1445_vm3, %v1418_v31  ;;  %2005 = vrot.lane.b32.xlu1 %v1958_v37, %s5245_s12  ;;  %v2860_v17 = vld [vmem:[#allocation3 + $0x90] sm:$0xff] }
 0x468   : > { %3099 = vmatmul.mubr.bf16.gmra.mrb[36].mxu0 %v2860_v17 }
 0x469   : > { %4573 = vmatprep.mubr.msk.bf16.mxu0 %vm223_vm0, %v2863_v53 }
 0x46a   : > { %v2744_v21 = vpop.permute.xlu1 %2743 }
 0x46b   : > { %v2801_v11 = vmul.f32 %v2744_v21, %v7331_v34  ;;  %2583 = vrot.lane.b32.xlu1 %v2536_v48, %s8025_s10  ;;  %s5176_s10 = sshll.u32 %s5258_s15, 4  ;;  %s5177_s10 = int_to_ptr.vmem [resolvable:$false] %s5176_s10 }
 0x46d   : > { %v2821_v25 = vpack.c.bf16 %v2801_v11, %v2800_v49 }
 0x46e   : > { %v1707_v52 = vpop.permute.xlu1 %1706 }
 0x46f   : > { %2837 = vst.msk [vmem:[#allocation3 + $0xb8] sm:$0xff] %vm223_vm0, %v2821_v25 }
 0x470   : > { %1745 = vst.msk [vmem:[#allocation3 + $0xa0] sm:$0xff] %vm1734_vm4, %v1707_v52  ;;  %v368_v52 = vld [vmem:[#allocation2 + $0xe8] sm:$0xff] }
 0x472   : > { %v499_v35 = vpop.permute.xlu1 %498 }
 0x473   : > { %v556_v60 = vmul.f32 %v499_v35, %v364_v38  ;;  %v5171_v35 = vld [vmem:[#allocation2 + $0xe0] sm:$0xff] }
 0x474   : > { %v559_v32 = vmul.f32 %v5171_v35, %v7354_v23 }
 0x475   : > { %v575_v20 = vpack.c.bf16 %v556_v60, %v555_v40 }
 0x476   : > { %v1996_v0 = vpop.permute.xlu1 %1995  ;;  %v2865_v3 = vld [vmem:[#allocation3 + $0xb8] sm:$0xff] }
 0x477   : > { %591 = vst.msk [vmem:[#allocation3 + $0xc0] sm:$0xff] %vm223_vm0, %v575_v20 }
 0x478   : > { %2034 = vst.msk [vmem:[#allocation3 + $0xa0] sm:$0xff] %vm8029_vm5, %v1996_v0 }
 0x479   : > { %2323 = vst.msk [vmem:[#allocation3 + $0xa0] sm:$0xff] %vm8028_vm6, %v7283_v51 }
 0x47a   : > { %v2574_v34 = vpop.permute.xlu1 %2573 }
 0x47b   : > { %2612 = vst.msk [vmem:[#allocation3 + $0xa0] sm:$0xff] %vm8027_vm7, %v2574_v34 }
 0x47e   : > { %v1131_v2 = vpop.permute.xlu1 %1130 }
 0x47f   : > { %1168 = vst.msk [vmem:[#allocation3 + $0xb0] sm:$0xff] %vm1156_vm2, %v1131_v2 }
 0x480   : > { %1457 = vst.msk [vmem:[#allocation3 + $0xb0] sm:$0xff] %vm1445_vm3, %v7300_v44  ;;  %v558_v44 = vmul.f32 %v7310_v5, %v366_v36 }
 0x482   : > { %v2748_v18 = vpop.permute.xlu1 %2747  ;;  %v2862_v9 = vld [vmem:[#allocation3 + $0xa0] sm:$0xff] }
 0x483   : > { %v2802_v59 = vmul.f32 %v2748_v18, %v7101_v16  ;;  %3107 = vmatmul.mubr.bf16.gmra.mrb[40].mxu0 %v2862_v9 }
 0x484   : > { %4574 = vmatprep.mubr.msk.bf16.mxu0 %vm223_vm0, %v2865_v3 }
 0x485   : > { %v2822_v51 = vpack.c.bf16 %v2803_v47, %v2802_v59  ;;  %v370_v59 = vld [vmem:[#allocation2 + $0xf8] sm:$0xff] }
 0x486   : > { %v1709_v41 = vpop.permute.xlu1 %1708 }
 0x487   : > { %2838 = vst.msk [vmem:[#allocation3 + $0xc8] sm:$0xff] %vm223_vm0, %v2822_v51  ;;  %v562_v51 = vmul.f32 %v7406_v8, %v370_v59 }
 0x488   : > { %1746 = vst.msk [vmem:[#allocation3 + $0xb0] sm:$0xff] %vm1734_vm4, %v1709_v41 }
 0x48a   : > { %v504_v50 = vpop.permute.xlu1 %503 }
 0x48b   : > { %v557_v45 = vmul.f32 %v504_v50, %v365_v26 }
 0x48d   : > { %v576_v37 = vpack.c.bf16 %v558_v44, %v557_v45  ;;  %v2648_v45 = vld [vmem:[#allocation2 + $0x112] sm:$0xff] }
 0x48e   : > { %v1998_v24 = vpop.permute.xlu1 %1997  ;;  %v2867_v49 = vld [vmem:[#allocation3 + $0xc8] sm:$0xff] }
 0x48f   : > { %592 = vst.msk [vmem:[#allocation3 + $0xd0] sm:$0xff] %vm223_vm0, %v576_v37 }
 0x490   : > { %2035 = vst.msk [vmem:[#allocation3 + $0xb0] sm:$0xff] %vm8029_vm5, %v1998_v24  ;;  %v2649_v24 = vld [vmem:[#allocation2 + $0x11a] sm:$0xff] }
 0x491   : > { %881 = vst.msk [vmem:[#allocation3 + $0xd0] sm:$0xff] %vm867_vm1, %v7382_v43 }
 0x492   : > { %v2287_v16 = vpop.permute.xlu1 %2286 }
 0x493   : > { %2324 = vst.msk [vmem:[#allocation3 + $0xb0] sm:$0xff] %vm8028_vm6, %v2287_v16 }
 0x494   : > { %2613 = vst.msk [vmem:[#allocation3 + $0xb0] sm:$0xff] %vm8027_vm7, %v7329_v4  ;;  %v7501_v5 = vpop.f32.mrb[20].mxu0  ;;  %v2756_v4 = vpop.permute.xlu0 %2755 }
 0x495   : > { %v3070_v61 = vpop.f32.mrb[21].mxu0  ;;  %v2804_v48 = vmul.f32 %v2756_v4, %v7126_v46 }
 0x496   : > { %v844_v31 = vpop.permute.xlu1 %843  ;;  %v7505_v56 = vpop.f32.mrb[22].mxu0 }
 0x497   : > { %880 = vst.msk [vmem:[#allocation3 + $0xc0] sm:$0xff] %vm867_vm1, %v844_v31  ;;  %v3160_v43 = vpack.c.bf16 %v7505_v56, %v7501_v5  ;;  %v3073_v17 = vpop.f32.mrb[23].mxu0  ;;  %v5072_v5 = vld [vmem:[%s7981_s2] ss:$8 sps:$4 sm:$0xff]   ;;  %v5075_v56 = vld [vmem:[%s7981_s2 + $0x14] ss:$8 sps:$4 sm:$0xff]  }
 0x498   : > { %1169 = vst.msk [vmem:[#allocation3 + $0xc0] sm:$0xff] %vm1156_vm2, %v7344_v57  ;;  %v2768_v34 = vpop.permute.xlu0 %2767 }
 0x49a   : > { %v1422_v58 = vpop.permute.xlu1 %1421 }
 0x49b   : > { %1458 = vst.msk [vmem:[#allocation3 + $0xc0] sm:$0xff] %vm1445_vm3, %v1422_v58  ;;  %v2864_v53 = vld [vmem:[#allocation3 + $0xb0] sm:$0xff] }
 0x49c   : > { %3115 = vmatmul.mubr.bf16.gmra.mrb[44].mxu0 %v2864_v53  ;;  %v2580_v26 = vpop.permute.xlu0 %2579 }
 0x49d   : > { %4575 = vmatprep.mubr.msk.bf16.mxu0 %vm223_vm0, %v2867_v49 }
 0x49e   : > { %v2760_v21 = vpop.permute.xlu1 %2759 }
 0x49f   : > { %v2805_v57 = vmul.f32 %v2760_v21, %v7206_v7  ;;  %v2647_v7 = vld [vmem:[#allocation2 + $0x10a] sm:$0xff] }
 0x4a0   : > { %v2807_v23 = vmul.f32 %v2768_v34, %v2647_v7  ;;  %v1137_v44 = vpop.permute.xlu0 %1136 }
 0x4a1   : > { %v2823_v11 = vpack.c.bf16 %v2805_v57, %v2804_v48 }
 0x4a2   : > { %v1711_v25 = vpop.permute.xlu1 %1710 }
 0x4a3   : > { %2839 = vst.msk [vmem:[#allocation3 + $0xd8] sm:$0xff] %vm223_vm0, %v2823_v11 }
 0x4a4   : > { %1747 = vst.msk [vmem:[#allocation3 + $0xc0] sm:$0xff] %vm1734_vm4, %v1711_v25  ;;  %v2772_v16 = vpop.permute.xlu0 %2771 }
 0x4a5   : > { %v2808_v61 = vmul.f32 %v2772_v16, %v2648_v45 }
 0x4a6   : > { %v519_v38 = vpop.permute.xlu1 %518 }
 0x4a7   : > { %v560_v40 = vmul.f32 %v519_v38, %v368_v52 }
 0x4a8   : > { %v2004_v4 = vpop.permute.xlu0 %2003 }
 0x4a9   : > { %v577_v60 = vpack.c.bf16 %v560_v40, %v559_v32 }
 0x4aa   : > { %v2000_v20 = vpop.permute.xlu1 %1999  ;;  %v2869_v18 = vld [vmem:[#allocation3 + $0xd8] sm:$0xff] }
 0x4ab   : > { %593 = vst.msk [vmem:[#allocation3 + $0xe0] sm:$0xff] %vm223_vm0, %v577_v60 }
 0x4ac   : > { %2036 = vst.msk [vmem:[#allocation3 + $0xc0] sm:$0xff] %vm8029_vm5, %v2000_v20  ;;  %v2582_v21 = vpop.permute.xlu0 %2581 }
 0x4ad   : > { %2325 = vst.msk [vmem:[#allocation3 + $0xc0] sm:$0xff] %vm8028_vm6, %v7373_v29 }
 0x4ae   : > { %v2578_v46 = vpop.permute.xlu1 %2577 }
 0x4af   : > { %2614 = vst.msk [vmem:[#allocation3 + $0xc0] sm:$0xff] %vm8027_vm7, %v2578_v46 }
 0x4b0   : > { %v1139_v35 = vpop.permute.xlu0 %1138 }
 0x4b2   : > { %v1135_v0 = vpop.permute.xlu1 %1134 }
 0x4b3   : > { %1170 = vst.msk [vmem:[#allocation3 + $0xd0] sm:$0xff] %vm1156_vm2, %v1135_v0 }
 0x4b4   : > { %1459 = vst.msk [vmem:[#allocation3 + $0xd0] sm:$0xff] %vm1445_vm3, %v7397_v10  ;;  %v1717_v40 = vpop.permute.xlu0 %1716 }
 0x4b6   : > { %v2764_v2 = vpop.permute.xlu1 %2763  ;;  %v2866_v54 = vld [vmem:[#allocation3 + $0xc0] sm:$0xff] }
 0x4b7   : > { %v2806_v47 = vmul.f32 %v2764_v2, %v7454_v42  ;;  %3123 = vmatmul.mubr.bf16.gmra.mrb[48].mxu0 %v2866_v54 }
 0x4b8   : > { %4576 = vmatprep.mubr.msk.bf16.mxu0 %vm223_vm0, %v2869_v18  ;;  %v2295_v7 = vpop.permute.xlu0 %2294 }
 0x4b9   : > { %v2824_v29 = vpack.c.bf16 %v2807_v23, %v2806_v47 }
 0x4ba   : > { %v1713_v9 = vpop.permute.xlu1 %1712 }
 0x4bb   : > { %2840 = vst.msk [vmem:[#allocation3 + $0xe8] sm:$0xff] %vm223_vm0, %v2824_v29 }
 0x4bc   : > { %1748 = vst.msk [vmem:[#allocation3 + $0xd0] sm:$0xff] %vm1734_vm4, %v1713_v9 }
 0x4be   : > { %v524_v3 = vpop.permute.xlu1 %523 }
 0x4bf   : > { %v561_v10 = vmul.f32 %v7386_v63, %v524_v3 }
 0x4c1   : > { %v578_v41 = vpack.c.bf16 %v562_v51, %v561_v10  ;;  %v8360_v10 = vpack.c.bf16 %v7347_v39, %v7340_v22 }
 0x4c2   : > { %v2002_v36 = vpop.permute.xlu1 %2001  ;;  %v2871_v37 = vld [vmem:[#allocation3 + $0xe8] sm:$0xff] }
 0x4c3   : > { %594 = vst.msk [vmem:[#allocation3 + $0xf0] sm:$0xff] %vm223_vm0, %v578_v41 }
 0x4c4   : > { %2037 = vst.msk [vmem:[#allocation3 + $0xd0] sm:$0xff] %vm8029_vm5, %v2002_v36 }
 0x4c6   : > { %v2291_v42 = vpop.permute.xlu1 %2290 }
 0x4c7   : > { %2326 = vst.msk [vmem:[#allocation3 + $0xd0] sm:$0xff] %vm8028_vm6, %v2291_v42 }
 0x4c8   : > { %2615 = vst.msk [vmem:[#allocation3 + $0xd0] sm:$0xff] %vm8027_vm7, %v2580_v26 }
 0x4ca   : > { %v848_v50 = vpop.permute.xlu1 %847 }
 0x4cb   : > { %882 = vst.msk [vmem:[#allocation3 + $0xe0] sm:$0xff] %vm867_vm1, %v848_v50 }
 0x4cc   : > { %1171 = vst.msk [vmem:[#allocation3 + $0xe0] sm:$0xff] %vm1156_vm2, %v1137_v44  ;;  %v8361_v44 = vpack.c.bf16 %v7369_v6, %v7360_v14 }
 0x4ce   : > { %v1426_v8 = vpop.permute.xlu1 %1425 }
 0x4cf   : > { %1460 = vst.msk [vmem:[#allocation3 + $0xe0] sm:$0xff] %vm1445_vm3, %v1426_v8  ;;  %v2868_v63 = vld [vmem:[#allocation3 + $0xd0] sm:$0xff]  ;;  %v5074_v8 = vld [vmem:[%s7981_s2 + $0x4] ss:$8 sps:$4 sm:$0xff]  }
 0x4d0   : > { %3131 = vmatmul.mubr.bf16.gmra.mrb[52].mxu0 %v2868_v63  ;;  %3248 = vmatprep.mubr.bf16.mxu1 %v5074_v8 }
 0x4d1   : > { %4577 = vmatprep.mubr.msk.bf16.mxu0 %vm223_vm0, %v2871_v37 }
 0x4d2   : > { %v2776_v31 = vpop.permute.xlu1 %2775 }
 0x4d3   : > { %v2809_v17 = vmul.f32 %v2776_v31, %v2649_v24 }
 0x4d5   : > { %v2825_v58 = vpack.c.bf16 %v2809_v17, %v2808_v61 }
 0x4d6   : > { %v1715_v53 = vpop.permute.xlu1 %1714 }
 0x4d7   : > { %2841 = vst.msk [vmem:[#allocation3 + $0xf8] sm:$0xff] %vm223_vm0, %v2825_v58 }
 0x4d8   : > { %1749 = vst.msk [vmem:[#allocation3 + $0xe0] sm:$0xff] %vm1734_vm4, %v1715_v53 }
 0x4d9   : > { %2038 = vst.msk [vmem:[#allocation3 + $0xe0] sm:$0xff] %vm8029_vm5, %v2004_v4 }
 0x4da   : > { %v2293_v49 = vpop.permute.xlu1 %2292  ;;  %v7541_v48 = vpop.f32.mrb[24].mxu0 }
 0x4db   : > { %2327 = vst.msk [vmem:[#allocation3 + $0xe0] sm:$0xff] %vm8028_vm6, %v2293_v49  ;;  %v3078_v57 = vpop.f32.mrb[25].mxu0 }
 0x4dc   : > { %2616 = vst.msk [vmem:[#allocation3 + $0xe0] sm:$0xff] %vm8027_vm7, %v2582_v21  ;;  %v7545_v11 = vpop.f32.mrb[26].mxu0 }
 0x4dd   : > { %v3161_v25 = vpack.c.bf16 %v7545_v11, %v7541_v48  ;;  %v3081_v52 = vpop.f32.mrb[27].mxu0  ;;  %v5077_v48 = vld [vmem:[%s7981_s2 + $0x10] ss:$8 sps:$4 sm:$0xff]   ;;  %v5078_v11 = vld [vmem:[%s7981_s2 + $0x24] ss:$8 sps:$4 sm:$0xff]  }
 0x4de   : > { %v850_v38 = vpop.permute.xlu1 %849  ;;  %v2873_v20 = vld [vmem:[#allocation3 + $0xf8] sm:$0xff] }
 0x4df   : > { %883 = vst.msk [vmem:[#allocation3 + $0xf0] sm:$0xff] %vm867_vm1, %v850_v38 }
 0x4e0   : > { %1172 = vst.msk [vmem:[#allocation3 + $0xf0] sm:$0xff] %vm1156_vm2, %v1139_v35 }
 0x4e2   : > { %v1428_v32 = vpop.permute.xlu1 %1427 }
 0x4e3   : > { %1461 = vst.msk [vmem:[#allocation3 + $0xf0] sm:$0xff] %vm1445_vm3, %v1428_v32  ;;  %v2870_v60 = vld [vmem:[#allocation3 + $0xe0] sm:$0xff]  ;;  %v5081_v32 = vld [vmem:[%s7981_s2 + $0x34] ss:$8 sps:$4 sm:$0xff]  }
 0x4e4   : > { %1750 = vst.msk [vmem:[#allocation3 + $0xf0] sm:$0xff] %vm1734_vm4, %v1717_v40  ;;  %3139 = vmatmul.mubr.bf16.gmra.mrb[56].mxu0 %v2870_v60  ;;  %v5083_v40 = vld [vmem:[%s7981_s2 + $0x30] ss:$8 sps:$4 sm:$0xff]  }
 0x4e5   : > { %4578 = vmatprep.mubr.msk.bf16.mxu0 %vm223_vm0, %v2873_v20  ;;  %v4579_v20 = vld [vmem:[%s7983_s4] ss:$0 sm:$0xff] }
 0x4e6   : > { %v2006_v46 = vpop.permute.xlu1 %2005 }
 0x4e7   : > { %2039 = vst.msk [vmem:[#allocation3 + $0xf0] sm:$0xff] %vm8029_vm5, %v2006_v46  ;;  %vm3623_vm5 = vcmask 589312  }
 0x4e8   : > { %2328 = vst.msk [vmem:[#allocation3 + $0xf0] sm:$0xff] %vm8028_vm6, %v2295_v7  ;;  %vm3604_vm6 = vcmask 523712  }
 0x4ea   : > { %v2584_v0 = vpop.permute.xlu1 %2583 }
 0x4eb   : > { %2617 = vst.msk [vmem:[#allocation3 + $0xf0] sm:$0xff] %vm8027_vm7, %v2584_v0  ;;  %vm3585_vm7 = vcmask 458112  }
 0x4f2   : > { %v2872_v34 = vld [vmem:[#allocation3 + $0xf0] sm:$0xff] }
 0x4f3   : > { %3147 = vmatmul.mubr.bf16.gmra.mrb[60].mxu0 %v2872_v34 }
 0x507   : > { %v7557_v23 = vpop.f32.mrb[28].mxu0 }
 0x508   : > { %v3086_v2 = vpop.f32.mrb[29].mxu0 }
 0x509   : > { %v3087_v54 = vpop.f32.mrb[30].mxu0 }
 0x50a   : > { %v3162_v47 = vpack.c.bf16 %v3087_v54, %v7557_v23  ;;  %v3089_v18 = vpop.f32.mrb[31].mxu0 }
 0x522   : > { %v3092_v29 = vpop.f32.mrb[32].mxu0 }
 0x523   : > { %v3094_v9 = vpop.f32.mrb[33].mxu0 }
 0x524   : > { %v3095_v59 = vpop.f32.mrb[34].mxu0 }
 0x525   : > { %v3097_v3 = vpop.f32.mrb[35].mxu0  ;;  %v3163_v51 = vpack.c.bf16 %v3095_v59, %v3092_v29 }
 0x527   : > { %4641 = vmatprep.subr.bf16.mxu1 %v3163_v51 }
 0x528   : > { %4642 = vmatpush3.bf16.msra.mxu1 %v8360_v10 }
 0x53b   : > { %v3100_v41 = vpop.f32.mrb[36].mxu0 }
 0x53c   : > { %v3102_v36 = vpop.f32.mrb[37].mxu0 }
 0x53d   : > { %v3103_v42 = vpop.f32.mrb[38].mxu0 }
 0x53e   : > { %v3164_v26 = vpack.c.bf16 %v3103_v42, %v3100_v41  ;;  %v3105_v50 = vpop.f32.mrb[39].mxu0 }
 0x540   : > { %4643 = vmatprep.subr.bf16.mxu1 %v3164_v26 }
 0x541   : > { %4644 = vmatpush3.bf16.msra.mxu1 %v8361_v44 }
 0x556   : > { %v3108_v63 = vpop.f32.mrb[40].mxu0 }
 0x557   : > { %v3110_v45 = vpop.f32.mrb[41].mxu0 }
 0x558   : > { %v3111_v37 = vpop.f32.mrb[42].mxu0 }
 0x559   : > { %v3165_v22 = vpack.c.bf16 %v3111_v37, %v3108_v63  ;;  %v3113_v39 = vpop.f32.mrb[43].mxu0 }
 0x55b   : > { %4645 = vmatprep.subr.bf16.mxu1 %v3165_v22 }
 0x55c   : > { %4646 = vmatpush3.bf16.msra.mxu1 %v3157_v33 }
 0x56f   : > { %v3116_v24 = vpop.f32.mrb[44].mxu0 }
 0x570   : > { %v3118_v16 = vpop.f32.mrb[45].mxu0 }
 0x571   : > { %v3119_v31 = vpop.f32.mrb[46].mxu0 }
 0x572   : > { %v3166_v14 = vpack.c.bf16 %v3119_v31, %v3116_v24  ;;  %v3121_v6 = vpop.f32.mrb[47].mxu0 }
 0x574   : > { %4647 = vmatprep.subr.bf16.mxu1 %v3166_v14 }
 0x575   : > { %4648 = vmatpush3.bf16.msra.mxu1 %v3158_v27 }
 0x58a   : > { %v3124_v61 = vpop.f32.mrb[48].mxu0 }
 0x58b   : > { %v3126_v17 = vpop.f32.mrb[49].mxu0 }
 0x58c   : > { %v3127_v58 = vpop.f32.mrb[50].mxu0 }
 0x58d   : > { %v3167_v53 = vpack.c.bf16 %v3127_v58, %v3124_v61  ;;  %v3129_v4 = vpop.f32.mrb[51].mxu0 }
 0x58f   : > { %4649 = vmatprep.subr.bf16.mxu1 %v3167_v53 }
 0x590   : > { %4650 = vmatpush3.bf16.msra.mxu1 %v3159_v1 }
 0x5a3   : > { %v3132_v55 = vpop.f32.mrb[52].mxu0 }
 0x5a4   : > { %v3134_v62 = vpop.f32.mrb[53].mxu0 }
 0x5a5   : > { %v3135_v33 = vpop.f32.mrb[54].mxu0 }
 0x5a6   : > { %v3168_v49 = vpack.c.bf16 %v3135_v33, %v3132_v55  ;;  %v3137_v21 = vpop.f32.mrb[55].mxu0 }
 0x5a8   : > { %4651 = vmatprep.subr.bf16.mxu1 %v3168_v49 }
 0x5a9   : > { %4652 = vmatpush3.bf16.msra.mxu1 %v3160_v43  ;;  %v8362_v43 = vmov 0.0  }
 0x5aa   : > { %4778 = vmatprep.mubr.msk.bf16.mxu0 %vm5253_vm8, %v8362_v43 }
 0x5b7   : > { %v3140_v19 = vpop.f32.mrb[56].mxu0 }
 0x5b8   : > { %v3142_v30 = vpop.f32.mrb[57].mxu0 }
 0x5b9   : > { %v3143_v27 = vpop.f32.mrb[58].mxu0 }
 0x5ba   : > { %v3169_v57 = vpack.c.bf16 %v3143_v27, %v3140_v19  ;;  %v3145_v52 = vpop.f32.mrb[59].mxu0 }
 0x5bc   : > { %4653 = vmatprep.subr.bf16.mxu1 %v3169_v57 }
 0x5bd   : > { %4654 = vmatpush3.bf16.msra.mxu1 %v3161_v25  ;;  %v5080_v25 = vld [vmem:[%s7981_s2 + $0x20] ss:$8 sps:$4 sm:$0xff]  }
 0x5c6   : > { %v3148_v15 = vpop.f32.mrb[60].mxu0 }
 0x5c7   : > { %v3150_v13 = vpop.f32.mrb[61].mxu0 }
 0x5c8   : > { %v3151_v1 = vpop.f32.mrb[62].mxu0 }
 0x5c9   : > { %v3170_v38 = vpack.c.bf16 %v3151_v1, %v3148_v15  ;;  %v3153_v35 = vpop.f32.mrb[63].mxu0 }
 0x5cb   : > { %4655 = vmatprep.subr.bf16.mxu1 %v3170_v38 }
 0x5cc   : > { %4656 = vmatpush3.bf16.msra.mxu1 %v3162_v47 }
 0x5cd   : > { %4718 = vmatprep.subr.bf16.mxu1 %v8362_v43 }
 0x5cf   : > { %3249 = vmatmul.mubr.bf16.vlgmr.msra.gmra.mrb[0].mxu1 %v5072_v5 }
 0x5d0   : > { %3256 = vmatprep.mubr.bf16.mxu1 %v5075_v56 }
 0x5d7   : > { %3257 = vmatmul.mubr.bf16.gmra.mrb[4].mxu1 %v5077_v48 }
 0x5d8   : > { %3264 = vmatprep.mubr.bf16.mxu1 %v5078_v11 }
 0x5df   : > { %3265 = vmatmul.mubr.bf16.gmra.mrb[8].mxu1 %v5080_v25 }
 0x5e0   : > { %3272 = vmatprep.mubr.bf16.mxu1 %v5081_v32 }
 0x5e7   : > { %3273 = vmatmul.mubr.bf16.gmra.mrb[12].mxu1 %v5083_v40 }
 0x5e8   : > { %4726 = vmatprep.mubr.msk.bf16.mxu1 %vm5253_vm8, %v8362_v43 }
 0x6a2   : > { %v4657_v60 = vpop.f32.mrb[0].mxu1 }
 0x6a3   : > { %v4658_v46 = vpop.f32.mrb[1].mxu1 }
 0x6a4   : > { %v4659_v7 = vadd.f32 %v4658_v46, %v4657_v60  ;;  %v4660_v0 = vpop.f32.mrb[2].mxu1 }
 0x6a5   : > { %v4661_v34 = vpop.f32.mrb[3].mxu1 }
 0x6a6   : > { %v3251_v23 = vadd.f32 %v4659_v7, %v4579_v20  ;;  %v4662_v2 = vadd.f32 %v4661_v34, %v4660_v0  ;;  %v3322_v34 = vld [vmem:[#allocation2 + $0x40] sm:$0xff] }
 0x6a8   : > { %v3281_v54 = vmax.f32 %v3251_v23, 0.0  ;;  %v3254_v47 = vadd.f32 %v4662_v2, %v4579_v20 }
 0x6aa   : > { %3289 = vst.msk [vmem:[#allocation2] sm:$0xff] %vm223_vm0, %v3281_v54  ;;  %v3282_v18 = vmax.f32 %v3254_v47, 0.0  ;;  %v4663_v29 = vpop.f32.mrb[4].mxu1 }
 0x6ab   : > { %v4664_v9 = vpop.f32.mrb[5].mxu1 }
 0x6ac   : > { %3290 = vst.msk [vmem:[#allocation2 + $0x8] sm:$0xff] %vm223_vm0, %v3282_v18  ;;  %v4665_v59 = vadd.f32 %v4664_v9, %v4663_v29  ;;  %v4666_v3 = vpop.f32.mrb[6].mxu1 }
 0x6ad   : > { %v4667_v51 = vpop.f32.mrb[7].mxu1 }
 0x6ae   : > { %v3259_v10 = vadd.f32 %v4665_v59, %v4579_v20  ;;  %v4668_v41 = vadd.f32 %v4667_v51, %v4666_v3 }
 0x6b0   : > { %v3283_v36 = vmax.f32 %v3259_v10, 0.0  ;;  %v3262_v42 = vadd.f32 %v4668_v41, %v4579_v20  ;;  %v3331_v10 = vld [vmem:[#allocation2 + $0x41] sm:$0xff] }
 0x6b2   : > { %3291 = vst.msk [vmem:[#allocation2 + $0x10] sm:$0xff] %vm223_vm0, %v3283_v36  ;;  %v3284_v26 = vmax.f32 %v3262_v42, 0.0  ;;  %v4669_v50 = vpop.f32.mrb[8].mxu1 }
 0x6b3   : > { %v4670_v44 = vpop.f32.mrb[9].mxu1  ;;  %v3299_v37 = vld [vmem:[#allocation2 + $0x1] sm:$0xff] }
 0x6b4   : > { %3292 = vst.msk [vmem:[#allocation2 + $0x18] sm:$0xff] %vm223_vm0, %v3284_v26  ;;  %v4671_v8 = vadd.f32 %v4670_v44, %v4669_v50  ;;  %v4672_v63 = vpop.f32.mrb[10].mxu1  ;;  %v3307_v31 = vmax.f32 %v3281_v54, %v3299_v37  ;;  %v3315_v53 = vld [vmem:[#allocation2 + $0x8] sm:$0xff] }
 0x6b5   : > { %v4673_v45 = vpop.f32.mrb[11].mxu1  ;;  %v5085_v37 = vld [vmem:[%s7982_s3 + $0x48] sm:$0xff]  }
 0x6b6   : > { %v3267_v22 = vadd.f32 %v4671_v8, %v4579_v20  ;;  %v4674_v39 = vadd.f32 %v4673_v45, %v4672_v63  ;;  %v3323_v33 = vmax.f32 %v3307_v31, %v3315_v53  ;;  %v5084_v45 = vld [vmem:[%s7981_s2 + $0x40] ss:$8 sps:$4 sm:$0xff]   ;;  %v8365_v31 = vmov 5  }
 0x6b8   : > { %v3285_v24 = vmax.f32 %v3267_v22, 0.0  ;;  %v3270_v16 = vadd.f32 %v4674_v39, %v4579_v20  ;;  %v295_v22 = vld [vmem:[%s7980_s1 + $0x108] sm:$0xff]  ;;  %v294_v39 = vld [vmem:[%s7980_s1 + $0x100] sm:$0xff] }
 0x6b9   : > { %v3300_v14 = vld [vmem:[#allocation2 + $0x9] sm:$0xff]  ;;  %3480 = vperm.xlu1 %5049, %v295_v22   ;;  %3476 = vperm.xlu0 %5048, %v294_v39  }
 0x6ba   : > { %3293 = vst.msk [vmem:[#allocation2 + $0x20] sm:$0xff] %vm223_vm0, %v3285_v24  ;;  %v3286_v6 = vmax.f32 %v3270_v16, 0.0  ;;  %v4675_v61 = vpop.f32.mrb[12].mxu1  ;;  %v3308_v17 = vmax.f32 %v3282_v18, %v3300_v14  ;;  %v3316_v4 = vld [vmem:[#allocation2 + $0x10] sm:$0xff]  ;;  %v3332_v57 = vmax.f32 %v3323_v33, %v3300_v14  ;;  %v8364_v16 = vmov 4  }
 0x6bb   : > { %v4676_v58 = vpop.f32.mrb[13].mxu1  ;;  %v3301_v19 = vld [vmem:[#allocation2 + $0x11] sm:$0xff]  ;;  %v8366_v14 = vmov 7  }
 0x6bc   : > { %3294 = vst.msk [vmem:[#allocation2 + $0x28] sm:$0xff] %vm223_vm0, %v3286_v6  ;;  %v4677_v55 = vadd.f32 %v4676_v58, %v4675_v61  ;;  %v4678_v62 = vpop.f32.mrb[14].mxu1  ;;  %v3324_v49 = vmax.f32 %v3308_v17, %v3316_v4  ;;  %v3309_v38 = vmax.f32 %v3283_v36, %v3301_v19  ;;  %v3317_v48 = vld [vmem:[#allocation2 + $0x18] sm:$0xff] }
 0x6bd   : > { %v4679_v21 = vpop.f32.mrb[15].mxu1  ;;  %5050 = vset.pattern.permute.xlu1 %v8064_v12  ;;  %5051 = vset.pattern.permute.xlu0 %v8064_v12  ;;  %v8367_v12 = vmov 6  }
 0x6be   : > { %v3275_v30 = vadd.f32 %v4677_v55, %v4579_v20  ;;  %v4680_v27 = vadd.f32 %v4679_v21, %v4678_v62  ;;  %v3333_v52 = vmax.f32 %v3324_v49, %v3301_v19  ;;  %v3325_v25 = vmax.f32 %v3309_v38, %v3317_v48  ;;  %3495 = vperm.xlu1 %5050, %v294_v39  }
 0x6bf   : > { %3499 = vperm.xlu0 %5051, %v295_v22  }
 0x6c0   : > { %v3287_v15 = vmax.f32 %v3275_v30, 0.0  ;;  %v3278_v13 = vadd.f32 %v4680_v27, %v4579_v20  ;;  %v3340_v1 = vpack.c.bf16 %v3333_v52, %v3332_v57 }
 0x6c1   : > { %v3302_v35 = vld [vmem:[#allocation2 + $0x19] sm:$0xff] }
 0x6c2   : > { %3295 = vst.msk [vmem:[#allocation2 + $0x30] sm:$0xff] %vm223_vm0, %v3287_v15  ;;  %v3288_v5 = vmax.f32 %v3278_v13, 0.0  ;;  %4719 = vmatpush3.bf16.msra.mxu1 %v3340_v1  ;;  %v3310_v56 = vmax.f32 %v3284_v26, %v3302_v35  ;;  %v3318_v11 = vld [vmem:[#allocation2 + $0x20] sm:$0xff]  ;;  %v3334_v60 = vmax.f32 %v3325_v25, %v3302_v35 }
 0x6c3   : > { %4720 = vmatprep.subr.bf16.mxu1 %v8362_v43  ;;  %v3303_v40 = vld [vmem:[#allocation2 + $0x21] sm:$0xff]  ;;  %5053 = vset.pattern.permute.xlu0 %v8364_v16 }
 0x6c4   : > { %3296 = vst.msk [vmem:[#allocation2 + $0x38] sm:$0xff] %vm223_vm0, %v3288_v5  ;;  %v3326_v32 = vmax.f32 %v3310_v56, %v3318_v11  ;;  %v3311_v20 = vmax.f32 %v3285_v24, %v3303_v40  ;;  %v3319_v2 = vld [vmem:[#allocation2 + $0x28] sm:$0xff]  ;;  %v8363_v24 = vmov 3   ;;  %3533 = vperm.xlu0 %5053, %v294_v39  }
 0x6c5   : > { %5052 = vset.pattern.permute.xlu1 %v8363_v24 }
 0x6c6   : > { %v3335_v46 = vmax.f32 %v3326_v32, %v3303_v40  ;;  %v3327_v59 = vmax.f32 %v3311_v20, %v3319_v2  ;;  %3514 = vperm.xlu1 %5052, %v294_v39   ;;  %v5086_v40 = vld [vmem:[%s7982_s3 + $0x50] sm:$0xff]   ;;  %v5087_v20 = vld [vmem:[%s7982_s3 + $0x58] sm:$0xff]  }
 0x6c8   : > { %v3341_v7 = vpack.c.bf16 %v3335_v46, %v3334_v60  ;;  %5056 = vset.pattern.permute.xlu0 %v8365_v31 }
 0x6c9   : > { %v3304_v0 = vld [vmem:[#allocation2 + $0x29] sm:$0xff]  ;;  %3556 = vperm.xlu0 %5056, %v295_v22  }
 0x6ca   : > { %4721 = vmatpush3.bf16.msra.mxu1 %v3341_v7  ;;  %v3312_v23 = vmax.f32 %v3286_v6, %v3304_v0  ;;  %v3320_v18 = vld [vmem:[#allocation2 + $0x30] sm:$0xff]  ;;  %v3336_v42 = vmax.f32 %v3327_v59, %v3304_v0  ;;  %3518 = vperm.xlu1 %5052, %v295_v22   ;;  %v8368_v6 = vmov 0  }
 0x6cb   : > { %v3305_v54 = vld [vmem:[#allocation2 + $0x31] sm:$0xff]  ;;  %v3306_v47 = vld [vmem:[#allocation2 + $0x39] sm:$0xff]  ;;  %4722 = vmatprep.subr.bf16.mxu1 %v8362_v43 }
 0x6cc   : > { %v3313_v29 = vmax.f32 %v3287_v15, %v3305_v54  ;;  %v3314_v9 = vmax.f32 %v3288_v5, %v3306_v47  ;;  %v3328_v3 = vmax.f32 %v3312_v23, %v3320_v18  ;;  %v3321_v51 = vld [vmem:[#allocation2 + $0x38] sm:$0xff]  ;;  %v4590_v15 = vld [vmem:[%s7983_s4 + $0x1] ss:$0 sm:$0xff] }
 0x6cd   : > { %5058 = vset.pattern.permute.xlu0 %v8366_v14 }
 0x6ce   : > { %v3329_v41 = vmax.f32 %v3313_v29, %v3321_v51  ;;  %v3330_v36 = vmax.f32 %v3314_v9, %v3322_v34  ;;  %v3337_v26 = vmax.f32 %v3328_v3, %v3305_v54  ;;  %5054 = vset.pattern.permute.xlu1 %v8364_v16  ;;  %3590 = vperm.xlu0 %5058, %v294_v39  }
 0x6cf   : > { %3537 = vperm.xlu1 %5054, %v295_v22  }
 0x6d0   : > { %v3338_v50 = vmax.f32 %v3329_v41, %v3306_v47  ;;  %v3339_v44 = vmax.f32 %v3330_v36, %v3331_v10  ;;  %v3342_v8 = vpack.c.bf16 %v3337_v26, %v3336_v42 }
 0x6d2   : > { %4723 = vmatpush3.bf16.msra.mxu1 %v3342_v8  ;;  %v3343_v63 = vpack.c.bf16 %v3339_v44, %v3338_v50  ;;  %5061 = vset.pattern.permute.xlu0 %v8091_v28  ;;  %v5088_v8 = vld [vmem:[%s7982_s3 + $0x60] sm:$0xff]  }
 0x6d3   : > { %4724 = vmatprep.subr.bf16.mxu1 %v8362_v43  ;;  %5055 = vset.pattern.permute.xlu1 %v8365_v31 }
 0x6d4   : > { %3552 = vperm.xlu1 %5055, %v294_v39   ;;  %3613 = vperm.xlu0 %5061, %v295_v22  }
 0x6d6   : > { %4725 = vmatpush3.bf16.msra.mxu1 %v3343_v63 }
 0x6d7   : > { %4730 = vmatprep.subr.bf16.mxu1 %v8362_v43 }
 0x6d8   : > { %5057 = vset.pattern.permute.xlu1 %v8367_v12 }
 0x6d9   : > { %4727 = vmatmul.mubr.msk.bf16.vlgmr.msra.gmra.mrb[16].mxu1 %vm8026_vm9, %v5084_v45  ;;  %3571 = vperm.xlu1 %5057, %v294_v39   ;;  %vm3566_vm9 = vcmask 392512  }
 0x6da   : > { %4732 = vmatprep.mubr.msk.bf16.mxu1 %vm5253_vm8, %v8362_v43  ;;  %4731 = vmatpush3.bf16.msra.mxu1 %v5085_v37 }
 0x6db   : > { %4736 = vmatprep.subr.bf16.mxu1 %v8362_v43 }
 0x6dd   : > { %3575 = vperm.xlu1 %5057, %v295_v22  }
 0x6e1   : > { %5059 = vset.pattern.permute.xlu1 %v8366_v14  ;;  %v5089_v14 = vld [vmem:[%s7982_s3 + $0x68] sm:$0xff]  }
 0x6e2   : > { %3594 = vperm.xlu1 %5059, %v295_v22  }
 0x6e6   : > { %5060 = vset.pattern.permute.xlu1 %v8091_v28 }
 0x6e7   : > { %3609 = vperm.xlu1 %5060, %v294_v39  }
 0x6eb   : > { %5062 = vset.pattern.permute.xlu1 %v8368_v6 }
 0x6ec   : > { %3461 = vperm.xlu1 %5062, %v294_v39  }
 0x6f0   : > { %3466 = vperm.xlu1 %5062, %v295_v22  }
 0x738   : > { %v7660_v55 = vpop.permute.xlu1 %3480  ;;  %v7676_v27 = vpop.permute.xlu0 %3476 }
 0x73d   : > { %v7662_v28 = vpop.permute.xlu1 %3495 }
 0x73e   : > { %v7680_v52 = vpop.permute.xlu0 %3499 }
 0x743   : > { %v7687_v25 = vpop.permute.xlu0 %3533 }
 0x745   : > { %v7664_v62 = vpop.permute.xlu1 %3514 }
 0x748   : > { %v7696_v46 = vpop.permute.xlu0 %3556 }
 0x749   : > { %v7666_v33 = vpop.permute.xlu1 %3518 }
 0x74d   : > { %v7707_v9 = vpop.permute.xlu0 %3590 }
 0x74e   : > { %v7668_v49 = vpop.permute.xlu1 %3537 }
 0x753   : > { %v7670_v21 = vpop.permute.xlu1 %3552 }
 0x758   : > { %v7672_v19 = vpop.permute.xlu1 %3571 }
 0x75c   : > { %v7674_v30 = vpop.permute.xlu1 %3575 }
 0x761   : > { %v7678_v57 = vpop.permute.xlu1 %3594 }
 0x766   : > { %v7685_v5 = vpop.permute.xlu1 %3609 }
 0x76b   : > { %v7694_v60 = vpop.permute.xlu1 %3461 }
 0x76f   : > { %v7702_v2 = vpop.permute.xlu1 %3466 }
 0x7ac   : > { %v3387_v61 = vpop.f32.mrb[16].mxu1 }
 0x7ad   : > { %v4728_v17 = vpop.f32.mrb[17].mxu1 }
 0x7ae   : > { %v3390_v58 = vpop.f32.mrb[18].mxu1 }
 0x7af   : > { %v7654_v53 = vpack.c.bf16 %v3390_v58, %v3387_v61  ;;  %v4729_v4 = vpop.f32.mrb[19].mxu1  ;;  %v5090_v58 = vld [vmem:[%s7982_s3 + $0x70] ss:$0 sps:$4 sm:$0xff]  }
 0x7b1   : > { %4733 = vmatmul.mubr.msk.bf16.vlgmr.msra.gmra.mrb[20].mxu1 %vm223_vm0, %v7654_v53 }
 0x7b2   : > { %4746 = vmatprep.mubr.msk.bf16.mxu1 %vm5253_vm8, %v8362_v43  ;;  %4737 = vmatpush3.bf16.msra.mxu1 %v5086_v40 }
 0x7b3   : > { %4738 = vmatprep.subr.bf16.mxu1 %v8362_v43 }
 0x7b6   : > { %4739 = vmatpush3.bf16.msra.mxu1 %v5087_v20 }
 0x7b7   : > { %4740 = vmatprep.subr.bf16.mxu1 %v8362_v43 }
 0x7ba   : > { %4741 = vmatpush3.bf16.msra.mxu1 %v5088_v8 }
 0x7bb   : > { %4742 = vmatprep.subr.bf16.mxu1 %v8362_v43 }
 0x7be   : > { %4743 = vmatpush3.bf16.msra.mxu1 %v5089_v14  ;;  %v4602_v14 = vld [vmem:[%s7983_s4 + $0x4] ss:$0 sm:$0xff] }
 0x7bf   : > { %4744 = vmatprep.subr.bf16.mxu1 %v8362_v43 }
 0x884   : > { %v3445_v13 = vpop.f32.mrb[20].mxu1 }
 0x885   : > { %v3446_v1 = vadd.f32 %v4590_v15, %v3445_v13  ;;  %v4734_v38 = vpop.f32.mrb[21].mxu1  ;;  %v7733_v13 = vpop.permute.xlu0 %3613 }
 0x886   : > { %v3448_v35 = vpop.f32.mrb[22].mxu1 }
 0x887   : > { %v3452_v56 = vmax.f32 %v3446_v1, 0.0  ;;  %v3449_v48 = vadd.f32 %v4590_v15, %v3448_v35  ;;  %v4735_v11 = vpop.f32.mrb[23].mxu1 }
 0x889   : > { %3455 = vst.msk [vmem:[#allocation2 + $0x5] sm:$0xff] %vm3454_vm10, %v3452_v56  ;;  %v3453_v32 = vmax.f32 %v3449_v48, 0.0 }
 0x88b   : > { %3456 = vst.msk [vmem:[#allocation2 + $0xd] sm:$0xff] %vm3454_vm10, %v3453_v32  ;;  %v3673_v32 = vsel %vm3671_vm11, %v5090_v58, 0 }
 0x88c   : > { %4745 = vmatpush3.bf16.msra.mxu1 %v3673_v32  ;;  %v5096_v32 = vld [vmem:[%s7982_s3 + $0xa8] sm:$0xff]  }
 0x88d   : > { %4750 = vmatprep.subr.bf16.mxu1 %v8362_v43 }
 0x890   : > { %v3492_v7 = vld [vmem:[#allocation2 + $0x2] sm:$0xff] }
 0x891   : > { %v3473_v0 = vld [vmem:[#allocation2 + $0x1] sm:$0xff]  ;;  %v3502_v18 = vmul.f32 %v7662_v28, %v3492_v7 }
 0x892   : > { %v3606_v34 = vld [vmem:[#allocation2 + $0xa] sm:$0xff]  ;;  %v3457_v23 = vld [vmem:[#allocation2] sm:$0xff]  ;;  %v3483_v3 = vmul.f32 %v7676_v27, %v3473_v0  ;;  %v3607_v1 = vld [vmem:[#allocation2 + $0x12] sm:$0xff] }
 0x893   : > { %v3530_v54 = vld [vmem:[#allocation2 + $0x5] sm:$0xff]  ;;  %v3503_v29 = vmul.f32 %v3606_v34, %v7680_v52  ;;  %v3531_v10 = vld [vmem:[#allocation2 + $0xd] sm:$0xff]  ;;  %v3469_v36 = vmul.f32 %v7694_v60, %v3457_v23  ;;  %v3616_v56 = vmul.f32 %v7685_v5, %v3606_v34  ;;  %v3617_v48 = vmul.f32 %v7733_v13, %v3607_v1 }
 0x894   : > { %v3587_v47 = vld [vmem:[#allocation2 + $0x9] sm:$0xff]  ;;  %v3541_v50 = vmul.f32 %v7668_v49, %v3531_v10  ;;  %v3540_v22 = vmul.f32 %v7687_v25, %v3530_v54  ;;  %v3588_v35 = vld [vmem:[#allocation2 + $0x11] sm:$0xff] }
 0x895   : > { %v3458_v59 = vld [vmem:[#allocation2 + $0x8] sm:$0xff]  ;;  %v3484_v51 = vmul.f32 %v3587_v47, %v7660_v55  ;;  %v3504_v26 = vpack.c.bf16 %v3503_v29, %v3502_v18  ;;  %v3569_v37 = vld [vmem:[#allocation2 + $0x10] sm:$0xff]  ;;  %v3597_v20 = vmul.f32 %v7707_v9, %v3587_v47  ;;  %v3598_v7 = vmul.f32 %v7678_v57, %v3588_v35 }
 0x896   : > { %v3512_v41 = vld [vmem:[#allocation2 + $0xc] sm:$0xff]  ;;  %v3470_v42 = vmul.f32 %v7702_v2, %v3458_v59  ;;  %v3511_v44 = vld [vmem:[#allocation2 + $0x4] sm:$0xff]  ;;  %v3542_v12 = vpack.c.bf16 %v3541_v50, %v3540_v22  ;;  %v3578_v61 = vmul.f32 %v7672_v19, %v3458_v59  ;;  %v3579_v17 = vmul.f32 %v7674_v30, %v3569_v37 }
 0x897   : > { %v3485_v63 = vpack.c.bf16 %v3484_v51, %v3483_v3  ;;  %v3522_v45 = vmul.f32 %v7666_v33, %v3512_v41  ;;  %v3549_v39 = vld [vmem:[#allocation2 + $0x6] sm:$0xff]  ;;  %v3550_v24 = vld [vmem:[#allocation2 + $0xe] sm:$0xff]  ;;  %3506 = vrot.lane.b32.xlu1 %v3504_v26, %s5248_s16  ;;  %v3521_v31 = vmul.f32 %v7664_v62, %v3511_v44  ;;  %v3618_v0 = vpack.c.bf16 %v3617_v48, %v3616_v56  ;;  %v3718_v41 = vld [vmem:[%s7982_s3 + $0x78] sm:$0xf] }
 0x898   : > { %v3471_v16 = vpack.c.bf16 %v3470_v42, %v3469_v36  ;;  %v3559_v4 = vmul.f32 %v7670_v21, %v3549_v39  ;;  %v3560_v15 = vmul.f32 %v7696_v46, %v3550_v24  ;;  %v3580_v11 = vpack.c.bf16 %v3579_v17, %v3578_v61  ;;  %v4593_v42 = vld [vmem:[%s7983_s4 + $0x2] ss:$0 sm:$0xff]  ;;  %v5094_v48 = vld [vmem:[%s7982_s3 + $0x98] sm:$0xff]  }
 0x899   : > { %3487 = vrot.lane.b32.xlu0 %v3485_v63, %s5254_s8  ;;  %v3523_v38 = vpack.c.bf16 %v3522_v45, %v3521_v31  ;;  %v3599_v34 = vpack.c.bf16 %v3598_v7, %v3597_v20  ;;  %v3729_v36 = vsel %vm3671_vm11, %v3718_v41, 0  ;;  %v5091_v39 = vld [vmem:[%s7982_s3 + $0x80] sm:$0xff]   ;;  %v5093_v31 = vld [vmem:[%s7982_s3 + $0x90] sm:$0xff]  }
 0x89a   : > { %3472 = vst.msk [vmem:[#allocation3] sm:$0xff] %vm3454_vm10, %v3471_v16  ;;  %v3561_v40 = vpack.c.bf16 %v3560_v15, %v3559_v4  ;;  %v5092_v16 = vld [vmem:[%s7982_s3 + $0x88] sm:$0xff]   ;;  %v4605_v20 = vld [vmem:[%s7983_s4 + $0x5] ss:$0 sm:$0xff] }
 0x89b   : > { %3544 = vrot.lane.b32.xlu1 %v3542_v12, %s5249_s17 }
 0x89d   : > { %3525 = vrot.lane.b32.xlu0 %v3523_v38, %s5255_s26  ;;  %s5178_s26 = scalar_lea.vmem %s5177_s10, 32 }
 0x89f   : > { %3582 = vrot.lane.b32.xlu1 %v3580_v11, %s5250_s23  ;;  %v5095_v11 = vld [vmem:[%s7982_s3 + $0xa0] sm:$0xff]  }
 0x8a1   : > { %3563 = vrot.lane.b32.xlu0 %v3561_v40, %s5256_s30  ;;  %v5097_v40 = vld [vmem:[%s7982_s3 + $0xb0] sm:$0xff]  }
 0x8a3   : > { %3620 = vrot.lane.b32.xlu1 %v3618_v0, %s5244_s11 }
 0x8a5   : > { %3601 = vrot.lane.b32.xlu0 %v3599_v34, %s5257_s6 }
 0x909   : > { %v3507_v23 = vpop.permute.xlu1 %3506 }
 0x90b   : > { %v3488_v54 = vpop.permute.xlu0 %3487 }
 0x90c   : > { %3491 = vst.msk [vmem:[#allocation3] sm:$0xff] %vm3490_vm12, %v3488_v54  ;;  %vm3667_vm12 = vcmask 588800  }
 0x90d   : > { %3510 = vst.msk [vmem:[#allocation3] sm:$0xff] %vm3509_vm13, %v3507_v23  ;;  %v3545_v47 = vpop.permute.xlu1 %3544 }
 0x90f   : > { %v3526_v18 = vpop.permute.xlu0 %3525 }
 0x910   : > { %3529 = vst.msk [vmem:[#allocation3] sm:$0xff] %vm3528_vm14, %v3526_v18 }
 0x911   : > { %3548 = vst.msk [vmem:[#allocation3] sm:$0xff] %vm3547_vm15, %v3545_v47  ;;  %v3583_v29 = vpop.permute.xlu1 %3582 }
 0x913   : > { %v3564_v59 = vpop.permute.xlu0 %3563 }
 0x914   : > { %3567 = vst.msk [vmem:[#allocation3] sm:$0xff] %vm3566_vm9, %v3564_v59  ;;  %v5098_v59 = vld [vmem:[%s7982_s3 + $0xb8] sm:$0xff]   ;;  %vm8372_vm9 = vcmask 1048448  }
 0x915   : > { %3586 = vst.msk [vmem:[#allocation3] sm:$0xff] %vm3585_vm7, %v3583_v29  ;;  %v3621_v3 = vpop.permute.xlu1 %3620  ;;  %vm8371_vm7 = vcmask 917248  }
 0x917   : > { %v3602_v51 = vpop.permute.xlu0 %3601 }
 0x918   : > { %3605 = vst.msk [vmem:[#allocation3] sm:$0xff] %vm3604_vm6, %v3602_v51  ;;  %vm8370_vm6 = vcmask 786048  }
 0x919   : > { %3624 = vst.msk [vmem:[#allocation3] sm:$0xff] %vm3623_vm5, %v3621_v3  ;;  %vm3852_vm5 = vcmask 261120   ;;  %v5099_v3 = vld [vmem:[%s7982_s3 + $0xc0] sm:$0xff]  }
 0x920   : > { %v3625_v10 = vld [vmem:[#allocation3] sm:$0xff] }
 0x921   : > { %4747 = vmatmul.mubr.msk.bf16.vlgmr.msra.gmra.mrb[24].mxu1 %vm3667_vm12, %v3625_v10 }
 0x922   : > { %4752 = vmatprep.mubr.msk.bf16.mxu1 %vm5253_vm8, %v8362_v43  ;;  %4751 = vmatpush3.bf16.msra.mxu1 %v3729_v36 }
 0x923   : > { %4756 = vmatprep.subr.bf16.mxu1 %v8362_v43 }
 0x9f4   : > { %v3709_v26 = vpop.f32.mrb[24].mxu1 }
 0x9f5   : > { %v3710_v50 = vadd.f32 %v4593_v42, %v3709_v26  ;;  %v4748_v44 = vpop.f32.mrb[25].mxu1 }
 0x9f6   : > { %v3712_v8 = vpop.f32.mrb[26].mxu1 }
 0x9f7   : > { %v3713_v63 = vadd.f32 %v4593_v42, %v3712_v8  ;;  %v4749_v45 = vpop.f32.mrb[27].mxu1  ;;  %v3716_v37 = vmax.f32 %v3710_v50, 0.0 }
 0x9f9   : > { %v3717_v22 = vmax.f32 %v3713_v63, 0.0 }
 0x9fb   : > { %v3719_v24 = vpack.c.bf16 %v3717_v22, %v3716_v37 }
 0x9fd   : > { %4753 = vmatmul.mubr.msk.bf16.vlgmr.msra.gmra.mrb[28].mxu1 %vm3454_vm10, %v3719_v24 }
 0x9fe   : > { %4757 = vmatpush3.bf16.msra.mxu1 %v5091_v39  ;;  %4758 = vmatprep.mubr.msk.bf16.mxu1 %vm5253_vm8, %v8362_v43 }
 0x9ff   : > { %4762 = vmatprep.subr.bf16.mxu1 %v8362_v43 }
 0xa09   : > { %4759 = vmatmul.mubr.msk.bf16.vlgmr.msra.gmra.mrb[28].mxu1 %vm223_vm0, %v7654_v53  ;;  %v4600_v53 = vld [vmem:[%s7983_s4 + $0x3] ss:$0 sm:$0xff] }
 0xa0a   : > { %4766 = vmatprep.mubr.msk.bf16.mxu1 %vm5253_vm8, %v8362_v43  ;;  %4763 = vmatpush3.bf16.msra.mxu1 %v5092_v16  ;;  %v4816_v12 = vadd.f32 %v4602_v14, %v4600_v53 }
 0xa0b   : > { %4764 = vmatprep.subr.bf16.mxu1 %v8362_v43 }
 0xa0e   : > { %4765 = vmatpush3.bf16.msra.mxu1 %v5093_v31 }
 0xa0f   : > { %4060 = vmatprep.subr.bf16.mxu1 %v8368_v6 }
 0xadc   : > { %v3819_v61 = vpop.f32.mrb[28].mxu1 }
 0xadd   : > { %v4817_v17 = vadd.f32 %v4816_v12, %v3819_v61  ;;  %v4760_v58 = vpop.f32.mrb[29].mxu1 }
 0xade   : > { %v3822_v4 = vpop.f32.mrb[30].mxu1 }
 0xadf   : > { %v4819_v15 = vadd.f32 %v4816_v12, %v3822_v4  ;;  %v4761_v1 = vpop.f32.mrb[31].mxu1  ;;  %v3828_v38 = vmax.f32 %v4817_v17, 0.0 }
 0xae1   : > { %v3829_v35 = vmax.f32 %v4819_v15, 0.0  ;;  %v5101_v15 = vld [vmem:[%s7982_s3 + $0xd0] sm:$0xff]  }
 0xae3   : > { %v7780_v56 = vpack.c.bf16 %v3829_v35, %v3828_v38 }
 0xae5   : > { %4767 = vmatmul.mubr.msk.bf16.vlgmr.msra.gmra.mrb[32].mxu1 %vm3852_vm5, %v7780_v56 }
 0xae6   : > { %4061 = vmatpush1.bf16.msra.mxu1 %v5094_v48 }
 0xae7   : > { %4062 = vmatprep.subr.bf16.mxu1 %v8368_v6 }
 0xaea   : > { %4063 = vmatpush1.bf16.msra.mxu1 %v5095_v11 }
 0xaeb   : > { %4064 = vmatprep.subr.bf16.mxu1 %v8368_v6 }
 0xaee   : > { %4065 = vmatpush1.bf16.msra.mxu1 %v5096_v32 }
 0xaef   : > { %4066 = vmatprep.subr.bf16.mxu1 %v8368_v6 }
 0xaf2   : > { %4067 = vmatpush1.bf16.msra.mxu1 %v5097_v40 }
 0xaf3   : > { %4068 = vmatprep.subr.bf16.mxu1 %v8368_v6 }
 0xaf6   : > { %4069 = vmatpush1.bf16.msra.mxu1 %v5098_v59  ;;  %v306_v59 = vld [vmem:[%s7981_s2 + $0x50] sm:$0x3] }
 0xaf7   : > { %4070 = vmatprep.subr.bf16.mxu1 %v8368_v6 }
 0xafa   : > { %4071 = vmatpush1.bf16.msra.mxu1 %v5099_v3  ;;  %v4619_v3 = vld [vmem:[%s7983_s4 + $0x6] ss:$0 sm:$0xff] }
 0xafb   : > { %4072 = vmatprep.subr.bf16.mxu1 %v8368_v6 }
 0xbb8   : > { %v3890_v7 = vpop.f32.mrb[32].mxu1 }
 0xbb9   : > { %v3891_v0 = vadd.f32 %v4605_v20, %v3890_v7  ;;  %v4768_v34 = vpop.f32.mrb[33].mxu1 }
 0xbba   : > { %v3893_v23 = vpop.f32.mrb[34].mxu1  ;;  %v5103_v34 = vld [vmem:[%s7982_s3 + $0xe0] sm:$0xff]  }
 0xbbb   : > { %v3897_v54 = vmax.f32 %v3891_v0, 0.0  ;;  %v3894_v47 = vadd.f32 %v4605_v20, %v3893_v23  ;;  %v4769_v18 = vpop.f32.mrb[35].mxu1  ;;  %4777 = vmatpush3.bf16.msra.mxu0 %v5103_v34 }
 0xbbc   : > { %4788 = vmatprep.subr.bf16.mxu0 %v8362_v43 }
 0xbbd   : > { %3899 = vst.msk [vmem:[#allocation2 + $0x5] sm:$0xff] %vm223_vm0, %v3897_v54  ;;  %v3898_v29 = vmax.f32 %v3894_v47, 0.0 }
 0xbbf   : > { %3900 = vst.msk [vmem:[#allocation2 + $0xd] sm:$0xff] %vm223_vm0, %v3898_v29 }
 0xbc4   : > { %v3917_v51 = vld [vmem:[#allocation2 + $0x2] sm:$0xff] }
 0xbc5   : > { %v3907_v10 = vld [vmem:[#allocation2 + $0x1] sm:$0xff]  ;;  %v3919_v36 = vmul.f32 %v3917_v51, %v7662_v28 }
 0xbc6   : > { %v3918_v41 = vld [vmem:[#allocation2 + $0xa] sm:$0xff]  ;;  %v3909_v44 = vmul.f32 %v3907_v10, %v7676_v27  ;;  %v3978_v37 = vld [vmem:[#allocation2 + $0x12] sm:$0xff]  ;;  %v3901_v31 = vld [vmem:[#allocation2] sm:$0xff] }
 0xbc7   : > { %v3908_v42 = vld [vmem:[#allocation2 + $0x9] sm:$0xff]  ;;  %v3920_v50 = vmul.f32 %v3918_v41, %v7680_v52  ;;  %v3979_v22 = vmul.f32 %v3918_v41, %v7685_v5  ;;  %v3980_v28 = vmul.f32 %v3978_v37, %v7733_v13  ;;  %v3903_v13 = vmul.f32 %v3901_v31, %v7694_v60 }
 0xbc8   : > { %v3938_v26 = vld [vmem:[#allocation2 + $0xd] sm:$0xff]  ;;  %v3910_v8 = vmul.f32 %v3908_v42, %v7660_v55  ;;  %v3937_v63 = vld [vmem:[#allocation2 + $0x5] sm:$0xff] }
 0xbc9   : > { %v3928_v45 = vld [vmem:[#allocation2 + $0xc] sm:$0xff]  ;;  %v3940_v39 = vmul.f32 %v3938_v26, %v7668_v49  ;;  %v3927_v24 = vld [vmem:[#allocation2 + $0x4] sm:$0xff]  ;;  %v3921_v53 = vpack.c.bf16 %v3920_v50, %v3919_v36  ;;  %v3939_v27 = vmul.f32 %v3937_v63, %v7687_v25  ;;  %v3981_v61 = vpack.c.bf16 %v3980_v28, %v3979_v22 }
 0xbca   : > { %v3957_v16 = vld [vmem:[#allocation2 + $0x8] sm:$0xff]  ;;  %v3911_v14 = vpack.c.bf16 %v3910_v8, %v3909_v44  ;;  %v3930_v52 = vmul.f32 %v3928_v45, %v7666_v33  ;;  %v3958_v12 = vld [vmem:[#allocation2 + $0x10] sm:$0xff]  ;;  %v3929_v49 = vmul.f32 %v3927_v24, %v7664_v62 }
 0xbcb   : > { %v5100_v55 = vld [vmem:[%s7982_s3 + $0xc8] sm:$0xff]   ;;  %3923 = vrot.lane.b32.xlu1 %v3921_v53, %s5249_s17  ;;  %v3904_v33 = vmul.f32 %v3957_v16, %v7702_v2  ;;  %v3941_v58 = vpack.c.bf16 %v3940_v39, %v3939_v27  ;;  %3982 = vst.msk [vmem:[#allocation3 + $0x8] sm:$0xff] %vm223_vm0, %v3981_v61  ;;  %v3959_v4 = vmul.f32 %v3957_v16, %v7672_v19  ;;  %v3968_v2 = vld [vmem:[#allocation2 + $0x11] sm:$0xff]  ;;  %v4621_v39 = vld [vmem:[%s7983_s4 + $0x7] ss:$0 sm:$0xff] }
 0xbcc   : > { %v3947_v5 = vld [vmem:[#allocation2 + $0x6] sm:$0xff]  ;;  %v3948_v17 = vld [vmem:[#allocation2 + $0xe] sm:$0xff]  ;;  %3913 = vrot.lane.b32.xlu0 %v3911_v14, %s5248_s16  ;;  %v3960_v25 = vmul.f32 %v3958_v12, %v7674_v30  ;;  %4073 = vmatpush1.bf16.msra.mxu1 %v5100_v55  ;;  %v3931_v1 = vpack.c.bf16 %v3930_v52, %v3929_v49  ;;  %v5102_v19 = vld [vmem:[%s7982_s3 + $0xd8] sm:$0xff]  }
 0xbcd   : > { %v3949_v38 = vmul.f32 %v3947_v5, %v7670_v21  ;;  %v3950_v62 = vmul.f32 %v3948_v17, %v7696_v46  ;;  %v3905_v60 = vpack.c.bf16 %v3904_v33, %v3903_v13  ;;  %4074 = vmatprep.subr.bf16.mxu1 %v8368_v6  ;;  %v3969_v21 = vmul.f32 %v3908_v42, %v7707_v9  ;;  %v5104_v26 = vld [vmem:[%s7982_s3 + $0xe8] sm:$0xff]   ;;  %v5105_v8 = vld [vmem:[%s7982_s3 + $0xf0] sm:$0xff]  }
 0xbce   : > { %v3961_v30 = vpack.c.bf16 %v3960_v25, %v3959_v4  ;;  %v3970_v46 = vmul.f32 %v3968_v2, %v7678_v57  ;;  %v4625_v24 = vld [vmem:[%s7983_s4 + $0x8] ss:$0 sm:$0xff]  ;;  %v5106_v25 = vld [vmem:[%s7982_s3 + $0xf8] sm:$0xff]  }
 0xbcf   : > { %3943 = vrot.lane.b32.xlu1 %v3941_v58, %s5244_s11  ;;  %3906 = vst.msk [vmem:[#allocation3] sm:$0xff] %vm223_vm0, %v3905_v60  ;;  %v3951_v35 = vpack.c.bf16 %v3950_v62, %v3949_v38  ;;  %s8369_s11 = smov 112   ;;  %v4820_v28 = vadd.f32 %v4625_v24, %v4621_v39  ;;  %v5109_v38 = vld [vmem:[%s7982_s3 + $0x110] sm:$0xff]  }
 0xbd0   : > { %3933 = vrot.lane.b32.xlu0 %v3931_v1, %s5250_s23  ;;  %4075 = vmatpush1.bf16.msra.mxu1 %v5101_v15  ;;  %v3971_v11 = vpack.c.bf16 %v3970_v46, %v3969_v21  ;;  %v5107_v15 = vld [vmem:[%s7982_s3 + $0x100] sm:$0xff]   ;;  %v5108_v1 = vld [vmem:[%s7982_s3 + $0x108] sm:$0xff]  }
 0xbd1   : > { %4076 = vmatprep.subr.bf16.mxu1 %v8368_v6 }
 0xbd2   : > { %v3984_v48 = vld [vmem:[#allocation3 + $0x8] sm:$0xff] }
 0xbd3   : > { %3963 = vrot.lane.b32.xlu1 %v3961_v30, %s5251_s9  ;;  %4618 = vmatprep.mubr.msk.bf16.mxu1 %vm223_vm0, %v3984_v48 }
 0xbd4   : > { %3953 = vrot.lane.b32.xlu0 %v3951_v35, %s5245_s12  ;;  %4077 = vmatpush1.bf16.msra.mxu1 %v5102_v19  ;;  %s216_s12 = scalar_lea.vmem [#allocation4], %s215_s25 }
 0xbd5   : > { %4770 = vmatprep.subr.bf16.mxu1 %v8362_v43  ;;  %s4493_s23 = sshll.u32 %s216_s12, 4  ;;  %s7939_s23 = int_to_ptr.vmem [resolvable:$true] %s4493_s23 }
 0xbd6   : > { %s5172_s14 = scalar_lea.vmem %s7939_s23, 16  ;;  %p5179_p0 = scmp.lt.s32.totalorder %s7939_s23, %s5177_s10 }
 0xbd7   : > { %p5173_p11 = scmp.ne.s32.totalorder %s7939_s23, %s5172_s14  ;;  %p5180_p1 = scmp.lt.s32.totalorder %s5178_s26, %s5172_s14 }
 0xbd8   : > { %3973 = vrot.lane.b32.xlu0 %v3971_v11, %s8369_s11  ;;  %s4637_s11 = sshll.u32 %s5310_s22, 4  ;;  %s4481_s22 = scalar_lea.sflag [#allocation5], %s215_s25 }
 0xbd9   : > { %s7937_s13 = scalar_lea.hbm %s7984_s5, %s4637_s11  ;;  %p5174_p12 = pnand %p5173_p11, %p5327_p5 }
 0xbda   : > { %p5181_p2 = por %p5180_p1, %p5179_p0 }
 0xbdb   : > { %p5175_p13 = pneg %p5174_p12 }
 0xbdd   : > { %p5182_p3 = pnand %p5181_p2, %p5175_p13 }
 0xc3d   : > { %v3924_v32 = vpop.permute.xlu1 %3923 }
 0xc3e   : > { %v3914_v40 = vpop.permute.xlu0 %3913 }
 0xc3f   : > { %3916 = vst.msk [vmem:[#allocation3] sm:$0xff] %vm867_vm1, %v3914_v40  ;;  %vm8373_vm1 = vcmask 523264   ;;  %v5111_v40 = vld [vmem:[%s7982_s3 + $0x120] sm:$0xff]  }
 0xc40   : > { %3926 = vst.msk [vmem:[#allocation3] sm:$0xff] %vm1156_vm2, %v3924_v32  ;;  %v5110_v32 = vld [vmem:[%s7982_s3 + $0x118] sm:$0xff]  }
 0xc41   : > { %v3944_v6 = vpop.permute.xlu1 %3943 }
 0xc42   : > { %v3934_v57 = vpop.permute.xlu0 %3933 }
 0xc43   : > { %3936 = vst.msk [vmem:[#allocation3] sm:$0xff] %vm1445_vm3, %v3934_v57 }
 0xc44   : > { %3946 = vst.msk [vmem:[#allocation3] sm:$0xff] %vm1734_vm4, %v3944_v6  ;;  %vm8374_vm4 = vmmov %vm8373_vm1  ;;  %v4348_v6 = vld [vmem:[%s7983_s4 + $0x9] sm:$0x1] }
 0xc45   : > { %v3964_v9 = vpop.permute.xlu1 %3963 }
 0xc46   : > { %v3954_v20 = vpop.permute.xlu0 %3953 }
 0xc47   : > { %3956 = vst.msk [vmem:[#allocation3] sm:$0xff] %vm8370_vm6, %v3954_v20 }
 0xc48   : > { %3966 = vst.msk [vmem:[#allocation3] sm:$0xff] %vm8371_vm7, %v3964_v9 }
 0xc4a   : > { %v3974_v7 = vpop.permute.xlu0 %3973 }
 0xc4b   : > { %3976 = vst.msk [vmem:[#allocation3] sm:$0xff] %vm8372_vm9, %v3974_v7 }
 0xc52   : > { %v3983_v0 = vld [vmem:[#allocation3] sm:$0xff] }
 0xc53   : > { %4093 = vmatmul.mubr.bf16.vlgmr.msra.gmra.mrb[36].mxu1 %v3983_v0 }
 0xc54   : > { %4772 = vmatprep.mubr.msk.bf16.mxu1 %vm5253_vm8, %v8362_v43 }
 0xd26   : > { %v4094_v23 = vpop.f32.mrb[36].mxu1 }
 0xd27   : > { %v4096_v54 = vpop.f32.mrb[37].mxu1 }
 0xd28   : > { %v4097_v47 = vpop.f32.mrb[38].mxu1 }
 0xd29   : > { %v4101_v18 = vpack.c.bf16 %v4097_v47, %v4094_v23  ;;  %v4099_v29 = vpop.f32.mrb[39].mxu1 }
 0xd2b   : > { %4771 = vmatpush3.bf16.msra.mxu1 %v4101_v18 }
 0xd2c   : > { %4782 = vmatprep.subr.bf16.mxu1 %v8362_v43 }
 0xd2e   : > { %4773 = vmatmul.mubr.msk.bf16.vlgmr.msra.gmra.mrb[40].mxu1 %vm223_vm0, %v306_v59 }
 0xd2f   : > { %4783 = vmatpush3.bf16.msra.mxu1 %v7780_v56  ;;  %4784 = vmatprep.mubr.msk.bf16.mxu1 %vm5253_vm8, %v8362_v43 }
 0xd30   : > { %4796 = vmatprep.subr.bf16.mxu1 %v8362_v43 }
 0xd36   : > { %4785 = vmatmul.mubr.msk.bf16.vlgmr.msra.gmra.mrb[44].mxu1 %vm223_vm0, %v306_v59 }
 0xd37   : > { %4804 = vmatprep.mubr.msk.bf16.mxu1 %vm5253_vm8, %v8362_v43  ;;  %4797 = vmatpush3.bf16.msra.mxu1 %v5106_v25 }
 0xd38   : > { %4798 = vmatprep.subr.bf16.mxu1 %v8362_v43 }
 0xd3b   : > { %4799 = vmatpush3.bf16.msra.mxu1 %v5107_v15 }
 0xd3c   : > { %4800 = vmatprep.subr.bf16.mxu1 %v8362_v43 }
 0xd3f   : > { %4801 = vmatpush3.bf16.msra.mxu1 %v5108_v1 }
 0xd40   : > { %4802 = vmatprep.subr.bf16.mxu1 %v8362_v43 }
 0xd43   : > { %4803 = vmatpush3.bf16.msra.mxu1 %v5109_v38 }
 0xe01   : > { %v4144_v51 = vpop.f32.mrb[40].mxu1 }
 0xe02   : > { %v4145_v10 = vadd.f32 %v4619_v3, %v4144_v51  ;;  %v4774_v41 = vpop.f32.mrb[41].mxu1 }
 0xe03   : > { %v4147_v36 = vpop.f32.mrb[42].mxu1 }
 0xe04   : > { %v4150_v42 = vmax.f32 %v4145_v10, 0.0  ;;  %v4775_v56 = vpop.f32.mrb[43].mxu1 }
 0xe06   : > { %v4153_v50 = vpack.c.bf16 %v4150_v42, %v4150_v42 }
 0xe08   : > { %4779 = vmatmul.mubr.msk.bf16.vlgmr.msra.gmra.mrb[64].mxu0 %vm223_vm0, %v4153_v50  ;;  %vm4315_vm0 = vcmask 519168  }
 0xe09   : > { %4789 = vmatpush3.bf16.msra.mxu0 %v5104_v26  ;;  %v4242_v44 = vpop.f32.mrb[44].mxu1  ;;  %4792 = vmatprep.mubr.msk.bf16.mxu0 %vm5253_vm8, %v8362_v43 }
 0xe0a   : > { %4790 = vmatprep.subr.bf16.mxu0 %v8362_v43  ;;  %v4786_v63 = vpop.f32.mrb[45].mxu1  ;;  %v4252_v22 = vpack.c.bf16 %v4242_v44, %v4242_v44 }
 0xe0b   : > { %v4245_v45 = vpop.f32.mrb[46].mxu1 }
 0xe0c   : > { %v4787_v37 = vpop.f32.mrb[47].mxu1 }
 0xe0d   : > { %4791 = vmatpush3.bf16.msra.mxu0 %v5105_v8 }
 0xe0e   : > { %4808 = vmatprep.subr.bf16.mxu0 %v8362_v43 }
 0xe14   : > { %4793 = vmatmul.mubr.msk.bf16.vlgmr.msra.gmra.mrb[64].mxu0 %vm3852_vm5, %v4252_v22 }
 0xe15   : > { %4812 = vmatprep.mubr.msk.bf16.mxu0 %vm5253_vm8, %v8362_v43  ;;  %4809 = vmatpush3.bf16.msra.mxu0 %v5110_v32  ;;  %vm4478_vm8 = vcmask 122880  }
 0xe16   : > { %4810 = vmatprep.subr.bf16.mxu0 %v8362_v43  ;;  %v4422_v43 = vld [vmem:[%s7983_s4 + $0xa] sm:$0x1] }
 0xe19   : > { %4811 = vmatpush3.bf16.msra.mxu0 %v5111_v40 }
 0xee7   : > { %v4307_v16 = vpop.f32.mrb[64].mxu0 }
 0xee8   : > { %v4821_v31 = vadd.f32 %v4820_v28, %v4307_v16  ;;  %v4794_v53 = vpop.f32.mrb[65].mxu0 }
 0xee9   : > { %v4310_v14 = vpop.f32.mrb[66].mxu0 }
 0xeea   : > { %v4314_v52 = vmax.f32 %v4821_v31, 0.0  ;;  %v4795_v12 = vpop.f32.mrb[67].mxu0 }
 0xeec   : > { %v4316_v55 = vsel %vm4315_vm0, %v4314_v52, 0.0 }
 0xeed   : > { %v4317_v27 = vrot.slane %v4316_v55, 4 }
 0xeef   : > { %v4318_v61 = vadd.f32 %v4317_v27, %v4316_v55 }
 0xef1   : > { %v4319_v5 = vrot.slane %v4318_v61, 2 }
 0xef3   : > { %v4320_v17 = vadd.f32 %v4319_v5, %v4318_v61 }
 0xef5   : > { %v4321_v49 = vrot.slane %v4320_v17, 1 }
 0xef7   : > { %v4322_v13 = vadd.f32 %v4321_v49, %v4320_v17 }
 0xef9   : > { %v4324_v33 = vmul.f32 0.25, %v4322_v13 }
 0xefb   : > { %v4325_v58 = vmul.f32 %v4324_v33, %v4324_v33 }
 0xefd   : > { %v4326_v4 = vsel %vm8373_vm1, %v4325_v58, 0.0 }
 0xefe   : > { %4327 = vadd.xlane.f32.xlu1 %v4326_v4 }
 0xf8b   : > { %v4328_v62 = vpop.xlane.xlu1 %4327 }
 0xf8c   : > { %5112 = vrsqrt.f32 %v4328_v62  ;;  %vm4331_vm2 = vcmp.eq.f32.partialorder %v4328_v62, inf  ;;  %v4334_v19 = vand.u32 2147483648, %v4328_v62  ;;  %vm4333_vm3 = vcmp.eq.f32.partialorder %v4328_v62, 0.0 }
 0xf96   : > { %v5113_v60 = vpop.eup %5112 }
 0xf97   : > { %v4330_v2 = vmul.f32 %v5113_v60, %v4328_v62 }
 0xf99   : > { %v4332_v30 = vsel %vm4331_vm2, %v4328_v62, %v4330_v2 }
 0xf9a   : > { %v4335_v35 = vsel %vm4333_vm3, %v4334_v19, %v4332_v30 }
 0xf9b   : > { %v4336_v21 = vmax.f32 %v4335_v35, 1e-12 }
 0xf9d   : > { %5114 = vrcp.f32 %v4336_v21 }
 0xfa7   : > { %v5115_v46 = vpop.eup %5114 }
 0xfa8   : > { %v4338_v48 = vmul.f32 %v5115_v46, %v4324_v33 }
 0xfaa   : > { %v4347_v11 = vpack.c.bf16 %v4338_v48, %v4338_v48 }
 0xfac   : > { %4805 = vmatmul.mubr.msk.bf16.vlgmr.msra.gmra.mrb[48].mxu1 %vm8374_vm4, %v4347_v11 }
0x107f   : > { %v4410_v57 = vpop.f32.mrb[48].mxu1 }
0x1080   : > { %v4411_v9 = vadd.f32 %v4410_v57, %v4348_v6  ;;  %v4806_v20 = vpop.f32.mrb[49].mxu1 }
0x1081   : > { %v4413_v7 = vpop.f32.mrb[50].mxu1 }
0x1082   : > { %v4416_v0 = vmax.f32 %v4411_v9, 0.0  ;;  %v4807_v34 = vpop.f32.mrb[51].mxu1 }
0x1084   : > { %v4421_v23 = vpack.c.bf16 %v4416_v0, %v4416_v0 }
0x1086   : > { %4813 = vmatmul.mubr.msk.bf16.vlgmr.msra.gmra.mrb[68].mxu0 %vm3852_vm5, %v4421_v23 }
0x1159   : > { %v4472_v54 = vpop.f32.mrb[68].mxu0 }
0x115a   : > { %v4473_v47 = vadd.f32 %v4472_v54, %v4422_v43  ;;  %v4814_v18 = vpop.f32.mrb[69].mxu0 }
0x115b   : > { %v4475_v29 = vpop.f32.mrb[70].mxu0 }
0x115c   : > { %v4815_v59 = vpop.f32.mrb[71].mxu0  ;;  %4479 = vst.msk [vmem:[%s216_s12] sm:$0x1] %vm4478_vm8, %v4473_v47 }
0x115d   : > { %5185 = shalt.err (!%p5182_p3)
}
0x115e   : > { %s5186_s30 = scalar_lea.hbm %s7937_s13, 16  ;;  %s5190_s25 = scalar_lea.hbm %s7984_s5, 32 }
0x115f   : > { %p5187_p4 = scmp.ne.s32.totalorder %s7937_s13, %s5186_s30  ;;  %p5191_p9 = scmp.lt.u32.totalorder %s7937_s13, %s7984_s5 }
0x1160   : > { %p5192_p10 = scmp.lt.u32.totalorder %s5190_s25, %s5186_s30  ;;  %p5194_p12 = scmp.lt.u32.totalorder %s5186_s30, %s7937_s13 }
0x1161   : > { %p5188_p7 = pnand %p5187_p4, %p5327_p5 }
0x1162   : > { %p5193_p11 = por %p5192_p10, %p5191_p9 }
0x1163   : > { %p5189_p8 = pneg %p5188_p7 }
0x1164   : > { %p5195_p13 = por %p5194_p12, %p5193_p11 }
0x1166   : > { %p5196_p0 = pnand %p5195_p13, %p5189_p8 }
0x1168   : > { %5199 = shalt.err (!%p5196_p0)
}
0x1169   : > { %4830 = dma.vmem_to_hbm [thread:$0]  (%p5327_p5), %s7939_s23, 16, %s7937_s13, %s4481_s22  }
0x116a PF: > { %p4836_p1 = scmp.ge.s32.totalorder %s5234_s21, 2  ;;  %s4505_s11 = sand.u32 1, %s5222_s18  }
0x116b   : > { %s4506_s12 = scalar_lea.sflag [#allocation5], %s4505_s11 }
0x116c   : > { %p4833_p2 = pnand %p4836_p1, %p5331_p6 }
0x116e   : > { %5217 = dma.done.wait (!%p4833_p2), %s4506_s12, 16  }
0x116f   : > { %5219 = vsyncadd (!%p4833_p2), %s4506_s12, 4294967280  ;;  %p15_p3 = scmp.ge.s32.totalorder %s5314_s24, 4   ;;  %s8375_s18 = smov %s5226_s19 }
0x1170   : > { %s8376_s19 = smov %s5230_s20  ;;  %s8377_s20 = smov %s5325_s27 }
0x1171   : > { %s8378_s21 = smov %s5314_s24  ;;  %17 = sbr.rel (!%p15_p3) target bundleno = 3 (0x3), region = 75 }
0x1178   :  { %4510 = vsyncpa [#allocation5], 1 }
0x1179   :  { %4512 = vsyncpa [#allocation5 + $0x1], 1 }

</bundles_post_ra>
